<compile_context>
chip_gen: v5e
topology: v5e:2x2
jax: 0.10.0
libtpu: 0.0.40
codegen_flags: <defaults>
</compile_context>

<pallas_src>
import math

import jax
import jax.numpy as jnp
from jax import lax
from jax.experimental import pallas as pl
from jax.experimental.pallas import tpu as pltpu


def _round_up(v, m):
    return (v + m - 1) // m * m


def _lookup_kernel(x_ref, tab_ref, o_ref):
    # x_ref:   (ROWS, C)   int32 offset indices (C = pack * F, tiny & static)
    # tab_ref: (K', H')    flattened + block-diagonal-replicated tables, f32
    # o_ref:   (ROWS, H')  packed, lane-dense output (H' = pack * hidden)
    rows, cols = x_ref.shape
    kdim, _ = tab_ref.shape

    # Single hoisted iota (no per-feature re-materialization).  Each index
    # column targets a disjoint segment of [0, K'), so OR-ing the per-column
    # compares yields the exact fused one-hot for all features / packed nodes.
    iota = lax.broadcasted_iota(jnp.int32, (rows, kdim), 1)
    hit = x_ref[:, 0:1] == iota
    for c in range(1, cols):                 # tiny static trip count -> unrolled
        hit = hit | (x_ref[:, c:c + 1] == iota)
    one_hot = hit.astype(jnp.float32)

    # One MXU matmul replaces F per-feature sliver matmuls + accumulator adds.
    o_ref[...] = jnp.dot(one_hot, tab_ref[...],
                         preferred_element_type=jnp.float32)


def learnable_lookup_table(x, emb_tables, *, tile_n=1024):
    """x: [N, F] int; emb_tables: [F, MAX_DIM, H] f32 -> [N, H] f32 (sum of lookups)."""
    n, f = x.shape
    num_feat, max_dim, hidden = emb_tables.shape
    assert f == num_feat

    # Pack `pack` consecutive nodes into one 128-lane output row when H < 128.
    pack = 128 // hidden if (hidden < 128 and 128 % hidden == 0) else 1
    seg = f * max_dim                 # per-node index range in the fused table
    kdim = pack * seg                 # fused/packed one-hot width (K')
    hdim = pack * hidden              # packed, lane-dense output width (H')

    # Row tile: multiple of 8*pack (sublane alignment of the packed block),
    # clamped toward N for small inputs; pad N instead of asserting divisibility.
    align = 8 * pack
    tile_n = _round_up(max(align, min(tile_n, _round_up(n, align))), align)
    n_pad = _round_up(n, tile_n)
    rows_pad, tile_rows = n_pad // pack, tile_n // pack

    # Offsets: feature i -> segment i*MAX_DIM; pack position j -> + j*seg.
    # Padded rows use index 0 (always a valid table row) and are sliced away.
    x_pad = jnp.pad(x.astype(jnp.int32), ((0, n_pad - n), (0, 0)))
    feat_off = jnp.arange(f, dtype=jnp.int32) * max_dim
    node_off = (jnp.arange(n_pad, dtype=jnp.int32) % pack) * seg
    x_packed = (x_pad + feat_off[None, :] + node_off[:, None]).reshape(
        rows_pad, pack * f)

    # Flatten the stacked tables and replicate block-diagonally so the packed
    # one-hot matmul directly produces the lane-dense (rows, pack*H) output.
    t_flat = emb_tables.reshape(seg, hidden)
    t_rep = jnp.kron(jnp.eye(pack, dtype=t_flat.dtype), t_flat)    # (K', H')

    grid = (rows_pad // tile_rows,)
    out_packed = pl.pallas_call(
        _lookup_kernel,
        out_shape=jax.ShapeDtypeStruct((rows_pad, hdim), jnp.float32),
        grid_spec=pltpu.PrefetchScalarGridSpec(
            num_scalar_prefetch=0,
            grid=grid,
            in_specs=[
                pl.BlockSpec((tile_rows, pack * f), lambda i: (i, 0)),
                # Grid-invariant table block (tiny: K'*H'*4 bytes); Pallas only
                # DMAs it once since the block index never changes.
                pl.BlockSpec((kdim, hdim), lambda i: (0, 0)),
            ],
            out_specs=pl.BlockSpec((tile_rows, hdim), lambda i: (i, 0)),
        ),
        compiler_params=pltpu.CompilerParams(
            dimension_semantics=("parallel",)),
    )(x_packed, t_rep)

    # Free layout reshape back to one row per node, then drop padding rows.
    return out_packed.reshape(n_pad, hidden)[:n]


def init_embedding_tables(key, feature_dims, hidden, max_dim_padded):
    """Deterministic xavier_uniform init (same bound formula as torch) per table,
    stacked and zero-padded along the num_embeddings axis."""
    tables = []
    for i, dim in enumerate(feature_dims):
        k = jax.random.fold_in(key, i)
        bound = math.sqrt(6.0 / (dim + hidden))
        w = jax.random.uniform(k, (dim, hidden), jnp.float32, -bound, bound)
        w = jnp.pad(w, ((0, max_dim_padded - dim), (0, 0)))
        tables.append(w)
    return jnp.stack(tables, axis=0)  # (F, MAX_DIM, H)


if __name__ == "__main__":
    key = jax.random.PRNGKey(0)

    hidden_channels = 32
    feature_dims = (21, 17)          # zinc-style small categorical vocabularies
    num_nodes = 2000                 # N (not a multiple of the tile -> exercises padding)
    num_feat = len(feature_dims)

    max_dim_padded = _round_up(max(feature_dims), 8)

    k_w, k_x = jax.random.split(key)
    emb_tables = init_embedding_tables(k_w, feature_dims, hidden_channels,
                                       max_dim_padded)

    # integer node features, one column per feature, each within its vocab
    cols = []
    for i, dim in enumerate(feature_dims):
        cols.append(jax.random.randint(jax.random.fold_in(k_x, i),
                                       (num_nodes,), 0, dim, dtype=jnp.int32))
    x = jnp.stack(cols, axis=1)      # (N, F) int32

    # tile_n=1024 nodes -> padded N=2048, grid of 2 (both v7x TCs), MXU M=256.
    out = learnable_lookup_table(x, emb_tables, tile_n=1024)
    out = jax.block_until_ready(out)

    # pure-JAX reference: sum_i emb_tables[i][x[:, i]]
    ref = jnp.zeros((num_nodes, hidden_channels), jnp.float32)
    for i in range(num_feat):
        ref = ref + emb_tables[i][x[:, i]]

    assert out.shape == (num_nodes, hidden_channels)
    assert out.dtype == jnp.float32
    assert jnp.allclose(out, ref, atol=1e-5, rtol=1e-5)
    print("KERNEL_OK")
</pallas_src>

<mosaic_0001>
module attributes {stable_mosaic.version = 11 : i64} {
  func.func @_lookup_kernel(%arg0: i32, %arg1: memref<256x8xi32, #tpu.memory_space<vmem>>, %arg2: memref<192x128xf32, #tpu.memory_space<vmem>>, %arg3: memref<256x128xf32, #tpu.memory_space<vmem>>) attributes {dimension_semantics = [#tpu.dimension_semantics<parallel>], iteration_bounds = array<i64: 2>, scalar_prefetch = 0 : i64, scratch_operands = 0 : i64, tpu.core_type = #tpu.core_type<tc>, window_params = [{transform_indices = @transform_0, window_bounds = array<i64: 256, 8>}, {pipeline_mode = #tpu.pipeline_mode<synchronous>, transform_indices = @transform_1, window_bounds = array<i64: 192, 128>}, {transform_indices = @transform_2, window_bounds = array<i64: 256, 128>}]} {
    %0 = tpu.iota {dimensions = array<i32: 1>} : vector<256x192xi32>
    %c0 = arith.constant 0 : index
    %c0_0 = arith.constant 0 : index
    %1 = vector.load %arg1[%c0, %c0_0] : memref<256x8xi32, #tpu.memory_space<vmem>>, vector<256x1xi32>
    %2 = vector.broadcast %1 : vector<256x1xi32> to vector<256x192xi32>
    %3 = arith.cmpi eq, %2, %0 : vector<256x192xi32>
    %c0_1 = arith.constant 0 : index
    %c1 = arith.constant 1 : index
    %4 = vector.load %arg1[%c0_1, %c1] : memref<256x8xi32, #tpu.memory_space<vmem>>, vector<256x1xi32>
    %5 = vector.broadcast %4 : vector<256x1xi32> to vector<256x192xi32>
    %6 = arith.cmpi eq, %5, %0 : vector<256x192xi32>
    %7 = arith.ori %3, %6 : vector<256x192xi1>
    %c0_2 = arith.constant 0 : index
    %c2 = arith.constant 2 : index
    %8 = vector.load %arg1[%c0_2, %c2] : memref<256x8xi32, #tpu.memory_space<vmem>>, vector<256x1xi32>
    %9 = vector.broadcast %8 : vector<256x1xi32> to vector<256x192xi32>
    %10 = arith.cmpi eq, %9, %0 : vector<256x192xi32>
    %11 = arith.ori %7, %10 : vector<256x192xi1>
    %c0_3 = arith.constant 0 : index
    %c3 = arith.constant 3 : index
    %12 = vector.load %arg1[%c0_3, %c3] : memref<256x8xi32, #tpu.memory_space<vmem>>, vector<256x1xi32>
    %13 = vector.broadcast %12 : vector<256x1xi32> to vector<256x192xi32>
    %14 = arith.cmpi eq, %13, %0 : vector<256x192xi32>
    %15 = arith.ori %11, %14 : vector<256x192xi1>
    %c0_4 = arith.constant 0 : index
    %c4 = arith.constant 4 : index
    %16 = vector.load %arg1[%c0_4, %c4] : memref<256x8xi32, #tpu.memory_space<vmem>>, vector<256x1xi32>
    %17 = vector.broadcast %16 : vector<256x1xi32> to vector<256x192xi32>
    %18 = arith.cmpi eq, %17, %0 : vector<256x192xi32>
    %19 = arith.ori %15, %18 : vector<256x192xi1>
    %c0_5 = arith.constant 0 : index
    %c5 = arith.constant 5 : index
    %20 = vector.load %arg1[%c0_5, %c5] : memref<256x8xi32, #tpu.memory_space<vmem>>, vector<256x1xi32>
    %21 = vector.broadcast %20 : vector<256x1xi32> to vector<256x192xi32>
    %22 = arith.cmpi eq, %21, %0 : vector<256x192xi32>
    %23 = arith.ori %19, %22 : vector<256x192xi1>
    %c0_6 = arith.constant 0 : index
    %c6 = arith.constant 6 : index
    %24 = vector.load %arg1[%c0_6, %c6] : memref<256x8xi32, #tpu.memory_space<vmem>>, vector<256x1xi32>
    %25 = vector.broadcast %24 : vector<256x1xi32> to vector<256x192xi32>
    %26 = arith.cmpi eq, %25, %0 : vector<256x192xi32>
    %27 = arith.ori %23, %26 : vector<256x192xi1>
    %c0_7 = arith.constant 0 : index
    %c7 = arith.constant 7 : index
    %28 = vector.load %arg1[%c0_7, %c7] : memref<256x8xi32, #tpu.memory_space<vmem>>, vector<256x1xi32>
    %29 = vector.broadcast %28 : vector<256x1xi32> to vector<256x192xi32>
    %30 = arith.cmpi eq, %29, %0 : vector<256x192xi32>
    %31 = arith.ori %27, %30 : vector<256x192xi1>
    %32 = arith.extui %31 : vector<256x192xi1> to vector<256x192xi32>
    %33 = arith.sitofp %32 : vector<256x192xi32> to vector<256x192xf32>
    %c0_8 = arith.constant 0 : index
    %c0_9 = arith.constant 0 : index
    %34 = vector.load %arg2[%c0_8, %c0_9] : memref<192x128xf32, #tpu.memory_space<vmem>>, vector<192x128xf32>
    %cst = arith.constant dense<0.000000e+00> : vector<256x128xf32>
    %35 = tpu.matmul %33, %34, %cst {dimension_numbers = #tpu.dot_dimension_numbers<[1], [0], [0], [1], [0, 0, 1, 1], [], []>} : vector<256x192xf32>, vector<192x128xf32>, vector<256x128xf32> -> vector<256x128xf32>
    %c0_10 = arith.constant 0 : index
    %c0_11 = arith.constant 0 : index
    %36 = vector.load %arg3[%c0_10, %c0_11] : memref<256x128xf32, #tpu.memory_space<vmem>>, vector<256x128xf32>
    tpu.vector_store %arg3[%c0_10, %c0_11], %35 {strides = array<i32>} : memref<256x128xf32, #tpu.memory_space<vmem>>, vector<256x128xf32>,
    return
  }
  func.func @transform_0(%arg0: i32) -> (i32, i32) {
    %c0_i32 = arith.constant 0 : i32
    %c0_i32_0 = arith.constant 0 : i32
    return %arg0, %c0_i32 : i32, i32
  }
  func.func @transform_1(%arg0: i32) -> (i32, i32) {
    %c0_i32 = arith.constant 0 : i32
    %c0_i32_0 = arith.constant 0 : i32
    %c0_i32_1 = arith.constant 0 : i32
    return %c0_i32, %c0_i32_0 : i32, i32
  }
  func.func @transform_2(%arg0: i32) -> (i32, i32) {
    %c0_i32 = arith.constant 0 : i32
    %c0_i32_0 = arith.constant 0 : i32
    return %arg0, %c0_i32 : i32, i32
  }
}

</mosaic_0001>

<bundles_post_ra>
// kernel: tpu_custom_call.1
= control target key start
LH: loop header
LB: loop body
LE: loop exit
PB: predicated region body
PF: predicated region fallthrough
CT: control target
= control target key end

     0   :  { %7 = vsyncpa [#allocation3], 0  ;;  %s7205_s0 = inlined_call_operand.vmem [shape: s32[512,8], index: 0, kind: input, shape index: {}]   ;;  %s7206_s1 = inlined_call_operand.vmem [shape: f32[192,128], index: 1, kind: input, shape index: {}]   ;;  %s7207_s2 = inlined_call_operand.hbm [shape: f32[512,128], index: 2, kind: output, shape index: {}]  }
   0x1   :  { %9 = vsyncpa [#allocation3 + $0x1], 0  ;;  %s2843_s9 = smov 0   ;;  %s2845_s10 = smov 0  }
   0x2   :  { %s2847_s11 = smov 0   ;;  %s2849_s12 = smov 0  }
   0x3 LB: > { %s2864_s13 = sadd.s32 4294967295, %s2815_s12   ;;  %s2493_s14 = sadd.s32 4294967294, %s2815_s12   ;;  %s2815_s12 = sphi %s2849_s12, %s8692_s12   ;;  %s2811_s11 = sphi %s2847_s11, %s8691_s11   ;;  %s2807_s10 = sphi %s2845_s10, %s8690_s10   ;;  %s2803_s9 = sphi %s2843_s9, %s8689_s9  }
   0x4   : > { %s2868_s15 = sadd.s32 1, %s2815_s12   ;;  %s69_s16 = sadd.s32 1, %s2811_s11 }
   0x5   : > { %s66_s17 = ssub.s32 %s2815_s12, %s2868_s15  ;;  %p79_p0 = scmp.ne.s32.totalorder %s2811_s11, %s2807_s10 }
   0x6   : > { %p67_p1 = scmp.eq.s32.totalorder %s66_s17, 0  ;;  %p80_p2 = scmp.eq.s32.totalorder %s2864_s13, 1 }
   0x7   : > { %p85_p3 = scmp.ne.s32.totalorder %s2807_s10, %s2803_s9  ;;  %p86_p4 = scmp.eq.s32.totalorder %s2493_s14, 1 }
   0x8   : > { %s2879_s18 = scalar_select %p67_p1, %s2811_s11, %s69_s16  }
   0x9   : > { %p2881_p5 = por %p80_p2, %p79_p0  ;;  %p2885_p6 = por %p86_p4, %p85_p3 }
   0xa   : > { %p2496_p7 = scmp.ge.s32.totalorder %s2815_s12, 1  ;;  %p116_p8 = scmp.lt.s32.totalorder %s2815_s12, 3 }
   0xc   : > { %p117_p9 = pnand %p2496_p7, %p116_p8 }
   0xe   : > { %120 = sbr.rel (%p117_p9) target bundleno = 1128 (0x468), region = 28 }
  0x13   : > { %s2498_s21 = sshll.u32 %s2864_s13, 5  ;;  %v2817_v0 = vmov 0   ;;  %v2818_v33 = vmov 1   ;;  %v2819_v58 = vmov 2   ;;  %s2773_s4 = scalar_lea.hbm %s7207_s2, 512 }
  0x14   : > { %2678 = vset.pattern.permute.xlu2 %v2817_v0  ;;  %2677 = vset.pattern.permute.xlu1 %v2817_v0  ;;  %p139_p10 = scmp.lt.s32.totalorder %s2498_s21, 63 }
  0x15   : > { %2676 = vset.pattern.permute.xlu0 %v2817_v0 }
  0x16   : > { %s8694_s21 = smov (!%p139_p10, %s2498_s21), 63 }
  0x17   : > { %s2499_s22 = sshll.u32 %s8694_s21, 3  ;;  %s2601_s21 = sshll.u32 %s2864_s13, 8 }
  0x18   : > { %s2895_s25 = scalar_lea.vmem %s7205_s0, %s2499_s22  ;;  %s2427_s24 = scalar_lea.hbm %s7207_s2, %s2601_s21 }
  0x19   : > { %v2898_v1 = vld [vmem:[%s2895_s25 + $0x20] sm:$0xff]  ;;  %v2901_v2 = vld [vmem:[%s2895_s25 + $0x10] sm:$0xff]  ;;  %v2910_v4 = vld [vmem:[%s2895_s25 + $0x28] sm:$0xff]  ;;  %s2430_s27 = sshll.u32 %s2427_s24, 4  ;;  %s2431_s27 = int_to_ptr.hbm [resolvable:$true] %s2430_s27 }
  0x1a   : > { %v2904_v3 = vld [vmem:[%s2895_s25] sm:$0xff]  ;;  %193 = vperm.xlu2 %2678, %v2898_v1   ;;  %187 = vperm.xlu1 %2677, %v2901_v2   ;;  %v2913_v5 = vld [vmem:[%s2895_s25 + $0x18] sm:$0xff]  ;;  %v2916_v6 = vld [vmem:[%s2895_s25 + $0x8] sm:$0xff]  ;;  %s2767_s28 = sshra.s32 %s2431_s27, 4  ;;  %s2768_s28 = int_to_ptr.hbm [resolvable:$true] %s2767_s28 }
  0x1b   : > { %181 = vperm.xlu0 %2676, %v2904_v3   ;;  %v2922_v7 = vld [vmem:[%s2895_s25 + $0x40] sm:$0xff]  ;;  %v2925_v8 = vld [vmem:[%s2895_s25 + $0x38] sm:$0xff]  ;;  %v2928_v9 = vld [vmem:[%s2895_s25 + $0x30] sm:$0xff]  ;;  %s2769_s29 = scalar_lea.hbm %s2768_s28, 256  ;;  %p2774_p0 = scmp.lt.s32.totalorder %s2768_s28, %s7207_s2 }
  0x1c   : > { %v2934_v10 = vld [vmem:[%s2895_s25 + $0x58] sm:$0xff]  ;;  %v2937_v11 = vld [vmem:[%s2895_s25 + $0x50] sm:$0xff]  ;;  %v2940_v12 = vld [vmem:[%s2895_s25 + $0x48] sm:$0xff]  ;;  %p2770_p11 = scmp.ne.s32.totalorder %s2768_s28, %s2769_s29  ;;  %p2775_p1 = scmp.lt.s32.totalorder %s2773_s4, %s2769_s29 }
  0x1d   : > { %v2946_v13 = vld [vmem:[%s2895_s25 + $0x70] sm:$0xff]  ;;  %v2949_v14 = vld [vmem:[%s2895_s25 + $0x68] sm:$0xff]  ;;  %v2952_v15 = vld [vmem:[%s2895_s25 + $0x60] sm:$0xff] }
  0x1e   : > { %v2958_v16 = vld [vmem:[%s2895_s25 + $0x88] sm:$0xff]  ;;  %v2961_v17 = vld [vmem:[%s2895_s25 + $0x80] sm:$0xff]  ;;  %v2964_v18 = vld [vmem:[%s2895_s25 + $0x78] sm:$0xff]  ;;  %p2771_p12 = pnand %p2770_p11, %p2881_p5  ;;  %p2776_p2 = por %p2775_p1, %p2774_p0 }
  0x1f   : > { %7348 = vst [vmem:[#allocation5_spill] sm:$0xff] %v2958_v16  ;;  %v2970_v19 = vld [vmem:[%s2895_s25 + $0xa0] sm:$0xff]  ;;  %v2973_v20 = vld [vmem:[%s2895_s25 + $0x98] sm:$0xff]  ;;  %v2976_v21 = vld [vmem:[%s2895_s25 + $0x90] sm:$0xff] }
  0x20   : > { %7349 = vst [vmem:[#allocation6_spill] sm:$0xff] %v2961_v17  ;;  %v2982_v22 = vld [vmem:[%s2895_s25 + $0xb8] sm:$0xff]  ;;  %v2985_v23 = vld [vmem:[%s2895_s25 + $0xb0] sm:$0xff]  ;;  %v2988_v24 = vld [vmem:[%s2895_s25 + $0xa8] sm:$0xff]  ;;  %p2772_p13 = pneg %p2771_p12 }
  0x21   : > { %v2994_v25 = vld [vmem:[%s2895_s25 + $0xd0] sm:$0xff]  ;;  %v2997_v26 = vld [vmem:[%s2895_s25 + $0xc8] sm:$0xff]  ;;  %v3000_v27 = vld [vmem:[%s2895_s25 + $0xc0] sm:$0xff] }
  0x22   : > { %196 = vperm.xlu2 %2678, %v2910_v4   ;;  %190 = vperm.xlu1 %2677, %v2913_v5   ;;  %v3006_v28 = vld [vmem:[%s2895_s25 + $0xe8] sm:$0xff]  ;;  %v3009_v29 = vld [vmem:[%s2895_s25 + $0xe0] sm:$0xff]  ;;  %v3012_v30 = vld [vmem:[%s2895_s25 + $0xd8] sm:$0xff]  ;;  %p2777_p3 = pnand %p2776_p2, %p2772_p13 }
  0x23   : > { %184 = vperm.xlu0 %2676, %v2916_v6   ;;  %v3018_v31 = vld [vmem:[%s2895_s25 + $0xf8] sm:$0xff]  ;;  %v3021_v32 = vld [vmem:[%s2895_s25 + $0xf0] sm:$0xff] }
  0x2a   : > { %205 = vperm.xlu2 %2678, %v2922_v7   ;;  %202 = vperm.xlu1 %2677, %v2925_v8  }
  0x2b   : > { %199 = vperm.xlu0 %2676, %v2928_v9  }
  0x32   : > { %214 = vperm.xlu2 %2678, %v2934_v10   ;;  %211 = vperm.xlu1 %2677, %v2937_v11  }
  0x33   : > { %208 = vperm.xlu0 %2676, %v2940_v12  }
  0x3a   : > { %223 = vperm.xlu2 %2678, %v2946_v13   ;;  %220 = vperm.xlu1 %2677, %v2949_v14  }
  0x3b   : > { %217 = vperm.xlu0 %2676, %v2952_v15  }
  0x42   : > { %232 = vperm.xlu2 %2678, %v2958_v16   ;;  %229 = vperm.xlu1 %2677, %v2961_v17  }
  0x43   : > { %226 = vperm.xlu0 %2676, %v2964_v18  }
  0x4a   : > { %241 = vperm.xlu2 %2678, %v2970_v19   ;;  %238 = vperm.xlu1 %2677, %v2973_v20  }
  0x4b   : > { %235 = vperm.xlu0 %2676, %v2976_v21  }
  0x52   : > { %250 = vperm.xlu2 %2678, %v2982_v22   ;;  %247 = vperm.xlu1 %2677, %v2985_v23  }
  0x53   : > { %244 = vperm.xlu0 %2676, %v2988_v24  }
  0x5a   : > { %259 = vperm.xlu2 %2678, %v2994_v25   ;;  %256 = vperm.xlu1 %2677, %v2997_v26  }
  0x5b   : > { %253 = vperm.xlu0 %2676, %v3000_v27  }
  0x62   : > { %268 = vperm.xlu2 %2678, %v3006_v28   ;;  %265 = vperm.xlu1 %2677, %v3009_v29  }
  0x63   : > { %262 = vperm.xlu0 %2676, %v3012_v30  }
  0x6a   : > { %2679 = vset.pattern.permute.xlu2 %v2818_v33  ;;  %274 = vperm.xlu1 %2677, %v3018_v31  }
  0x6b   : > { %271 = vperm.xlu0 %2676, %v3021_v32   ;;  %341 = vperm.xlu2 %2679, %v2904_v3  }
  0x72   : > { %2681 = vset.pattern.permute.xlu1 %v2818_v33 }
  0x73   : > { %2680 = vset.pattern.permute.xlu0 %v2818_v33  ;;  %347 = vperm.xlu1 %2681, %v2901_v2  }
  0x74   : > { %350 = vperm.xlu2 %2679, %v2913_v5   ;;  %344 = vperm.xlu0 %2680, %v2916_v6   ;;  %v3029_v34 = vpop.permute.xlu2 %193 }
  0x75   : > { %7350 = vst [vmem:[#allocation7_spill] sm:$0xff] %v3029_v34 }
  0x7b   : > { %353 = vperm.xlu1 %2681, %v2898_v1  }
  0x7c   : > { %356 = vperm.xlu2 %2679, %v2910_v4   ;;  %359 = vperm.xlu0 %2680, %v2928_v9   ;;  %v3034_v35 = vpop.permute.xlu2 %196 }
  0x7d   : > { %7351 = vst [vmem:[#allocation8_spill] sm:$0xff] %v3034_v35 }
  0x83   : > { %362 = vperm.xlu1 %2681, %v2925_v8  }
  0x84   : > { %365 = vperm.xlu2 %2679, %v2922_v7   ;;  %368 = vperm.xlu0 %2680, %v2940_v12   ;;  %v3039_v36 = vpop.permute.xlu2 %205 }
  0x85   : > { %7352 = vst [vmem:[#allocation9_spill] sm:$0xff] %v3039_v36 }
  0x8b   : > { %371 = vperm.xlu1 %2681, %v2937_v11  }
  0x8c   : > { %374 = vperm.xlu2 %2679, %v2934_v10   ;;  %377 = vperm.xlu0 %2680, %v2952_v15   ;;  %v3044_v37 = vpop.permute.xlu2 %214  ;;  %v3046_v38 = vpop.permute.xlu1 %187 }
  0x8d   : > { %7353 = vst [vmem:[#allocation10_spill] sm:$0xff] %v3044_v37  ;;  %v3048_v39 = vpop.permute.xlu0 %181 }
  0x8e   : > { %7354 = vst [vmem:[#allocation11_spill] sm:$0xff] %v3046_v38 }
  0x8f   : > { %7355 = vst [vmem:[#allocation12_spill] sm:$0xff] %v3048_v39 }
  0x93   : > { %380 = vperm.xlu1 %2681, %v2949_v14  }
  0x94   : > { %383 = vperm.xlu2 %2679, %v2946_v13   ;;  %386 = vperm.xlu0 %2680, %v2964_v18   ;;  %v3053_v40 = vpop.permute.xlu2 %223  ;;  %v3055_v41 = vpop.permute.xlu1 %190 }
  0x95   : > { %7356 = vst [vmem:[#allocation13_spill] sm:$0xff] %v3053_v40  ;;  %v3057_v42 = vpop.permute.xlu0 %184 }
  0x96   : > { %7357 = vst [vmem:[#allocation14_spill] sm:$0xff] %v3055_v41 }
  0x9b   : > { %389 = vperm.xlu1 %2681, %v2961_v17  }
  0x9c   : > { %392 = vperm.xlu2 %2679, %v2958_v16   ;;  %395 = vperm.xlu0 %2680, %v2976_v21   ;;  %v3062_v43 = vpop.permute.xlu2 %232  ;;  %v3064_v44 = vpop.permute.xlu1 %202 }
  0x9d   : > { %7358 = vst [vmem:[#allocation15_spill] sm:$0xff] %v3062_v43  ;;  %v3066_v45 = vpop.permute.xlu0 %199 }
  0x9e   : > { %7359 = vst [vmem:[#allocation16_spill] sm:$0xff] %v3064_v44 }
  0xa3   : > { %398 = vperm.xlu1 %2681, %v2973_v20  }
  0xa4   : > { %401 = vperm.xlu2 %2679, %v2970_v19   ;;  %404 = vperm.xlu0 %2680, %v2988_v24   ;;  %v3071_v46 = vpop.permute.xlu2 %241  ;;  %v3073_v47 = vpop.permute.xlu1 %211 }
  0xa5   : > { %7360 = vst [vmem:[#allocation17_spill] sm:$0xff] %v3073_v47  ;;  %v3075_v48 = vpop.permute.xlu0 %208 }
  0xab   : > { %407 = vperm.xlu1 %2681, %v2985_v23  }
  0xac   : > { %410 = vperm.xlu2 %2679, %v2982_v22   ;;  %413 = vperm.xlu0 %2680, %v3000_v27   ;;  %v3080_v49 = vpop.permute.xlu2 %250  ;;  %v3082_v50 = vpop.permute.xlu1 %220 }
  0xad   : > { %7361 = vst [vmem:[#allocation18_spill] sm:$0xff] %v3080_v49  ;;  %v3084_v51 = vpop.permute.xlu0 %217 }
  0xae   : > { %7362 = vst [vmem:[#allocation19_spill] sm:$0xff] %v3082_v50 }
  0xb3   : > { %416 = vperm.xlu1 %2681, %v2997_v26  }
  0xb4   : > { %419 = vperm.xlu2 %2679, %v2994_v25   ;;  %422 = vperm.xlu0 %2680, %v3012_v30   ;;  %v3089_v52 = vpop.permute.xlu2 %259  ;;  %v3091_v53 = vpop.permute.xlu1 %229 }
  0xb5   : > { %7363 = vst [vmem:[#allocation20_spill] sm:$0xff] %v3089_v52  ;;  %v3093_v54 = vpop.permute.xlu0 %226 }
  0xb6   : > { %7364 = vst [vmem:[#allocation21_spill] sm:$0xff] %v3091_v53 }
  0xbb   : > { %425 = vperm.xlu1 %2681, %v3009_v29  }
  0xbc   : > { %428 = vperm.xlu2 %2679, %v3006_v28   ;;  %431 = vperm.xlu0 %2680, %v3021_v32   ;;  %v3098_v55 = vpop.permute.xlu2 %268  ;;  %v3100_v56 = vpop.permute.xlu1 %238 }
  0xbd   : > { %7365 = vst [vmem:[#allocation22_spill] sm:$0xff] %v3098_v55  ;;  %v3102_v57 = vpop.permute.xlu0 %235 }
  0xbe   : > { %7366 = vst [vmem:[#allocation23_spill] sm:$0xff] %v3100_v56 }
  0xc3   : > { %434 = vperm.xlu1 %2681, %v3018_v31  }
  0xc4   : > { %2682 = vset.pattern.permute.xlu2 %v2819_v58  ;;  %2683 = vset.pattern.permute.xlu0 %v2819_v58  ;;  %v3105_v59 = vpop.permute.xlu1 %247 }
  0xc5   : > { %7367 = vst [vmem:[#allocation24_spill] sm:$0xff] %v3105_v59  ;;  %565 = vperm.xlu2 %2682, %v2904_v3   ;;  %568 = vperm.xlu0 %2683, %v2916_v6   ;;  %v3109_v60 = vpop.permute.xlu0 %244  ;;  %v3111_v61 = vpop.permute.xlu2 %341 }
  0xc6   : > { %7368 = vst [vmem:[#allocation25_spill] sm:$0xff] %v3111_v61 }
  0xcb   : > { %2684 = vset.pattern.permute.xlu1 %v2819_v58 }
  0xcc   : > { %571 = vperm.xlu1 %2684, %v2901_v2   ;;  %v3114_v62 = vpop.permute.xlu1 %256 }
  0xcd   : > { %7369 = vst [vmem:[#allocation26_spill] sm:$0xff] %v3114_v62  ;;  %574 = vperm.xlu2 %2682, %v2913_v5   ;;  %583 = vperm.xlu0 %2683, %v2928_v9   ;;  %v3118_v63 = vpop.permute.xlu0 %253 }
  0xce   : > { %7370 = vst [vmem:[#allocation27_spill] sm:$0xff] %v3118_v63  ;;  %v3120_v0 = vpop.permute.xlu2 %350 }
  0xcf   : > { %7371 = vst [vmem:[#allocation28_spill] sm:$0xff] %v3120_v0 }
  0xd4   : > { %577 = vperm.xlu1 %2684, %v2898_v1   ;;  %v3123_v33 = vpop.permute.xlu1 %265 }
  0xd5   : > { %7372 = vst [vmem:[#allocation29_spill] sm:$0xff] %v3123_v33  ;;  %580 = vperm.xlu2 %2682, %v2910_v4   ;;  %592 = vperm.xlu0 %2683, %v2940_v12   ;;  %v3127_v58 = vpop.permute.xlu0 %262 }
  0xd6   : > { %7373 = vst [vmem:[#allocation30_spill] sm:$0xff] %v3127_v58  ;;  %v3129_v53 = vpop.permute.xlu2 %356 }
  0xd7   : > { %7374 = vst [vmem:[#allocation31_spill] sm:$0xff] %v3129_v53 }
  0xdc   : > { %586 = vperm.xlu1 %2684, %v2925_v8   ;;  %v3132_v50 = vpop.permute.xlu1 %274 }
  0xdd   : > { %7375 = vst [vmem:[#allocation32_spill] sm:$0xff] %v3132_v50  ;;  %589 = vperm.xlu2 %2682, %v2922_v7   ;;  %601 = vperm.xlu0 %2683, %v2952_v15   ;;  %v3136_v47 = vpop.permute.xlu0 %271 }
  0xde   : > { %7376 = vst [vmem:[#allocation33_spill] sm:$0xff] %v3136_v47  ;;  %v3138_v43 = vpop.permute.xlu2 %365 }
  0xdf   : > { %7377 = vst [vmem:[#allocation34_spill] sm:$0xff] %v3138_v43 }
  0xe4   : > { %595 = vperm.xlu1 %2684, %v2937_v11  }
  0xe5   : > { %598 = vperm.xlu2 %2682, %v2934_v10   ;;  %610 = vperm.xlu0 %2683, %v2964_v18   ;;  %v3143_v44 = vpop.permute.xlu1 %347 }
  0xe6   : > { %7378 = vst [vmem:[#allocation35_spill] sm:$0xff] %v3143_v44  ;;  %v3145_v40 = vpop.permute.xlu2 %374  ;;  %v3147_v37 = vpop.permute.xlu0 %344 }
  0xe7   : > { %7379 = vst [vmem:[#allocation36_spill] sm:$0xff] %v3145_v40 }
  0xec   : > { %604 = vperm.xlu1 %2684, %v2949_v14  }
  0xed   : > { %607 = vperm.xlu2 %2682, %v2946_v13   ;;  %619 = vperm.xlu0 %2683, %v2976_v21   ;;  %v3152_v34 = vpop.permute.xlu1 %353 }
  0xee   : > { %7380 = vst [vmem:[#allocation37_spill] sm:$0xff] %v3152_v34  ;;  %v3154_v50 = vpop.permute.xlu2 %383  ;;  %v3156_v38 = vpop.permute.xlu0 %359 }
  0xef   : > { %7381 = vst [vmem:[#allocation38_spill] sm:$0xff] %v3154_v50 }
  0xf4   : > { %613 = vperm.xlu1 %2684, %v2961_v17  }
  0xf5   : > { %616 = vperm.xlu2 %2682, %v2958_v16   ;;  %628 = vperm.xlu0 %2683, %v2988_v24   ;;  %v3161_v40 = vpop.permute.xlu1 %362 }
  0xf6   : > { %7382 = vst [vmem:[#allocation39_spill] sm:$0xff] %v3161_v40  ;;  %v3163_v44 = vpop.permute.xlu2 %392  ;;  %v3165_v43 = vpop.permute.xlu0 %368 }
  0xf7   : > { %7383 = vst [vmem:[#allocation40_spill] sm:$0xff] %v3163_v44 }
  0xfc   : > { %622 = vperm.xlu1 %2684, %v2973_v20  }
  0xfd   : > { %625 = vperm.xlu2 %2682, %v2970_v19   ;;  %637 = vperm.xlu0 %2683, %v3000_v27   ;;  %v3170_v50 = vpop.permute.xlu1 %371 }
  0xfe   : > { %7384 = vst [vmem:[#allocation41_spill] sm:$0xff] %v3170_v50  ;;  %v3172_v34 = vpop.permute.xlu2 %401  ;;  %v3174_v36 = vpop.permute.xlu0 %377 }
 0x104   : > { %631 = vperm.xlu1 %2684, %v2985_v23  }
 0x105   : > { %634 = vperm.xlu2 %2682, %v2982_v22   ;;  %646 = vperm.xlu0 %2683, %v3012_v30   ;;  %v3179_v44 = vpop.permute.xlu1 %380 }
 0x106   : > { %7385 = vst [vmem:[#allocation42_spill] sm:$0xff] %v3179_v44  ;;  %v3181_v40 = vpop.permute.xlu2 %410  ;;  %v3183_v33 = vpop.permute.xlu0 %386  ;;  %v2820_v44 = vmov 3  }
 0x10c   : > { %640 = vperm.xlu1 %2684, %v2997_v26  }
 0x10d   : > { %643 = vperm.xlu2 %2682, %v2994_v25   ;;  %655 = vperm.xlu0 %2683, %v3021_v32   ;;  %v3188_v50 = vpop.permute.xlu1 %389 }
 0x10e   : > { %7386 = vst [vmem:[#allocation43_spill] sm:$0xff] %v3188_v50  ;;  %v3190_v62 = vpop.permute.xlu2 %419  ;;  %v3192_v53 = vpop.permute.xlu0 %395 }
 0x10f   : > { %7387 = vst [vmem:[#allocation44_spill] sm:$0xff] %v3190_v62 }
 0x114   : > { %649 = vperm.xlu1 %2684, %v3009_v29  }
 0x115   : > { %652 = vperm.xlu2 %2682, %v3006_v28   ;;  %2686 = vset.pattern.permute.xlu0 %v2820_v44  ;;  %v3196_v35 = vpop.permute.xlu1 %398 }
 0x116   : > { %7388 = vst [vmem:[#allocation45_spill] sm:$0xff] %v3196_v35  ;;  %v3198_v47 = vpop.permute.xlu2 %428  ;;  %792 = vperm.xlu0 %2686, %v2916_v6   ;;  %v3201_v0 = vpop.permute.xlu0 %404 }
 0x117   : > { %7389 = vst [vmem:[#allocation46_spill] sm:$0xff] %v3198_v47 }
 0x11c   : > { %658 = vperm.xlu1 %2684, %v3018_v31  }
 0x11d   : > { %2685 = vset.pattern.permute.xlu2 %v2820_v44  ;;  %v3204_v50 = vpop.permute.xlu1 %407 }
 0x11e   : > { %7390 = vst [vmem:[#allocation47_spill] sm:$0xff] %v3204_v50  ;;  %789 = vperm.xlu2 %2685, %v2904_v3   ;;  %807 = vperm.xlu0 %2686, %v2928_v9   ;;  %v3208_v59 = vpop.permute.xlu0 %413 }
 0x11f   : > { %7391 = vst [vmem:[#allocation48_spill] sm:$0xff] %v3208_v59  ;;  %v3210_v41 = vpop.permute.xlu2 %565 }
 0x120   : > { %7392 = vst [vmem:[#allocation49_spill] sm:$0xff] %v3210_v41 }
 0x124   : > { %2687 = vset.pattern.permute.xlu1 %v2820_v44 }
 0x125   : > { %795 = vperm.xlu1 %2687, %v2901_v2   ;;  %v3213_v55 = vpop.permute.xlu1 %416 }
 0x126   : > { %7393 = vst [vmem:[#allocation50_spill] sm:$0xff] %v3213_v55  ;;  %798 = vperm.xlu2 %2685, %v2913_v5   ;;  %816 = vperm.xlu0 %2686, %v2940_v12   ;;  %v3217_v47 = vpop.permute.xlu0 %422 }
 0x127   : > { %7394 = vst [vmem:[#allocation51_spill] sm:$0xff] %v3217_v47  ;;  %v3219_v50 = vpop.permute.xlu2 %574 }
 0x128   : > { %7395 = vst [vmem:[#allocation52_spill] sm:$0xff] %v3219_v50 }
 0x12d   : > { %801 = vperm.xlu1 %2687, %v2898_v1   ;;  %v3222_v35 = vpop.permute.xlu1 %425 }
 0x12e   : > { %7396 = vst [vmem:[#allocation53_spill] sm:$0xff] %v3222_v35  ;;  %804 = vperm.xlu2 %2685, %v2910_v4   ;;  %825 = vperm.xlu0 %2686, %v2952_v15   ;;  %v3226_v44 = vpop.permute.xlu0 %431 }
 0x12f   : > { %7397 = vst [vmem:[#allocation54_spill] sm:$0xff] %v3226_v44  ;;  %v3228_v41 = vpop.permute.xlu2 %580 }
 0x130   : > { %7398 = vst [vmem:[#allocation55_spill] sm:$0xff] %v3228_v41 }
 0x135   : > { %810 = vperm.xlu1 %2687, %v2925_v8   ;;  %v3231_v55 = vpop.permute.xlu1 %434 }
 0x136   : > { %7399 = vst [vmem:[#allocation56_spill] sm:$0xff] %v3231_v55  ;;  %813 = vperm.xlu2 %2685, %v2922_v7   ;;  %834 = vperm.xlu0 %2686, %v2964_v18  }
 0x137   : > { %v3235_v50 = vpop.permute.xlu2 %589  ;;  %v3237_v47 = vpop.permute.xlu0 %568 }
 0x138   : > { %7400 = vst [vmem:[#allocation57_spill] sm:$0xff] %v3235_v50 }
 0x13d   : > { %819 = vperm.xlu1 %2687, %v2937_v11  }
 0x13e   : > { %822 = vperm.xlu2 %2685, %v2934_v10   ;;  %843 = vperm.xlu0 %2686, %v2976_v21   ;;  %v3242_v35 = vpop.permute.xlu1 %571 }
 0x13f   : > { %7401 = vst [vmem:[#allocation58_spill] sm:$0xff] %v3242_v35  ;;  %v3244_v41 = vpop.permute.xlu2 %598  ;;  %v3246_v44 = vpop.permute.xlu0 %583 }
 0x140   : > { %7402 = vst [vmem:[#allocation59_spill] sm:$0xff] %v3244_v41 }
 0x145   : > { %828 = vperm.xlu1 %2687, %v2949_v14  }
 0x146   : > { %831 = vperm.xlu2 %2685, %v2946_v13   ;;  %852 = vperm.xlu0 %2686, %v2988_v24   ;;  %v3251_v50 = vpop.permute.xlu1 %577 }
 0x147   : > { %7403 = vst [vmem:[#allocation60_spill] sm:$0xff] %v3251_v50  ;;  %v3253_v55 = vpop.permute.xlu2 %607  ;;  %v3255_v58 = vpop.permute.xlu0 %592 }
 0x148   : > { %7404 = vst [vmem:[#allocation61_spill] sm:$0xff] %v3253_v55 }
 0x14d   : > { %837 = vperm.xlu1 %2687, %v2961_v17  }
 0x14e   : > { %840 = vperm.xlu2 %2685, %v2958_v16   ;;  %861 = vperm.xlu0 %2686, %v3000_v27   ;;  %v3260_v41 = vpop.permute.xlu1 %586 }
 0x14f   : > { %7405 = vst [vmem:[#allocation62_spill] sm:$0xff] %v3260_v41  ;;  %v3262_v35 = vpop.permute.xlu2 %616  ;;  %v3264_v61 = vpop.permute.xlu0 %601 }
 0x150   : > { %7406 = vst [vmem:[#allocation63_spill] sm:$0xff] %v3262_v35 }
 0x155   : > { %846 = vperm.xlu1 %2687, %v2973_v20  }
 0x156   : > { %849 = vperm.xlu2 %2685, %v2970_v19   ;;  %870 = vperm.xlu0 %2686, %v3012_v30   ;;  %v3269_v55 = vpop.permute.xlu1 %595 }
 0x157   : > { %7407 = vst [vmem:[#allocation64_spill] sm:$0xff] %v3269_v55  ;;  %v3271_v50 = vpop.permute.xlu2 %625  ;;  %v3273_v56 = vpop.permute.xlu0 %610  ;;  %v2821_v55 = vmov 4  }
 0x15d   : > { %855 = vperm.xlu1 %2687, %v2985_v23  }
 0x15e   : > { %858 = vperm.xlu2 %2685, %v2982_v22   ;;  %879 = vperm.xlu0 %2686, %v3021_v32   ;;  %v3278_v35 = vpop.permute.xlu1 %604 }
 0x15f   : > { %7408 = vst [vmem:[#allocation65_spill] sm:$0xff] %v3278_v35  ;;  %v3280_v41 = vpop.permute.xlu2 %634  ;;  %v3282_v39 = vpop.permute.xlu0 %619 }
 0x160   : > { %7409 = vst [vmem:[#allocation66_spill] sm:$0xff] %v3280_v41 }
 0x161   : > { %7410 = vst [vmem:[#allocation67_spill] sm:$0xff] %v3282_v39 }
 0x165   : > { %864 = vperm.xlu1 %2687, %v2997_v26  }
 0x166   : > { %867 = vperm.xlu2 %2685, %v2994_v25   ;;  %2689 = vset.pattern.permute.xlu0 %v2821_v55  ;;  %v3286_v52 = vpop.permute.xlu1 %613 }
 0x167   : > { %7411 = vst [vmem:[#allocation68_spill] sm:$0xff] %v3286_v52  ;;  %v3288_v63 = vpop.permute.xlu2 %643  ;;  %1016 = vperm.xlu0 %2689, %v2916_v6   ;;  %v3291_v62 = vpop.permute.xlu0 %628 }
 0x168   : > { %7412 = vst [vmem:[#allocation69_spill] sm:$0xff] %v3288_v63 }
 0x169   : > { %7413 = vst [vmem:[#allocation70_spill] sm:$0xff] %v3291_v62 }
 0x16d   : > { %873 = vperm.xlu1 %2687, %v3009_v29  }
 0x16e   : > { %876 = vperm.xlu2 %2685, %v3006_v28   ;;  %v3295_v35 = vpop.permute.xlu1 %622 }
 0x16f   : > { %7414 = vst [vmem:[#allocation71_spill] sm:$0xff] %v3295_v35  ;;  %v3297_v41 = vpop.permute.xlu2 %652  ;;  %1031 = vperm.xlu0 %2689, %v2928_v9   ;;  %v3300_v39 = vpop.permute.xlu0 %637 }
 0x170   : > { %7415 = vst [vmem:[#allocation72_spill] sm:$0xff] %v3297_v41 }
 0x171   : > { %7416 = vst [vmem:[#allocation73_spill] sm:$0xff] %v3300_v39 }
 0x175   : > { %882 = vperm.xlu1 %2687, %v3018_v31  }
 0x176   : > { %2688 = vset.pattern.permute.xlu2 %v2821_v55  ;;  %v3303_v52 = vpop.permute.xlu1 %631 }
 0x177   : > { %7417 = vst [vmem:[#allocation74_spill] sm:$0xff] %v3303_v52  ;;  %1013 = vperm.xlu2 %2688, %v2904_v3   ;;  %1040 = vperm.xlu0 %2689, %v2940_v12   ;;  %v3307_v63 = vpop.permute.xlu0 %646 }
 0x178   : > { %7418 = vst [vmem:[#allocation75_spill] sm:$0xff] %v3307_v63  ;;  %v3309_v62 = vpop.permute.xlu2 %789 }
 0x179   : > { %7419 = vst [vmem:[#allocation76_spill] sm:$0xff] %v3309_v62 }
 0x17d   : > { %2690 = vset.pattern.permute.xlu1 %v2821_v55 }
 0x17e   : > { %1019 = vperm.xlu1 %2690, %v2901_v2   ;;  %v3312_v41 = vpop.permute.xlu1 %640 }
 0x17f   : > { %7420 = vst [vmem:[#allocation77_spill] sm:$0xff] %v3312_v41  ;;  %1022 = vperm.xlu2 %2688, %v2913_v5   ;;  %1049 = vperm.xlu0 %2689, %v2952_v15   ;;  %v3316_v35 = vpop.permute.xlu0 %655 }
 0x180   : > { %7421 = vst [vmem:[#allocation78_spill] sm:$0xff] %v3316_v35  ;;  %v3318_v52 = vpop.permute.xlu2 %798 }
 0x181   : > { %7422 = vst [vmem:[#allocation79_spill] sm:$0xff] %v3318_v52 }
 0x186   : > { %1025 = vperm.xlu1 %2690, %v2898_v1   ;;  %v3321_v39 = vpop.permute.xlu1 %649 }
 0x187   : > { %7423 = vst [vmem:[#allocation80_spill] sm:$0xff] %v3321_v39  ;;  %1028 = vperm.xlu2 %2688, %v2910_v4   ;;  %1058 = vperm.xlu0 %2689, %v2964_v18  }
 0x188   : > { %v3325_v55 = vpop.permute.xlu2 %804  ;;  %v3327_v62 = vpop.permute.xlu0 %792 }
 0x189   : > { %7424 = vst [vmem:[#allocation81_spill] sm:$0xff] %v3325_v55 }
 0x18e   : > { %1034 = vperm.xlu1 %2690, %v2925_v8   ;;  %v3330_v41 = vpop.permute.xlu1 %658 }
 0x18f   : > { %7425 = vst [vmem:[#allocation82_spill] sm:$0xff] %v3330_v41  ;;  %1037 = vperm.xlu2 %2688, %v2922_v7   ;;  %1067 = vperm.xlu0 %2689, %v2976_v21  }
 0x190   : > { %v3334_v52 = vpop.permute.xlu2 %813  ;;  %v3336_v35 = vpop.permute.xlu0 %807 }
 0x191   : > { %7426 = vst [vmem:[#allocation83_spill] sm:$0xff] %v3334_v52 }
 0x196   : > { %1043 = vperm.xlu1 %2690, %v2937_v11  }
 0x197   : > { %1046 = vperm.xlu2 %2688, %v2934_v10   ;;  %1076 = vperm.xlu0 %2689, %v2988_v24   ;;  %v3341_v55 = vpop.permute.xlu1 %795 }
 0x198   : > { %7427 = vst [vmem:[#allocation84_spill] sm:$0xff] %v3341_v55  ;;  %v3343_v39 = vpop.permute.xlu2 %822  ;;  %v3345_v63 = vpop.permute.xlu0 %816 }
 0x199   : > { %7428 = vst [vmem:[#allocation85_spill] sm:$0xff] %v3343_v39 }
 0x19e   : > { %1052 = vperm.xlu1 %2690, %v2949_v14  }
 0x19f   : > { %1055 = vperm.xlu2 %2688, %v2946_v13   ;;  %1085 = vperm.xlu0 %2689, %v3000_v27   ;;  %v3350_v52 = vpop.permute.xlu1 %801 }
 0x1a0   : > { %7429 = vst [vmem:[#allocation86_spill] sm:$0xff] %v3350_v52  ;;  %v3352_v41 = vpop.permute.xlu2 %831  ;;  %v3354_v59 = vpop.permute.xlu0 %825 }
 0x1a1   : > { %7430 = vst [vmem:[#allocation87_spill] sm:$0xff] %v3352_v41 }
 0x1a6   : > { %1061 = vperm.xlu1 %2690, %v2961_v17  }
 0x1a7   : > { %1064 = vperm.xlu2 %2688, %v2958_v16   ;;  %1094 = vperm.xlu0 %2689, %v3012_v30   ;;  %v3359_v39 = vpop.permute.xlu1 %810 }
 0x1a8   : > { %7431 = vst [vmem:[#allocation88_spill] sm:$0xff] %v3359_v39  ;;  %v3361_v55 = vpop.permute.xlu2 %840  ;;  %v3363_v49 = vpop.permute.xlu0 %834  ;;  %v2822_v39 = vmov 5  }
 0x1a9   : > { %7432 = vst [vmem:[#allocation89_spill] sm:$0xff] %v3361_v55 }
 0x1ae   : > { %1070 = vperm.xlu1 %2690, %v2973_v20  }
 0x1af   : > { %1073 = vperm.xlu2 %2688, %v2970_v19   ;;  %1103 = vperm.xlu0 %2689, %v3021_v32   ;;  %v3368_v41 = vpop.permute.xlu1 %819 }
 0x1b0   : > { %7433 = vst [vmem:[#allocation90_spill] sm:$0xff] %v3368_v41  ;;  %v3370_v52 = vpop.permute.xlu2 %849  ;;  %v3372_v17 = vpop.permute.xlu0 %843 }
 0x1b6   : > { %1079 = vperm.xlu1 %2690, %v2985_v23  }
 0x1b7   : > { %1082 = vperm.xlu2 %2688, %v2982_v22   ;;  %2692 = vset.pattern.permute.xlu0 %v2822_v39  ;;  %v3376_v55 = vpop.permute.xlu1 %828 }
 0x1b8   : > { %7434 = vst [vmem:[#allocation91_spill] sm:$0xff] %v3376_v55  ;;  %v3378_v16 = vpop.permute.xlu2 %858  ;;  %1240 = vperm.xlu0 %2692, %v2916_v6   ;;  %v3381_v19 = vpop.permute.xlu0 %852  ;;  %v3942_v55 = vld [vmem:[%s2895_s25 + $0xa0] sm:$0xff] }
 0x1be   : > { %1088 = vperm.xlu1 %2690, %v2997_v26  }
 0x1bf   : > { %1091 = vperm.xlu2 %2688, %v2994_v25   ;;  %v3385_v20 = vpop.permute.xlu1 %837  ;;  %v145_v25 = vlaneseq }
 0x1c0   : > { %7435 = vst [vmem:[#allocation92_spill] sm:$0xff] %v3385_v20  ;;  %v3387_v41 = vpop.permute.xlu2 %867  ;;  %1255 = vperm.xlu0 %2692, %v2928_v9   ;;  %v3390_v22 = vpop.permute.xlu0 %861 }
 0x1c1   : > { %v3402_v20 = vand.u32 127, %v145_v25  ;;  %v7590_v25 = vmov 0 }
 0x1c3   : > { %vm438_vm0 = vcmp.eq.s32.totalorder %v3147_v37, %v3402_v20  ;;  %vm278_vm2 = vcmp.eq.s32.totalorder %v3057_v42, %v3402_v20  ;;  %vm662_vm3 = vcmp.eq.s32.totalorder %v3237_v47, %v3402_v20  ;;  %vm886_vm8 = vcmp.eq.s32.totalorder %v3327_v62, %v3402_v20 }
 0x1c4   : > { %vm502_vm5 = vmor %vm278_vm2, %vm438_vm0  ;;  %vm448_vm15 = vcmp.eq.s32.totalorder %v3156_v38, %v3402_v20 }
 0x1c5   : > { %vm726_vm9 = vmor %vm502_vm5, %vm662_vm3  ;;  %vm288_vm3 = vcmp.eq.s32.totalorder %v3066_v45, %v3402_v20 }
 0x1c6   : > { %1097 = vperm.xlu1 %2690, %v3009_v29   ;;  %vm950_vm13 = vmor %vm726_vm9, %vm886_vm8 }
 0x1c7   : > { %1100 = vperm.xlu2 %2688, %v3006_v28   ;;  %v3394_v23 = vpop.permute.xlu1 %846 }
 0x1c8   : > { %v3396_v6 = vpop.permute.xlu2 %876  ;;  %1264 = vperm.xlu0 %2692, %v2940_v12   ;;  %v3399_v26 = vpop.permute.xlu0 %870  ;;  %v3413_v12 = vadd.s32 128, %v3402_v20 }
 0x1ca   : > { %vm439_vm1 = vcmp.eq.s32.totalorder %v3147_v37, %v3413_v12  ;;  %vm279_vm4 = vcmp.eq.s32.totalorder %v3057_v42, %v3413_v12  ;;  %vm663_vm6 = vcmp.eq.s32.totalorder %v3237_v47, %v3413_v12  ;;  %vm887_vm10 = vcmp.eq.s32.totalorder %v3327_v62, %v3413_v12  ;;  %v7573_v62 = vld [vmem:[#allocation14_spill] sm:$0xff] }
 0x1cb   : > { %vm503_vm7 = vmor %vm279_vm4, %vm439_vm1  ;;  %vm449_vm1 = vcmp.eq.s32.totalorder %v3156_v38, %v3413_v12  ;;  %vm672_vm4 = vcmp.eq.s32.totalorder %v3246_v44, %v3402_v20  ;;  %vm673_vm8 = vcmp.eq.s32.totalorder %v3246_v44, %v3413_v12  ;;  %v7450_v42 = vmov 0 }
 0x1cc   : > { %vm727_vm11 = vmor %vm503_vm7, %vm663_vm6  ;;  %vm289_vm6 = vcmp.eq.s32.totalorder %v3066_v45, %v3413_v12  ;;  %v7452_v45 = vmov 0  ;;  %v7462_v47 = vmov 0  ;;  %v7639_v44 = vmov 0 }
 0x1cd   : > { %vm951_vm0 = vmor %vm727_vm11, %vm887_vm10  ;;  %vm896_vm10 = vcmp.eq.s32.totalorder %v3336_v35, %v3402_v20 }
 0x1ce   : > { %1106 = vperm.xlu1 %2690, %v3018_v31   ;;  %vm512_vm7 = vmor %vm288_vm3, %vm448_vm15 }
 0x1cf   : > { %2691 = vset.pattern.permute.xlu2 %v2822_v39  ;;  %v3404_v9 = vpop.permute.xlu1 %855  ;;  %vm513_vm9 = vmor %vm289_vm6, %vm449_vm1  ;;  %vm454_vm1 = vcmp.eq.s32.totalorder %v3165_v43, %v3402_v20  ;;  %vm455_vm6 = vcmp.eq.s32.totalorder %v3165_v43, %v3413_v12 }
 0x1d0   : > { %1237 = vperm.xlu2 %2691, %v2904_v3   ;;  %1273 = vperm.xlu0 %2692, %v2952_v15   ;;  %v3408_v28 = vpop.permute.xlu0 %879  ;;  %vm736_vm11 = vmor %vm512_vm7, %vm672_vm4  ;;  %vm294_vm7 = vcmp.eq.s32.totalorder %v3075_v48, %v3402_v20 }
 0x1d1   : > { %v3410_v29 = vpop.permute.xlu2 %1013  ;;  %vm960_vm15 = vmor %vm736_vm11, %vm896_vm10  ;;  %vm295_vm10 = vcmp.eq.s32.totalorder %v3075_v48, %v3413_v12  ;;  %v7465_v48 = vmov 0 }
 0x1d2   : > { %vm518_vm11 = vmor %vm294_vm7, %vm454_vm1 }
 0x1d6   : > { %2693 = vset.pattern.permute.xlu1 %v2822_v39 }
 0x1d7   : > { %1243 = vperm.xlu1 %2693, %v2901_v2   ;;  %v3428_v3 = vpop.permute.xlu1 %864  ;;  %v7436_v2 = vmov 0 }
 0x1d8   : > { %1246 = vperm.xlu2 %2691, %v2913_v5   ;;  %1282 = vperm.xlu0 %2692, %v2964_v18   ;;  %v7438_v5 = vmov 0 }
 0x1d9   : > { %v3436_v15 = vpop.permute.xlu2 %1022  ;;  %v1017_v31 = vpop.permute.xlu0 %1016 }
 0x1da   : > { %vm1110_vm12 = vcmp.eq.s32.totalorder %v1017_v31, %v3402_v20  ;;  %vm1111_vm14 = vcmp.eq.s32.totalorder %v1017_v31, %v3413_v12  ;;  %v3884_v31 = vld [vmem:[%s2895_s25 + $0x98] sm:$0xff] }
 0x1db   : > { %vm3444_vm2 = vmor %vm950_vm13, %vm1110_vm12  ;;  %vm897_vm12 = vcmp.eq.s32.totalorder %v3336_v35, %v3413_v12 }
 0x1dc   : > { %v7437_v2 = vsel %vm3444_vm2, 4294967295, %v7436_v2  ;;  %vm3452_vm5 = vmor %vm951_vm0, %vm1111_vm14 }
 0x1dd   : > { %v7439_v5 = vsel %vm3452_vm5, 4294967295, %v7438_v5  ;;  %vm737_vm13 = vmor %vm513_vm9, %vm673_vm8  ;;  %vm678_vm8 = vcmp.eq.s32.totalorder %v3255_v58, %v3402_v20  ;;  %vm477_vm5 = vcmp.eq.s32.totalorder %v3172_v34, %v3413_v12 }
 0x1de   : > { %vm961_vm3 = vmor %vm737_vm13, %vm897_vm12  ;;  %vm679_vm12 = vcmp.eq.s32.totalorder %v3255_v58, %v3413_v12  ;;  %v7493_v58 = vld [vmem:[#allocation20_spill] sm:$0xff] }
 0x1df   : > { %1249 = vperm.xlu1 %2693, %v2898_v1   ;;  %v3461_v18 = vpop.permute.xlu1 %873  ;;  %v7440_v1 = vmov 0  ;;  %vm519_vm13 = vmor %vm295_vm10, %vm455_vm6  ;;  %vm460_vm10 = vcmp.eq.s32.totalorder %v3174_v36, %v3402_v20 }
 0x1e0   : > { %1252 = vperm.xlu2 %2691, %v2910_v4   ;;  %1291 = vperm.xlu0 %2692, %v2976_v21   ;;  %v7442_v4 = vmov 0  ;;  %vm743_vm1 = vmor %vm519_vm13, %vm679_vm12  ;;  %vm466_vm12 = vcmp.eq.s32.totalorder %v3183_v33, %v3402_v20 }
 0x1e1   : > { %v3469_v37 = vpop.permute.xlu2 %1028  ;;  %v1032_v38 = vpop.permute.xlu0 %1031 }
 0x1e2   : > { %vm1120_vm14 = vcmp.eq.s32.totalorder %v1032_v38, %v3402_v20  ;;  %vm1121_vm0 = vcmp.eq.s32.totalorder %v1032_v38, %v3413_v12  ;;  %v7504_v38 = vld [vmem:[#allocation5_spill] sm:$0xff] }
 0x1e3   : > { %vm3477_vm4 = vmor %vm960_vm15, %vm1120_vm14  ;;  %vm902_vm14 = vcmp.eq.s32.totalorder %v3345_v63, %v3402_v20 }
 0x1e4   : > { %v7441_v1 = vsel %vm3477_vm4, 4294967295, %v7440_v1  ;;  %vm3485_vm9 = vmor %vm961_vm3, %vm1121_vm0  ;;  %vm903_vm0 = vcmp.eq.s32.totalorder %v3345_v63, %v3413_v12  ;;  %vm461_vm4 = vcmp.eq.s32.totalorder %v3174_v36, %v3413_v12  ;;  %v7486_v63 = vld [vmem:[#allocation70_spill] sm:$0xff] }
 0x1e5   : > { %v7443_v4 = vsel %vm3485_vm9, 4294967295, %v7442_v4  ;;  %vm742_vm15 = vmor %vm518_vm11, %vm678_vm8  ;;  %vm300_vm11 = vcmp.eq.s32.totalorder %v3084_v51, %v3402_v20 }
 0x1e6   : > { %vm966_vm7 = vmor %vm742_vm15, %vm902_vm14  ;;  %vm301_vm14 = vcmp.eq.s32.totalorder %v3084_v51, %v3413_v12 }
 0x1e7   : > { %1258 = vperm.xlu1 %2693, %v2925_v8   ;;  %v3494_v21 = vpop.permute.xlu1 %882  ;;  %vm967_vm9 = vmor %vm743_vm1, %vm903_vm0  ;;  %v7446_v8 = vmov 0  ;;  %vm467_vm0 = vcmp.eq.s32.totalorder %v3183_v33, %v3413_v12  ;;  %vm684_vm1 = vcmp.eq.s32.totalorder %v3264_v61, %v3402_v20  ;;  %v7492_v33 = vld [vmem:[#allocation6_spill] sm:$0xff] }
 0x1e8   : > { %1261 = vperm.xlu2 %2691, %v2922_v7   ;;  %1300 = vperm.xlu0 %2692, %v2988_v24   ;;  %v7444_v7 = vmov 0  ;;  %vm3524_vm15 = vmor %vm300_vm11, %vm460_vm10  ;;  %vm908_vm11 = vcmp.eq.s32.totalorder %v3354_v59, %v3402_v20  ;;  %v7506_v24 = vmov 0 }
 0x1e9   : > { %v3502_v35 = vpop.permute.xlu2 %1037  ;;  %v1041_v39 = vpop.permute.xlu0 %1040 }
 0x1ea   : > { %vm1126_vm3 = vcmp.eq.s32.totalorder %v1041_v39, %v3402_v20  ;;  %vm1127_vm6 = vcmp.eq.s32.totalorder %v1041_v39, %v3413_v12  ;;  %v7505_v39 = vld [vmem:[#allocation12_spill] sm:$0xff] }
 0x1eb   : > { %vm3510_vm8 = vmor %vm966_vm7, %vm1126_vm3  ;;  %vm685_vm7 = vcmp.eq.s32.totalorder %v3264_v61, %v3413_v12  ;;  %v7482_v61 = vld [vmem:[#allocation27_spill] sm:$0xff] }
 0x1ec   : > { %v7445_v7 = vsel %vm3510_vm8, 4294967295, %v7444_v7  ;;  %vm3518_vm13 = vmor %vm967_vm9, %vm1127_vm6  ;;  %vm306_vm9 = vcmp.eq.s32.totalorder %v3093_v54, %v3402_v20  ;;  %vm307_vm6 = vcmp.eq.s32.totalorder %v3093_v54, %v3413_v12  ;;  %v7473_v54 = vld [vmem:[#allocation18_spill] sm:$0xff] }
 0x1ed   : > { %v7447_v8 = vsel %vm3518_vm13, 4294967295, %v7446_v8  ;;  %vm525_vm3 = vmor %vm301_vm14, %vm461_vm4  ;;  %vm909_vm13 = vcmp.eq.s32.totalorder %v3354_v59, %v3413_v12  ;;  %v7478_v59 = vld [vmem:[#allocation44_spill] sm:$0xff] }
 0x1ee   : > { %vm3543_vm10 = vmor %vm306_vm9, %vm466_vm12  ;;  %vm476_vm12 = vcmp.eq.s32.totalorder %v3172_v34, %v3402_v20  ;;  %v7519_v34 = vmov 0 }
 0x1ef   : > { %1267 = vperm.xlu1 %2693, %v2937_v11   ;;  %v7451_v42 = vsel %vm3543_vm10, 4294967295, %v7450_v42  ;;  %vm3551_vm4 = vmor %vm307_vm6, %vm467_vm0  ;;  %vm472_vm0 = vcmp.eq.s32.totalorder %v3192_v53, %v3402_v20 }
 0x1f0   : > { %1270 = vperm.xlu2 %2691, %v2934_v10   ;;  %1309 = vperm.xlu0 %2692, %v3000_v27   ;;  %v3539_v36 = vpop.permute.xlu1 %1019  ;;  %v7453_v45 = vsel %vm3551_vm4, 4294967295, %v7452_v45  ;;  %vm748_vm14 = vmor %vm3524_vm15, %vm684_vm1  ;;  %vm316_vm15 = vcmp.eq.s32.totalorder %v3071_v46, %v3402_v20  ;;  %v7456_v27 = vmov 0  ;;  %v7516_v10 = vld [vmem:[#allocation23_spill] sm:$0xff] }
 0x1f1   : > { %v3549_v11 = vpop.permute.xlu2 %1046  ;;  %v1050_v43 = vpop.permute.xlu0 %1049  ;;  %vm749_vm9 = vmor %vm525_vm3, %vm685_vm7  ;;  %vm317_vm3 = vcmp.eq.s32.totalorder %v3071_v46, %v3413_v12  ;;  %vm312_vm7 = vcmp.eq.s32.totalorder %v3102_v57, %v3402_v20  ;;  %v7460_v46 = vmov 0 }
 0x1f2   : > { %vm1132_vm8 = vcmp.eq.s32.totalorder %v1050_v43, %v3402_v20  ;;  %vm972_vm6 = vmor %vm748_vm14, %vm908_vm11  ;;  %vm1133_vm2 = vcmp.eq.s32.totalorder %v1050_v43, %v3413_v12  ;;  %vm478_vm11 = vcmp.eq.s32.totalorder %v3201_v0, %v3402_v20 }
 0x1f3   : > { %vm973_vm4 = vmor %vm749_vm9, %vm909_vm13  ;;  %vm313_vm13 = vcmp.eq.s32.totalorder %v3102_v57, %v3413_v12  ;;  %v7673_v57 = vmov 0 }
 0x1f4   : > { %vm3575_vm10 = vmor %vm316_vm15, %vm476_vm12  ;;  %vm479_vm12 = vcmp.eq.s32.totalorder %v3201_v0, %v3413_v12  ;;  %v7297_v0 = vmov 6  }
 0x1f5   : > { %vm3581_vm14 = vmor %vm972_vm6, %vm1132_vm8  ;;  %vm690_vm8 = vcmp.eq.s32.totalorder %v3273_v56, %v3402_v20 }
 0x1f6   : > { %v7457_v27 = vsel %vm3581_vm14, 4294967295, %v7456_v27  ;;  %vm3587_vm9 = vmor %vm317_vm3, %vm477_vm5  ;;  %vm318_vm5 = vcmp.eq.s32.totalorder %v3109_v60, %v3402_v20  ;;  %vm691_vm3 = vcmp.eq.s32.totalorder %v3273_v56, %v3413_v12  ;;  %vm7472_vm14 = vnez %v7453_v45  ;;  %v7475_v56 = vld [vmem:[#allocation67_spill] sm:$0xff] }
 0x1f7   : > { %vm3591_vm1 = vmor %vm312_vm7, %vm472_vm0  ;;  %1276 = vperm.xlu1 %2693, %v2949_v14   ;;  %vm7464_vm0 = vcmp.eq.s32.totalorder %v3192_v53, %v3413_v12  ;;  %v7467_v14 = vmov 0  ;;  %vm914_vm7 = vcmp.eq.s32.totalorder %v3363_v49, %v3402_v20 }
 0x1f8   : > { %v7461_v46 = vsel %vm3591_vm1, 4294967295, %v7460_v46  ;;  %vm3599_vm6 = vmor %vm973_vm4, %vm1133_vm2  ;;  %1279 = vperm.xlu2 %2691, %v2946_v13   ;;  %1318 = vperm.xlu0 %2692, %v3012_v30   ;;  %v3617_v51 = vpop.permute.xlu1 %1025  ;;  %vm319_vm2 = vcmp.eq.s32.totalorder %v3109_v60, %v3413_v12  ;;  %v7469_v30 = vmov 0  ;;  %v7480_v60 = vmov 0 }
 0x1f9   : > { %v7463_v47 = vsel %vm3599_vm6, 4294967295, %v7462_v47  ;;  %vm3609_vm15 = vmor %vm313_vm13, %vm7464_vm0  ;;  %v3630_v53 = vpop.permute.xlu2 %1055  ;;  %v1059_v13 = vpop.permute.xlu0 %1058  ;;  %vm915_vm0 = vcmp.eq.s32.totalorder %v3363_v49, %v3413_v12  ;;  %vm482_vm6 = vcmp.eq.s32.totalorder %v3181_v40, %v3402_v20  ;;  %v7474_v49 = vld [vmem:[#allocation48_spill] sm:$0xff] }
 0x1fa   : > { %v7466_v48 = vsel %vm3609_vm15, 4294967295, %v7465_v48  ;;  %vm3624_vm4 = vmor %vm318_vm5, %vm478_vm11  ;;  %vm7471_vm11 = vnez %v7451_v42  ;;  %vm7479_vm1 = vcmp.eq.s32.totalorder %v1059_v13, %v3402_v20  ;;  %v7509_v42 = vmov 0 }
 0x1fb   : > { %v7468_v14 = vsel %vm3624_vm4, 4294967295, %v7467_v14  ;;  %vm3635_vm13 = vmor %vm319_vm2, %vm479_vm12  ;;  %vm323_vm2 = vcmp.eq.s32.totalorder %v7473_v54, %v3413_v12 }
 0x1fc   : > { %v7470_v30 = vsel %vm3635_vm13, 4294967295, %v7469_v30  ;;  %vm754_vm5 = vmor %vm7471_vm11, %vm690_vm8  ;;  %vm1139_vm8 = vcmp.eq.s32.totalorder %v1059_v13, %v3413_v12  ;;  %vm322_vm11 = vcmp.eq.s32.totalorder %v7473_v54, %v3402_v20  ;;  %v7527_v13 = vld [vmem:[#allocation45_spill] sm:$0xff]  ;;  %v7528_v54 = vld [vmem:[#allocation66_spill] sm:$0xff] }
 0x1fd   : > { %vm755_vm4 = vmor %vm7472_vm14, %vm691_vm3  ;;  %vm7487_vm14 = vcmp.eq.s32.totalorder %v3271_v50, %v3402_v20 }
 0x1fe   : > { %vm978_vm15 = vmor %vm754_vm5, %vm914_vm7  ;;  %vm488_vm7 = vcmp.eq.s32.totalorder %v7478_v59, %v3402_v20  ;;  %vm7500_vm5 = vcmp.eq.s32.totalorder %v7475_v56, %v3402_v20 }
 0x1ff   : > { %vm979_vm12 = vmor %vm755_vm4, %vm915_vm0  ;;  %vm7483_vm4 = vcmp.eq.s32.totalorder %v3181_v40, %v3413_v12  ;;  %v7490_v40 = vmov 0  ;;  %1285 = vperm.xlu1 %2693, %v7492_v33   ;;  %v4202_v33 = vld [vmem:[%s2895_s25 + $0xb8] sm:$0xff] }
 0x200   : > { %vm3666_vm13 = vmor %vm322_vm11, %vm482_vm6  ;;  %vm324_vm6 = vcmp.eq.s32.totalorder %v7482_v61, %v3402_v20  ;;  %1288 = vperm.xlu2 %2691, %v7504_v38   ;;  %1327 = vperm.xlu0 %2692, %v3021_v32   ;;  %v7553_v38 = vld [vmem:[#allocation22_spill] sm:$0xff]  ;;  %v7560_v32 = vmov 0  ;;  %7662 = vst [vmem:[#allocation5_spill] sm:$0xff] %v4202_v33 }
 0x201   : > { %vm3678_vm3 = vmor %vm978_vm15, %vm7479_vm1  ;;  %v3771_v43 = vpop.permute.xlu2 %1064  ;;  %v1068_v45 = vpop.permute.xlu0 %1067 }
 0x202   : > { %v7481_v60 = vsel %vm3678_vm3, 4294967295, %v7480_v60  ;;  %vm3687_vm0 = vmor %vm323_vm2, %vm7483_vm4  ;;  %vm328_vm2 = vcmp.eq.s32.totalorder %v7493_v58, %v3402_v20  ;;  %vm325_vm4 = vcmp.eq.s32.totalorder %v7482_v61, %v3413_v12  ;;  %7515 = vst [vmem:[#allocation18_spill] sm:$0xff] %v3771_v43  ;;  %v7606_v43 = vld [vmem:[#allocation54_spill] sm:$0xff]  ;;  %v7729_v61 = vld [vmem:[#allocation76_spill] sm:$0xff] }
 0x203   : > { %vm3698_vm1 = vmor %vm3575_vm10, %vm7487_vm14  ;;  %vm7494_vm10 = vcmp.eq.s32.totalorder %v7474_v49, %v3402_v20 }
 0x204   : > { %vm3704_vm15 = vmor %vm979_vm12, %vm1139_vm8  ;;  %vm7497_vm8 = vcmp.eq.s32.totalorder %v3271_v50, %v3413_v12  ;;  %v3742_v50 = vpop.permute.xlu1 %1034  ;;  %vm7511_vm12 = vcmp.eq.s32.totalorder %v7475_v56, %v3413_v12  ;;  %v7535_v56 = vld [vmem:[#allocation46_spill] sm:$0xff] }
 0x205   : > { %v7491_v40 = vsel %vm3704_vm15, 4294967295, %v7490_v40  ;;  %vm3716_vm14 = vmor %vm324_vm6, %vm7494_vm10  ;;  %vm7501_vm6 = vnez %v7461_v46  ;;  %vm7512_vm15 = vnez %v7466_v48  ;;  %v7521_v46 = vld [vmem:[#allocation25_spill] sm:$0xff]  ;;  %v7522_v48 = vld [vmem:[#allocation30_spill] sm:$0xff] }
 0x206   : > { %vm3727_vm11 = vmor %vm3587_vm9, %vm7497_vm8 }
 0x207   : > { %vm3736_vm10 = vmor %vm7501_vm6, %vm7500_vm5  ;;  %vm7508_vm5 = vcmp.eq.s32.totalorder %v7474_v49, %v3413_v12  ;;  %1294 = vperm.xlu1 %2693, %v3884_v31   ;;  %v7651_v49 = vmov 0 }
 0x208   : > { %vm3749_vm8 = vmor %vm328_vm2, %vm488_vm7  ;;  %vm7518_vm7 = vnez %v7468_v14  ;;  %v7525_v14 = vmov 0  ;;  %vm7531_vm2 = vcmp.eq.s32.totalorder %v3372_v17, %v3413_v12  ;;  %1297 = vperm.xlu2 %2691, %v3942_v55   ;;  %2695 = vset.pattern.permute.xlu0 %v7297_v0  ;;  %v7580_v0 = vmov 0 }
 0x209   : > { %v7507_v24 = vsel %vm3749_vm8, 4294967295, %v7506_v24  ;;  %vm3756_vm6 = vmor %vm325_vm4, %vm7508_vm5  ;;  %vm489_vm5 = vcmp.eq.s32.totalorder %v7478_v59, %v3413_v12  ;;  %v7536_v59 = vld [vmem:[#allocation73_spill] sm:$0xff] }
 0x20a   : > { %v7510_v42 = vsel %vm3756_vm6, 4294967295, %v7509_v42  ;;  %vm3765_vm9 = vmor %vm7512_vm15, %vm7511_vm12  ;;  %vm7517_vm12 = vcmp.eq.s32.totalorder %v7486_v63, %v3402_v20  ;;  %vm7523_vm15 = vcmp.eq.s32.totalorder %v7486_v63, %v3413_v12  ;;  %vm7524_vm6 = vnez %v7470_v30  ;;  %v7530_v30 = vld [vmem:[#allocation51_spill] sm:$0xff]  ;;  %v7545_v63 = vld [vmem:[#allocation69_spill] sm:$0xff] }
 0x20b   : > { %vm3786_vm3 = vmor %vm7518_vm7, %vm7517_vm12 }
 0x20c   : > { %v7520_v34 = vsel %vm3786_vm3, 4294967295, %v7519_v34  ;;  %vm3801_vm8 = vmor %vm7524_vm6, %vm7523_vm15  ;;  %vm7529_vm3 = vcmp.eq.s32.totalorder %v3372_v17, %v3402_v20  ;;  %v7538_v17 = vmov 0  ;;  %vm7546_vm15 = vcmp.eq.s32.totalorder %v7528_v54, %v3402_v20 }
 0x20d   : > { %v7526_v14 = vsel %vm3801_vm8, 4294967295, %v7525_v14  ;;  %vm984_vm6 = vmor %vm3736_vm10, %vm7529_vm3  ;;  %vm7532_vm3 = vcmp.eq.s32.totalorder %v7493_v58, %v3413_v12  ;;  %v7550_v58 = vmov 0 }
 0x20e   : > { %vm985_vm8 = vmor %vm3765_vm9, %vm7531_vm2  ;;  %vm7537_vm9 = vcmp.eq.s32.totalorder %v1068_v45, %v3402_v20 }
 0x20f   : > { %vm3832_vm10 = vmor %vm7532_vm3, %vm489_vm5  ;;  %vm7541_vm5 = vcmp.eq.s32.totalorder %v7527_v13, %v3402_v20  ;;  %vm7542_vm3 = vcmp.eq.s32.totalorder %v7516_v10, %v3402_v20 }
 0x210   : > { %vm3846_vm2 = vmor %vm984_vm6, %vm7537_vm9  ;;  %1306 = vperm.xlu2 %2691, %v4202_v33  }
 0x211   : > { %v7539_v17 = vsel %vm3846_vm2, 4294967295, %v7538_v17  ;;  %vm3856_vm12 = vmor %vm7542_vm3, %vm7541_vm5  ;;  %vm7549_vm3 = vcmp.eq.s32.totalorder %v1068_v45, %v3413_v12  ;;  %vm7559_vm5 = vcmp.eq.s32.totalorder %v7516_v10, %v3413_v12  ;;  %v7564_v45 = vmov 0  ;;  %v7619_v10 = vld [vmem:[#allocation71_spill] sm:$0xff] }
 0x212   : > { %7540 = vst [vmem:[#allocation48_spill] sm:$0xff] %v7539_v17  ;;  %vm3871_vm7 = vmor %vm3666_vm13, %vm7546_vm15  ;;  %vm7554_vm13 = vcmp.eq.s32.totalorder %v7521_v46, %v3402_v20  ;;  %vm7555_vm15 = vcmp.eq.s32.totalorder %v7505_v39, %v3402_v20  ;;  %v1077_v17 = vpop.permute.xlu0 %1076 }
 0x213   : > { %vm3879_vm4 = vmor %vm985_vm8, %vm7549_vm3  ;;  %vm7558_vm3 = vcmp.eq.s32.totalorder %v7527_v13, %v3413_v12  ;;  %vm7566_vm8 = vcmp.eq.s32.totalorder %v3370_v52, %v3402_v20  ;;  %v7570_v13 = vmov 0 }
 0x214   : > { %v7551_v58 = vsel %vm3879_vm4, 4294967295, %v7550_v58  ;;  %vm3895_vm6 = vmor %vm7555_vm15, %vm7554_vm13  ;;  %vm7562_vm4 = vcmp.eq.s32.totalorder %v7530_v30, %v3402_v20  ;;  %vm7563_vm13 = vcmp.eq.s32.totalorder %v7522_v48, %v3402_v20 }
 0x215   : > { %7552 = vst [vmem:[#allocation67_spill] sm:$0xff] %v7551_v58  ;;  %vm3907_vm9 = vmor %vm7559_vm5, %vm7558_vm3  ;;  %vm7569_vm5 = vcmp.eq.s32.totalorder %v7528_v54, %v3413_v12  ;;  %v3946_v58 = vpop.permute.xlu1 %1043  ;;  %v7576_v54 = vmov 0 }
 0x216   : > { %v7561_v32 = vsel %vm3907_vm9, 4294967295, %v7560_v32  ;;  %vm3917_vm15 = vmor %vm7563_vm13, %vm7562_vm4  ;;  %7572 = vst [vmem:[#allocation44_spill] sm:$0xff] %v3946_v58  ;;  %vm7574_vm13 = vcmp.eq.s32.totalorder %v7535_v56, %v3402_v20  ;;  %vm7582_vm9 = vcmp.eq.s32.totalorder %v3370_v52, %v3413_v12  ;;  %v2711_v58 = vld [vmem:[%s2895_s25 + $0x8] sm:$0xff]  ;;  %v7588_v52 = vld [vmem:[#allocation24_spill] sm:$0xff] }
 0x217   : > { %v7565_v45 = vsel %vm3917_vm15, 4294967295, %v7564_v45  ;;  %vm3926_vm2 = vmor %vm3698_vm1, %vm7566_vm8  ;;  %vm335_vm8 = vcmp.eq.s32.totalorder %v7553_v38, %v3413_v12  ;;  %vm7578_vm15 = vcmp.eq.s32.totalorder %v7530_v30, %v3413_v12  ;;  %vm7579_vm1 = vcmp.eq.s32.totalorder %v7522_v48, %v3413_v12  ;;  %v1074_v30 = vpop.permute.xlu2 %1073  ;;  %1464 = vperm.xlu0 %2695, %v2711_v58   ;;  %v7604_v58 = vld [vmem:[#allocation28_spill] sm:$0xff] }
 0x218   : > { %vm3935_vm3 = vmor %vm3687_vm0, %vm7569_vm5  ;;  %vm7575_vm5 = vcmp.eq.s32.totalorder %v7553_v38, %v3402_v20  ;;  %v7586_v48 = vmov 0  ;;  %v7629_v38 = vld [vmem:[#allocation75_spill] sm:$0xff] }
 0x219   : > { %v7571_v13 = vsel %vm3935_vm3, 4294967295, %v7570_v13  ;;  %vm3960_vm4 = vmor %vm7575_vm5, %vm7574_vm13  ;;  %vm7585_vm13 = vcmp.eq.s32.totalorder %v7536_v59, %v3402_v20 }
 0x21a   : > { %v7577_v54 = vsel %vm3960_vm4, 4294967295, %v7576_v54  ;;  %vm3970_vm0 = vmor %vm7579_vm1, %vm7578_vm15  ;;  %vm7596_vm15 = vcmp.eq.s32.totalorder %v7545_v63, %v3402_v20  ;;  %v1086_v33 = vpop.permute.xlu0 %1085 }
 0x21b   : > { %v7581_v0 = vsel %vm3970_vm0, 4294967295, %v7580_v0  ;;  %vm3979_vm3 = vmor %vm3727_vm11, %vm7582_vm9  ;;  %vm7589_vm9 = vcmp.eq.s32.totalorder %v7535_v56, %v3413_v12  ;;  %vm7597_vm11 = vnez %v7507_v24  ;;  %v7598_v56 = vmov 0  ;;  %v7605_v24 = vld [vmem:[#allocation33_spill] sm:$0xff] }
 0x21c   : > { %vm3988_vm5 = vmor %vm3716_vm14, %vm7585_vm13  ;;  %vm7592_vm14 = vcmp.eq.s32.totalorder %v3381_v19, %v3402_v20  ;;  %vm7593_vm13 = vnez %v7520_v34  ;;  %v7602_v34 = vmov 0 }
 0x21d   : > { %v7587_v48 = vsel %vm3988_vm5, 4294967295, %v7586_v48  ;;  %vm4000_vm1 = vmor %vm335_vm8, %vm7589_vm9  ;;  %vm7600_vm8 = vcmp.eq.s32.totalorder %v7536_v59, %v3413_v12  ;;  %vm7601_vm9 = vnez %v7510_v42  ;;  %v7611_v59 = vld [vmem:[#allocation47_spill] sm:$0xff]  ;;  %vm7616_vm5 = vcmp.eq.s32.totalorder %v7505_v39, %v3413_v12 }
 0x21e   : > { %v7591_v25 = vsel %vm4000_vm1, 4294967295, %v7590_v25  ;;  %vm4009_vm0 = vmor %vm7593_vm13, %vm7592_vm14  ;;  %vm1148_vm14 = vcmp.eq.s32.totalorder %v1074_v30, %v3402_v20  ;;  %v7621_v39 = vmov 0  ;;  %v7660_v42 = vmov 0 }
 0x21f   : > { %vm4018_vm4 = vmor %vm7597_vm11, %vm7596_vm15  ;;  %vm337_vm11 = vcmp.eq.s32.totalorder %v7605_v24, %v3413_v12  ;;  %vm7620_vm15 = vcmp.eq.s32.totalorder %v1074_v30, %v3413_v12  ;;  %v7631_v30 = vmov 0 }
 0x220   : > { %v7599_v56 = vsel %vm4018_vm4, 4294967295, %v7598_v56  ;;  %vm4027_vm1 = vmor %vm7601_vm9, %vm7600_vm8  ;;  %vm7607_vm4 = vcmp.eq.s32.totalorder %v3381_v19, %v3413_v12  ;;  %vm7608_vm8 = vnez %v7526_v14  ;;  %v7612_v19 = vmov 0 }
 0x221   : > { %v7603_v34 = vsel %vm4027_vm1, 4294967295, %v7602_v34  ;;  %vm4044_vm9 = vmor %vm7608_vm8, %vm7607_vm4  ;;  %vm7615_vm8 = vcmp.eq.s32.totalorder %v7521_v46, %v3413_v12  ;;  %v7624_v46 = vld [vmem:[#allocation49_spill] sm:$0xff]  ;;  %v7727_v14 = vmov 0 }
 0x222   : > { %vm4057_vm1 = vmor %vm3926_vm2, %vm1148_vm14  ;;  %vm7625_vm2 = vcmp.eq.s32.totalorder %v7606_v43, %v3402_v20  ;;  %vm7626_vm14 = vcmp.eq.s32.totalorder %v7605_v24, %v3402_v20  ;;  %v7636_v24 = vmov 0 }
 0x223   : > { %v7613_v19 = vsel %vm4057_vm1, 4294967295, %v7612_v19  ;;  %vm4068_vm13 = vmor %vm7616_vm5, %vm7615_vm8  ;;  %vm7630_vm8 = vcmp.eq.s32.totalorder %v1077_v17, %v3402_v20 }
 0x224   : > { %7614 = vst [vmem:[#allocation27_spill] sm:$0xff] %v7613_v19  ;;  %vm4084_vm5 = vmor %vm3979_vm3, %vm7620_vm15  ;;  %vm7635_vm3 = vcmp.eq.s32.totalorder %v7588_v52, %v3402_v20  ;;  %vm7638_vm15 = vcmp.eq.s32.totalorder %v7606_v43, %v3413_v12  ;;  %v7646_v43 = vmov 0  ;;  %v7738_v19 = vmov 0 }
 0x225   : > { %v7622_v39 = vsel %vm4084_vm5, 4294967295, %v7621_v39  ;;  %vm4096_vm1 = vmor %vm7626_vm14, %vm7625_vm2  ;;  %vm321_vm2 = vcmp.eq.s32.totalorder %v7588_v52, %v3413_v12  ;;  %vm7634_vm14 = vcmp.eq.s32.totalorder %v7611_v59, %v3402_v20  ;;  %v7643_v52 = vmov 0 }
 0x226   : > { %7623 = vst [vmem:[#allocation70_spill] sm:$0xff] %v7622_v39  ;;  %vm4110_vm5 = vmor %vm4009_vm0, %vm7630_vm8  ;;  %v7641_v39 = vld [vmem:[#allocation72_spill] sm:$0xff] }
 0x227   : > { %v7632_v30 = vsel %vm4110_vm5, 4294967295, %v7631_v30  ;;  %vm4122_vm4 = vmor %vm7635_vm3, %vm7634_vm14  ;;  %vm7642_vm3 = vcmp.eq.s32.totalorder %v7545_v63, %v3413_v12  ;;  %v7718_v63 = vld [vmem:[#allocation26_spill] sm:$0xff] }
 0x228   : > { %7633 = vst [vmem:[#allocation6_spill] sm:$0xff] %v7632_v30  ;;  %v7637_v24 = vsel %vm4122_vm4, 4294967295, %v7636_v24  ;;  %vm4129_vm0 = vmor %vm337_vm11, %vm7638_vm15  ;;  %vm7645_vm15 = vcmp.eq.s32.totalorder %v1077_v17, %v3413_v12  ;;  %v4157_v30 = vld [vmem:[%s2895_s25 + $0xb0] sm:$0xff]  ;;  %v7654_v17 = vmov 0  ;;  %vm7701_vm4 = vnez %v7591_v25 }
 0x229   : > { %v7640_v44 = vsel %vm4129_vm0, 4294967295, %v7639_v44  ;;  %vm4142_vm14 = vmor %vm3832_vm10, %vm7642_vm3  ;;  %1303 = vperm.xlu1 %2693, %v4157_v30   ;;  %vm7649_vm10 = vcmp.eq.s32.totalorder %v7604_v58, %v3402_v20  ;;  %vm7650_vm3 = vcmp.eq.s32.totalorder %v7573_v62, %v3402_v20  ;;  %v7808_v25 = vmov 0 }
 0x22a   : > { %v7644_v52 = vsel %vm4142_vm14, 4294967295, %v7643_v52  ;;  %vm4152_vm8 = vmor %vm4044_vm9, %vm7645_vm15  ;;  %vm7653_vm9 = vcmp.eq.s32.totalorder %v7611_v59, %v3413_v12  ;;  %v4205_v59 = vpop.permute.xlu1 %1052 }
 0x22b   : > { %v7647_v43 = vsel %vm4152_vm8, 4294967295, %v7646_v43  ;;  %vm4166_vm5 = vmor %vm7650_vm3, %vm7649_vm10  ;;  %vm7656_vm8 = vcmp.eq.s32.totalorder %v3378_v16, %v3402_v20  ;;  %vm7659_vm3 = vcmp.eq.s32.totalorder %v7619_v10, %v3402_v20  ;;  %7663 = vst [vmem:[#allocation12_spill] sm:$0xff] %v4205_v59  ;;  %vm7672_vm10 = vnez %v7561_v32  ;;  %v2714_v59 = vld [vmem:[%s2895_s25 + $0x30] sm:$0xff] }
 0x22c   : > { %7648 = vst [vmem:[#allocation20_spill] sm:$0xff] %v7647_v43  ;;  %v7652_v49 = vsel %vm4166_vm5, 4294967295, %v7651_v49  ;;  %vm4173_vm15 = vmor %vm321_vm2, %vm7653_vm9  ;;  %v7665_v43 = vmov 0  ;;  %vm7671_vm2 = vcmp.eq.s32.totalorder %v7619_v10, %v3413_v12  ;;  %1479 = vperm.xlu0 %2695, %v2714_v59   ;;  %v7691_v10 = vld [vmem:[#allocation8_spill] sm:$0xff]  ;;  %vm7697_vm5 = vnez %v7603_v34  ;;  %v7706_v34 = vld [vmem:[#allocation78_spill] sm:$0xff] }
 0x22d   : > { %v7655_v17 = vsel %vm4173_vm15, 4294967295, %v7654_v17  ;;  %vm4184_vm0 = vmor %vm3871_vm7, %vm7656_vm8  ;;  %vm7664_vm7 = vcmp.eq.s32.totalorder %v7624_v46, %v3402_v20  ;;  %v7833_v32 = vmov 0  ;;  %v7903_v59 = vld [vmem:[#allocation81_spill] sm:$0xff] }
 0x22e   : > { %vm4197_vm9 = vmor %vm3856_vm12, %vm7659_vm3  ;;  %vm7667_vm12 = vcmp.eq.s32.totalorder %v3378_v16, %v3413_v12  ;;  %vm7668_vm3 = vnez %v7571_v13  ;;  %v7677_v16 = vmov 0  ;;  %v1083_v13 = vpop.permute.xlu2 %1082 }
 0x22f   : > { %v7661_v42 = vsel %vm4197_vm9, 4294967295, %v7660_v42  ;;  %vm4212_vm8 = vmor %vm3895_vm6, %vm7664_vm7  ;;  %vm7675_vm6 = vcmp.eq.s32.totalorder %v7629_v38, %v3402_v20  ;;  %vm7676_vm7 = vnez %v7565_v45  ;;  %v7685_v45 = vmov 0 }
 0x230   : > { %v7666_v43 = vsel %vm4212_vm8, 4294967295, %v7665_v43  ;;  %vm4221_vm11 = vmor %vm7668_vm3, %vm7667_vm12  ;;  %vm7687_vm12 = vcmp.eq.s32.totalorder %v7629_v38, %v3413_v12  ;;  %v7713_v38 = vld [vmem:[#allocation74_spill] sm:$0xff] }
 0x231   : > { %vm4230_vm15 = vmor %vm7672_vm10, %vm7671_vm2  ;;  %vm7679_vm10 = vcmp.eq.s32.totalorder %v3390_v22, %v3402_v20  ;;  %vm7680_vm2 = vnez %v7587_v48  ;;  %v7689_v48 = vmov 0 }
 0x232   : > { %v7674_v57 = vsel %vm4230_vm15, 4294967295, %v7673_v57  ;;  %vm4239_vm8 = vmor %vm7676_vm7, %vm7675_vm6  ;;  %vm7683_vm6 = vcmp.eq.s32.totalorder %v7641_v39, %v3402_v20  ;;  %vm7684_vm7 = vnez %v7577_v54  ;;  %vm7688_vm15 = vnez %v7581_v0  ;;  %v7814_v54 = vld [vmem:[#allocation79_spill] sm:$0xff] }
 0x233   : > { %v7678_v16 = vsel %vm4239_vm8, 4294967295, %v7677_v16  ;;  %vm4251_vm3 = vmor %vm7680_vm2, %vm7679_vm10  ;;  %vm1154_vm10 = vcmp.eq.s32.totalorder %v1083_v13, %v3402_v20  ;;  %v7694_v0 = vmov 0  ;;  %vm7696_vm2 = vcmp.eq.s32.totalorder %v3390_v22, %v3413_v12  ;;  %v7705_v22 = vld [vmem:[#allocation50_spill] sm:$0xff] }
 0x234   : > { %vm4260_vm8 = vmor %vm7684_vm7, %vm7683_vm6  ;;  %vm283_vm6 = vcmp.eq.s32.totalorder %v7573_v62, %v3413_v12  ;;  %vm7700_vm7 = vcmp.eq.s32.totalorder %v7641_v39, %v3413_v12  ;;  %v7707_v39 = vmov 0  ;;  %v7802_v62 = vmov 0 }
 0x235   : > { %v7686_v45 = vsel %vm4260_vm8, 4294967295, %v7685_v45  ;;  %vm4269_vm9 = vmor %vm7688_vm15, %vm7687_vm12  ;;  %vm7692_vm8 = vcmp.eq.s32.totalorder %v3387_v41, %v3402_v20  ;;  %vm7693_vm15 = vnez %v7599_v56  ;;  %v7704_v56 = vld [vmem:[#allocation31_spill] sm:$0xff] }
 0x236   : > { %v7690_v48 = vsel %vm4269_vm9, 4294967295, %v7689_v48  ;;  %vm4286_vm12 = vmor %vm7693_vm15, %vm7692_vm8  ;;  %vm7723_vm15 = vcmp.eq.s32.totalorder %v1086_v33, %v3402_v20 }
 0x237   : > { %v7695_v0 = vsel %vm4286_vm12, 4294967295, %v7694_v0  ;;  %vm4295_vm9 = vmor %vm7697_vm5, %vm7696_vm2  ;;  %vm7719_vm2 = vcmp.eq.s32.totalorder %v7624_v46, %v3413_v12  ;;  %v7724_v46 = vmov 0 }
 0x238   : > { %vm4304_vm14 = vmor %vm7701_vm4, %vm7700_vm7  ;;  %vm7710_vm7 = vcmp.eq.s32.totalorder %v7604_v58, %v3413_v12  ;;  %vm7714_vm4 = vcmp.eq.s32.totalorder %v1083_v13, %v3413_v12  ;;  %v7715_v58 = vmov 0  ;;  %v7722_v13 = vld [vmem:[#allocation52_spill] sm:$0xff] }
 0x239   : > { %vm4317_vm12 = vmor %vm4184_vm0, %vm1154_vm10 }
 0x23a   : > { %v7708_v39 = vsel %vm4317_vm12, 4294967295, %v7707_v39  ;;  %vm4325_vm8 = vmor %vm283_vm6, %vm7710_vm7  ;;  %vm326_vm7 = vcmp.eq.s32.totalorder %v7718_v63, %v3402_v20 }
 0x23b   : > { %7709 = vst [vmem:[#allocation23_spill] sm:$0xff] %v7708_v39  ;;  %vm4341_vm6 = vmor %vm4221_vm11, %vm7714_vm4  ;;  %vm7730_vm4 = vcmp.eq.s32.totalorder %v7706_v34, %v3402_v20  ;;  %vm7736_vm11 = vcmp.eq.s32.totalorder %v7704_v56, %v3402_v20  ;;  %v4458_v39 = vpop.permute.xlu1 %1061 }
 0x23c   : > { %v7716_v58 = vsel %vm4341_vm6, 4294967295, %v7715_v58  ;;  %vm4352_vm0 = vmor %vm4068_vm13, %vm7719_vm2  ;;  %vm327_vm13 = vcmp.eq.s32.totalorder %v7718_v63, %v3413_v12  ;;  %vm7726_vm2 = vcmp.eq.s32.totalorder %v7705_v22, %v3402_v20  ;;  %v7734_v63 = vmov 0 }
 0x23d   : > { %7717 = vst [vmem:[#allocation25_spill] sm:$0xff] %v7716_v58  ;;  %vm4366_vm5 = vmor %vm4251_vm3, %vm7723_vm15  ;;  %v4403_v58 = vld [vmem:[%s2895_s25 + $0xc8] sm:$0xff]  ;;  %vm7743_vm15 = vcmp.eq.s32.totalorder %v3387_v41, %v3413_v12  ;;  %vm7744_vm3 = vnez %v7644_v52  ;;  %v7753_v41 = vmov 0  ;;  %v4455_v52 = vld [vmem:[%s2895_s25 + $0xd0] sm:$0xff] }
 0x23e   : > { %v7725_v46 = vsel %vm4366_vm5, 4294967295, %v7724_v46  ;;  %vm4375_vm10 = vmor %vm326_vm7, %vm7726_vm2  ;;  %vm7733_vm7 = vcmp.eq.s32.totalorder %v1086_v33, %v3413_v12  ;;  %1312 = vperm.xlu1 %2693, %v4403_v58   ;;  %v7741_v33 = vmov 0  ;;  %7755 = vst [vmem:[#allocation30_spill] sm:$0xff] %v4455_v52  ;;  %1315 = vperm.xlu2 %2691, %v4455_v52   ;;  %v2717_v52 = vld [vmem:[%s2895_s25 + $0x48] sm:$0xff] }
 0x23f   : > { %v7728_v14 = vsel %vm4375_vm10, 4294967295, %v7727_v14  ;;  %vm4390_vm6 = vmor %vm4096_vm1, %vm7730_vm4  ;;  %vm7737_vm1 = vcmp.eq.s32.totalorder %v7691_v10, %v3402_v20  ;;  %1488 = vperm.xlu0 %2695, %v2717_v52   ;;  %v7925_v52 = vld [vmem:[#allocation7_spill] sm:$0xff] }
 0x240   : > { %vm4398_vm2 = vmor %vm4295_vm9, %vm7733_vm7  ;;  %vm7740_vm9 = vcmp.eq.s32.totalorder %v7705_v22, %v3413_v12  ;;  %v7749_v22 = vmov 0 }
 0x241   : > { %v7735_v63 = vsel %vm4398_vm2, 4294967295, %v7734_v63  ;;  %vm4412_vm4 = vmor %vm7737_vm1, %vm7736_vm11 }
 0x242   : > { %v7739_v19 = vsel %vm4412_vm4, 4294967295, %v7738_v19  ;;  %vm4419_vm7 = vmor %vm327_vm13, %vm7740_vm9  ;;  %vm7747_vm13 = vcmp.eq.s32.totalorder %v7713_v38, %v3402_v20  ;;  %vm7748_vm9 = vnez %v7637_v24  ;;  %v7758_v24 = vmov 0 }
 0x243   : > { %v7742_v33 = vsel %vm4419_vm7, 4294967295, %v7741_v33  ;;  %vm4428_vm12 = vmor %vm7744_vm3, %vm7743_vm15  ;;  %vm7751_vm3 = vcmp.eq.s32.totalorder %v7706_v34, %v3413_v12  ;;  %vm7752_vm15 = vnez %v7640_v44  ;;  %v7762_v44 = vmov 0  ;;  %v1092_v34 = vpop.permute.xlu2 %1091 }
 0x244   : > { %vm4441_vm2 = vmor %vm7748_vm9, %vm7747_vm13  ;;  %vm7756_vm13 = vcmp.eq.s32.totalorder %v7722_v13, %v3402_v20  ;;  %vm7757_vm9 = vnez %v7652_v49  ;;  %v7766_v49 = vmov 0  ;;  %vm7769_vm7 = vnez %v7674_v57  ;;  %v2719_v57 = vld [vmem:[%s2895_s25 + $0xe8] sm:$0xff] }
 0x245   : > { %v7750_v22 = vsel %vm4441_vm2, 4294967295, %v7749_v22  ;;  %vm4450_vm5 = vmor %vm7752_vm15, %vm7751_vm3  ;;  %vm7760_vm3 = vcmp.eq.s32.totalorder %v3394_v23, %v3402_v20  ;;  %vm7761_vm15 = vnez %v7661_v42  ;;  %v1095_v42 = vpop.permute.xlu0 %1094  ;;  %vm7781_vm4 = vnez %v7686_v45  ;;  %v7789_v45 = vld [vmem:[#allocation53_spill] sm:$0xff] }
 0x246   : > { %v7754_v41 = vsel %vm4450_vm5, 4294967295, %v7753_v41  ;;  %vm4465_vm1 = vmor %vm7757_vm9, %vm7756_vm13  ;;  %vm7764_vm5 = vcmp.eq.s32.totalorder %v7713_v38, %v3413_v12  ;;  %vm7765_vm13 = vnez %v7655_v17  ;;  %v7770_v38 = vmov 0  ;;  %v2718_v17 = vld [vmem:[%s2895_s25 + $0xe0] sm:$0xff]  ;;  %1324 = vperm.xlu2 %2691, %v2719_v57  }
 0x247   : > { %v7759_v24 = vsel %vm4465_vm1, 4294967295, %v7758_v24  ;;  %vm4474_vm11 = vmor %vm7761_vm15, %vm7760_vm3  ;;  %vm7768_vm15 = vcmp.eq.s32.totalorder %v3394_v23, %v3413_v12  ;;  %vm7776_vm3 = vcmp.eq.s32.totalorder %v7729_v61, %v3402_v20  ;;  %v7778_v23 = vmov 0  ;;  %1321 = vperm.xlu1 %2693, %v2718_v17   ;;  %v7847_v17 = vld [vmem:[#allocation9_spill] sm:$0xff] }
 0x248   : > { %v7763_v44 = vsel %vm4474_vm11, 4294967295, %v7762_v44  ;;  %vm4485_vm9 = vmor %vm7765_vm13, %vm7764_vm5  ;;  %vm7772_vm5 = vcmp.eq.s32.totalorder %v3399_v26, %v3402_v20  ;;  %vm7773_vm13 = vnez %v7678_v16  ;;  %v7788_v16 = vld [vmem:[#allocation29_spill] sm:$0xff]  ;;  %v7855_v57 = vmov 0 }
 0x249   : > { %v7767_v49 = vsel %vm4485_vm9, 4294967295, %v7766_v49  ;;  %vm4497_vm11 = vmor %vm7769_vm7, %vm7768_vm15  ;;  %vm7777_vm9 = vnez %v7666_v43  ;;  %vm1160_vm7 = vcmp.eq.s32.totalorder %v1092_v34, %v3402_v20  ;;  %v7782_v43 = vmov 0 }
 0x24a   : > { %v7771_v38 = vsel %vm4497_vm11, 4294967295, %v7770_v38  ;;  %vm4506_vm1 = vmor %vm7773_vm13, %vm7772_vm5  ;;  %vm287_vm11 = vcmp.eq.s32.totalorder %v7691_v10, %v3413_v12  ;;  %vm7780_vm13 = vcmp.eq.s32.totalorder %v3396_v6, %v3402_v20  ;;  %v8010_v10 = vmov 0 }
 0x24b   : > { %vm4515_vm2 = vmor %vm7777_vm9, %vm7776_vm3  ;;  %vm7784_vm9 = vcmp.eq.s32.totalorder %v3399_v26, %v3413_v12  ;;  %vm7785_vm3 = vnez %v7690_v48  ;;  %v7794_v48 = vmov 0  ;;  %v7892_v26 = vmov 0 }
 0x24c   : > { %v7779_v23 = vsel %vm4515_vm2, 4294967295, %v7778_v23  ;;  %vm4530_vm10 = vmor %vm7781_vm4, %vm7780_vm13  ;;  %vm7796_vm13 = vcmp.eq.s32.totalorder %v7704_v56, %v3413_v12  ;;  %vm7801_vm2 = vcmp.eq.s32.totalorder %v1092_v34, %v3413_v12  ;;  %v7819_v34 = vmov 0 }
 0x24d   : > { %v7783_v43 = vsel %vm4530_vm10, 4294967295, %v7782_v43  ;;  %vm4539_vm15 = vmor %vm7785_vm3, %vm7784_vm9  ;;  %vm7790_vm10 = vcmp.eq.s32.totalorder %v3396_v6, %v3413_v12  ;;  %vm7793_vm3 = vnez %v7695_v0  ;;  %v7799_v6 = vld [vmem:[#allocation55_spill] sm:$0xff]  ;;  %v7800_v0 = vld [vmem:[#allocation77_spill] sm:$0xff]  ;;  %v7915_v56 = vmov 0 }
 0x24e   : > { %vm4555_vm9 = vmor %vm4304_vm14, %vm7790_vm10 }
 0x24f   : > { %vm4561_vm5 = vmor %vm7793_vm3, %vm1160_vm7  ;;  %vm7811_vm7 = vcmp.eq.s32.totalorder %v7788_v16, %v3402_v20 }
 0x250   : > { %v7795_v48 = vsel %vm4561_vm5, 4294967295, %v7794_v48  ;;  %vm4569_vm4 = vmor %vm287_vm11, %vm7796_vm13  ;;  %vm7804_vm13 = vcmp.eq.s32.totalorder %v7722_v13, %v3413_v12  ;;  %v7812_v13 = vmov 0 }
 0x251   : > { %vm4585_vm11 = vmor %vm4428_vm12, %vm7801_vm2  ;;  %vm7807_vm2 = vcmp.eq.s32.totalorder %v1095_v42, %v3402_v20  ;;  %vm7821_vm12 = vcmp.eq.s32.totalorder %v7789_v45, %v3413_v12 }
 0x252   : > { %v7803_v62 = vsel %vm4585_vm11, 4294967295, %v7802_v62  ;;  %vm4594_vm10 = vmor %vm4325_vm8, %vm7804_vm13  ;;  %vm333_vm8 = vcmp.eq.s32.totalorder %v7788_v16, %v3413_v12  ;;  %vm7810_vm13 = vcmp.eq.s32.totalorder %v7789_v45, %v3402_v20  ;;  %v1071_v16 = vpop.permute.xlu1 %1070  ;;  %v1104_v45 = vpop.permute.xlu0 %1103 }
 0x253   : > { %vm4608_vm14 = vmor %vm4506_vm1, %vm7807_vm2  ;;  %vm7815_vm2 = vcmp.eq.s32.totalorder %v7729_v61, %v3413_v12  ;;  %v7822_v61 = vmov 0 }
 0x254   : > { %v7809_v25 = vsel %vm4608_vm14, 4294967295, %v7808_v25  ;;  %vm4620_vm3 = vmor %vm7811_vm7, %vm7810_vm13  ;;  %vm7818_vm7 = vcmp.eq.s32.totalorder %v1095_v42, %v3413_v12  ;;  %v7829_v42 = vmov 0  ;;  %vm7840_vm14 = vnez %v7754_v41 }
 0x255   : > { %v7813_v13 = vsel %vm4620_vm3, 4294967295, %v7812_v13  ;;  %vm4633_vm11 = vmor %vm4352_vm0, %vm7815_vm2  ;;  %vm7824_vm0 = vcmp.eq.s32.totalorder %v3408_v28, %v3402_v20  ;;  %v7311_v41 = vmov 7  }
 0x256   : > { %vm4641_vm13 = vmor %vm4539_vm15, %vm7818_vm7  ;;  %vm7827_vm7 = vcmp.eq.s32.totalorder %v7800_v0, %v3402_v20  ;;  %vm7835_vm15 = vcmp.eq.s32.totalorder %v3404_v9, %v3402_v20  ;;  %2698 = vset.pattern.permute.xlu0 %v7311_v41  ;;  %v7858_v41 = vmov 0 }
 0x257   : > { %v7820_v34 = vsel %vm4641_vm13, 4294967295, %v7819_v34  ;;  %vm4649_vm1 = vmor %vm333_vm8, %vm7821_vm12  ;;  %vm7828_vm12 = vnez %v7728_v14  ;;  %v7837_v14 = vmov 0  ;;  %vm7839_vm13 = vcmp.eq.s32.totalorder %v3408_v28, %v3413_v12  ;;  %v1101_v28 = vpop.permute.xlu2 %1100 }
 0x258   : > { %v7823_v61 = vsel %vm4649_vm1, 4294967295, %v7822_v61  ;;  %vm4658_vm2 = vmor %vm4390_vm6, %vm7824_vm0  ;;  %vm7831_vm6 = vcmp.eq.s32.totalorder %v7799_v6, %v3402_v20  ;;  %vm7832_vm0 = vnez %v7739_v19  ;;  %vm7881_vm3 = vcmp.eq.s32.totalorder %v1101_v28, %v3413_v12 }
 0x259   : > { %vm4669_vm8 = vmor %vm7828_vm12, %vm7827_vm7  ;;  %vm7836_vm7 = vnez %v7750_v22  ;;  %v7845_v22 = vmov 0  ;;  %v8085_v19 = vmov 0 }
 0x25a   : > { %v7830_v42 = vsel %vm4669_vm8, 4294967295, %v7829_v42  ;;  %vm4679_vm5 = vmor %vm7832_vm0, %vm7831_vm6  ;;  %vm7843_vm6 = vcmp.eq.s32.totalorder %v7800_v0, %v3413_v12  ;;  %vm7844_vm0 = vnez %v7742_v33  ;;  %v7848_v0 = vld [vmem:[#allocation34_spill] sm:$0xff]  ;;  %v7851_v33 = vmov 0 }
 0x25b   : > { %v7834_v32 = vsel %vm4679_vm5, 4294967295, %v7833_v32  ;;  %vm4688_vm12 = vmor %vm7836_vm7, %vm7835_vm15  ;;  %vm1146_vm15 = vcmp.eq.s32.totalorder %v1071_v16, %v3402_v20  ;;  %vm7853_vm7 = vcmp.eq.s32.totalorder %v7814_v54, %v3402_v20 }
 0x25c   : > { %v7838_v14 = vsel %vm4688_vm12, 4294967295, %v7837_v14  ;;  %vm4697_vm1 = vmor %vm7840_vm14, %vm7839_vm13  ;;  %vm7857_vm14 = vnez %v7763_v44  ;;  %v7867_v44 = vmov 0 }
 0x25d   : > { %vm4706_vm5 = vmor %vm7844_vm0, %vm7843_vm6  ;;  %vm7849_vm6 = vcmp.eq.s32.totalorder %v3404_v9, %v3413_v12  ;;  %vm7850_vm0 = vnez %v7767_v49  ;;  %v2720_v9 = vld [vmem:[%s2895_s25] sm:$0xff]  ;;  %v7870_v49 = vld [vmem:[#allocation35_spill] sm:$0xff] }
 0x25e   : > { %v7846_v22 = vsel %vm4706_vm5, 4294967295, %v7845_v22  ;;  %vm4722_vm12 = vmor %vm7850_vm0, %vm7849_vm6  ;;  %vm7854_vm5 = vnez %v7759_v24  ;;  %vm1166_vm6 = vcmp.eq.s32.totalorder %v1101_v28, %v3402_v20  ;;  %1685 = vperm.xlu0 %2698, %v2720_v9   ;;  %v7863_v24 = vmov 0 }
 0x25f   : > { %v7852_v33 = vsel %vm4722_vm12, 4294967295, %v7851_v33  ;;  %vm4731_vm8 = vmor %vm7854_vm5, %vm7853_vm7  ;;  %vm7865_vm0 = vcmp.eq.s32.totalorder %v1071_v16, %v3413_v12  ;;  %vm7877_vm7 = vcmp.eq.s32.totalorder %v7847_v17, %v3402_v20  ;;  %v7882_v16 = vmov 0 }
 0x260   : > { %v7856_v57 = vsel %vm4731_vm8, 4294967295, %v7855_v57  ;;  %vm4737_vm13 = vmor %vm7857_vm14, %vm1146_vm15  ;;  %vm7861_vm15 = vcmp.eq.s32.totalorder %v3410_v29, %v3402_v20  ;;  %vm7862_vm14 = vnez %v7779_v23  ;;  %vm7866_vm8 = vnez %v7771_v38 }
 0x261   : > { %v7859_v41 = vsel %vm4737_vm13, 4294967295, %v7858_v41  ;;  %vm4755_vm13 = vmor %vm7862_vm14, %vm7861_vm15  ;;  %vm7872_vm14 = vnez %v7783_v43  ;;  %v7873_v23 = vmov 0  ;;  %v7880_v43 = vld [vmem:[#allocation80_spill] sm:$0xff]  ;;  %v7982_v38 = vmov 0 }
 0x262   : > { %7860 = vst [vmem:[#allocation45_spill] sm:$0xff] %v7859_v41  ;;  %v7864_v24 = vsel %vm4755_vm13, 4294967295, %v7863_v24  ;;  %vm4763_vm12 = vmor %vm7866_vm8, %vm7865_vm0  ;;  %v7871_v41 = vld [vmem:[#allocation56_spill] sm:$0xff]  ;;  %vm7876_vm0 = vcmp.eq.s32.totalorder %v7848_v0, %v3402_v20  ;;  %vm7888_vm8 = vcmp.eq.s32.totalorder %v7847_v17, %v3413_v12  ;;  %v7895_v17 = vmov 0 }
 0x263   : > { %v7868_v44 = vsel %vm4763_vm12, 4294967295, %v7867_v44  ;;  %vm4776_vm13 = vmor %vm7872_vm14, %vm1166_vm6  ;;  %vm7887_vm14 = vcmp.eq.s32.totalorder %v7848_v0, %v3413_v12  ;;  %v7997_v28 = vmov 0  ;;  %v8013_v0 = vmov 0 }
 0x264   : > { %7869 = vst [vmem:[#allocation66_spill] sm:$0xff] %v7868_v44  ;;  %v7874_v23 = vsel %vm4776_vm13, 4294967295, %v7873_v23  ;;  %vm4787_vm5 = vmor %vm7877_vm7, %vm7876_vm0  ;;  %v7886_v44 = vld [vmem:[#allocation32_spill] sm:$0xff]  ;;  %vm7900_vm13 = vcmp.eq.s32.totalorder %v7871_v41, %v3402_v20 }
 0x265   : > { %7875 = vst [vmem:[#allocation51_spill] sm:$0xff] %v7874_v23  ;;  %vm4803_vm7 = vmor %vm4555_vm9, %vm7881_vm3  ;;  %v7885_v23 = vld [vmem:[#allocation11_spill] sm:$0xff]  ;;  %vm338_vm6 = vcmp.eq.s32.totalorder %v7886_v44, %v3402_v20  ;;  %vm7891_vm9 = vcmp.eq.s32.totalorder %v7799_v6, %v3413_v12  ;;  %v8017_v6 = vmov 0 }
 0x266   : > { %v7883_v16 = vsel %vm4803_vm7, 4294967295, %v7882_v16  ;;  %vm280_vm0 = vcmp.eq.s32.totalorder %v7885_v23, %v3402_v20  ;;  %vm4817_vm15 = vmor %vm7888_vm8, %vm7887_vm14  ;;  %vm7894_vm8 = vcmp.eq.s32.totalorder %v1104_v45, %v3402_v20  ;;  %vm7897_vm7 = vcmp.eq.s32.totalorder %v7870_v49, %v3402_v20 }
 0x267   : > { %7884 = vst [vmem:[#allocation46_spill] sm:$0xff] %v7883_v16  ;;  %vm4826_vm3 = vmor %vm4569_vm4, %vm7891_vm9  ;;  %vm281_vm4 = vcmp.eq.s32.totalorder %v7885_v23, %v3413_v12  ;;  %vm339_vm9 = vcmp.eq.s32.totalorder %v7886_v44, %v3413_v12  ;;  %v7908_v44 = vmov 0  ;;  %v2721_v23 = vld [vmem:[%s2895_s25 + $0xf8] sm:$0xff]  ;;  %v1241_v16 = vpop.permute.xlu0 %1240 }
 0x268   : > { %v7893_v26 = vsel %vm4826_vm3, 4294967295, %v7892_v26  ;;  %vm4838_vm14 = vmor %vm4658_vm2, %vm7894_vm8  ;;  %vm7904_vm3 = vcmp.eq.s32.totalorder %v7814_v54, %v3413_v12  ;;  %1330 = vperm.xlu1 %2693, %v2721_v23   ;;  %v7912_v54 = vmov 0  ;;  %v7935_v23 = vld [vmem:[#allocation36_spill] sm:$0xff] }
 0x269   : > { %v7896_v17 = vsel %vm4838_vm14, 4294967295, %v7895_v17  ;;  %vm4849_vm12 = vmor %vm280_vm0, %vm7897_vm7  ;;  %vm7911_vm0 = vcmp.eq.s32.totalorder %v7870_v49, %v3413_v12  ;;  %v7928_v49 = vmov 0 }
 0x26a   : > { %vm4856_vm2 = vmor %vm338_vm6, %vm7900_vm13  ;;  %vm7907_vm13 = vcmp.eq.s32.totalorder %v1104_v45, %v3413_v12  ;;  %v7924_v45 = vmov 6  }
 0x26b   : > { %vm4869_vm7 = vmor %vm4594_vm10, %vm7904_vm3  ;;  %vm7914_vm10 = vcmp.eq.s32.totalorder %v7871_v41, %v3413_v12  ;;  %v7922_v41 = vmov 0  ;;  %2694 = vset.pattern.permute.xlu2 %v7924_v45 }
 0x26c   : > { %vm4877_vm6 = vmor %vm4697_vm1, %vm7907_vm13  ;;  %vm7917_vm1 = vcmp.eq.s32.totalorder %v3410_v29, %v3413_v12  ;;  %v1080_v29 = vpop.permute.xlu1 %1079  ;;  %1461 = vperm.xlu2 %2694, %v2720_v9   ;;  %v7942_v9 = vmov 0 }
 0x26d   : > { %v7909_v44 = vsel %vm4877_vm6, 4294967295, %v7908_v44  ;;  %vm4885_vm8 = vmor %vm281_vm4, %vm7911_vm0  ;;  %vm7920_vm0 = vcmp.eq.s32.totalorder %v7880_v43, %v3402_v20  ;;  %vm7927_vm4 = vnez %v7830_v42  ;;  %v7934_v42 = vld [vmem:[#allocation10_spill] sm:$0xff] }
 0x26e   : > { %7910 = vst [vmem:[#allocation73_spill] sm:$0xff] %v7909_v44  ;;  %v7913_v54 = vsel %vm4885_vm8, 4294967295, %v7912_v54  ;;  %vm4892_vm3 = vmor %vm339_vm9, %vm7914_vm10  ;;  %vm7921_vm9 = vnez %v7813_v13  ;;  %v7932_v13 = vmov 0  ;;  %v7948_v44 = vld [vmem:[#allocation57_spill] sm:$0xff] }
 0x26f   : > { %v7916_v56 = vsel %vm4892_vm3, 4294967295, %v7915_v56  ;;  %vm4901_vm13 = vmor %vm4633_vm11, %vm7917_vm1  ;;  %vm7926_vm1 = vcmp.eq.s32.totalorder %v3428_v3, %v3402_v20  ;;  %vm1152_vm11 = vcmp.eq.s32.totalorder %v1080_v29, %v3402_v20 }
 0x270   : > { %vm4912_vm10 = vmor %vm7921_vm9, %vm7920_vm0  ;;  %vm7930_vm0 = vcmp.eq.s32.totalorder %v7880_v43, %v3413_v12  ;;  %vm7931_vm9 = vnez %v7823_v61  ;;  %v7938_v61 = vmov 0  ;;  %v7945_v43 = vmov 0  ;;  %2696 = vset.pattern.permute.xlu1 %v7924_v45 }
 0x271   : > { %v7923_v41 = vsel %vm4912_vm10, 4294967295, %v7922_v41  ;;  %vm4924_vm14 = vmor %vm7927_vm4, %vm7926_vm1  ;;  %vm7940_vm4 = vcmp.eq.s32.totalorder %v7903_v59, %v3402_v20  ;;  %vm7941_vm1 = vnez %v7834_v32  ;;  %v7951_v32 = vmov 0 }
 0x272   : > { %v7929_v49 = vsel %vm4924_vm14, 4294967295, %v7928_v49  ;;  %vm4933_vm6 = vmor %vm7931_vm9, %vm7930_vm0  ;;  %vm7936_vm9 = vcmp.eq.s32.totalorder %v3428_v3, %v3413_v12  ;;  %vm7944_vm0 = vnez %v7838_v14  ;;  %v1238_v3 = vpop.permute.xlu2 %1237  ;;  %v7955_v14 = vmov 0 }
 0x273   : > { %v7933_v13 = vsel %vm4933_vm6, 4294967295, %v7932_v13  ;;  %vm7937_vm6 = vnez %v7846_v22  ;;  %vm4961_vm3 = vmor %vm7941_vm1, %vm7940_vm4  ;;  %v4972_v22 = vld [vmem:[%s2895_s25 + $0x88] sm:$0xff]  ;;  %vm7949_vm4 = vcmp.eq.s32.totalorder %v3436_v15, %v3402_v20  ;;  %vm7950_vm1 = vnez %v7856_v57  ;;  %v7958_v57 = vld [vmem:[#allocation37_spill] sm:$0xff] }
 0x274   : > { %vm4952_vm10 = vmor %vm7937_vm6, %vm7936_vm9  ;;  %v7943_v9 = vsel %vm4961_vm3, 4294967295, %v7942_v9  ;;  %1736 = vperm.xlu0 %2698, %v4972_v22   ;;  %vm1333_vm6 = vcmp.eq.s32.totalorder %v1238_v3, %v3413_v12  ;;  %vm7963_vm3 = vcmp.eq.s32.totalorder %v7935_v23, %v3402_v20 }
 0x275   : > { %v7939_v61 = vsel %vm4952_vm10, 4294967295, %v7938_v61  ;;  %vm4967_vm14 = vmor %vm7944_vm0, %vm1152_vm11  ;;  %vm7953_vm11 = vcmp.eq.s32.totalorder %v1080_v29, %v3413_v12  ;;  %vm7954_vm0 = vnez %v7852_v33  ;;  %vm1332_vm10 = vcmp.eq.s32.totalorder %v1238_v3, %v3402_v20  ;;  %v7968_v3 = vld [vmem:[#allocation82_spill] sm:$0xff] }
 0x276   : > { %v7946_v43 = vsel %vm4967_vm14, 4294967295, %v7945_v43  ;;  %vm4982_vm9 = vmor %vm7950_vm1, %vm7949_vm4  ;;  %v7960_v33 = vmov 0  ;;  %vm7964_vm4 = vcmp.eq.s32.totalorder %v7934_v42, %v3402_v20  ;;  %v8064_v29 = vmov 0 }
 0x277   : > { %7947 = vst [vmem:[#allocation69_spill] sm:$0xff] %v7946_v43  ;;  %v7952_v32 = vsel %vm4982_vm9, 4294967295, %v7951_v32  ;;  %vm4990_vm14 = vmor %vm7954_vm0, %vm7953_vm11  ;;  %vm7959_vm11 = vnez %v7864_v24  ;;  %v7967_v24 = vld [vmem:[#allocation58_spill] sm:$0xff] }
 0x278   : > { %v7956_v14 = vsel %vm4990_vm14, 4294967295, %v7955_v14  ;;  %vm5005_vm0 = vmor %vm7959_vm11, %vm1332_vm10  ;;  %v7976_v43 = vld [vmem:[#allocation38_spill] sm:$0xff]  ;;  %vm7977_vm14 = vcmp.eq.s32.totalorder %v7948_v44, %v3402_v20  ;;  %vm7980_vm11 = vcmp.eq.s32.totalorder %v1241_v16, %v3402_v20  ;;  %vm7981_vm10 = vnez %v7437_v2 }
 0x279   : > { %7957 = vst [vmem:[#allocation22_spill] sm:$0xff] %v7956_v14  ;;  %v7961_v33 = vsel %vm5005_vm0, 4294967295, %v7960_v33  ;;  %vm5016_vm8 = vmor %vm7964_vm4, %vm7963_vm3  ;;  %vm7972_vm3 = vcmp.eq.s32.totalorder %v7935_v23, %v3413_v12  ;;  %vm7973_vm4 = vcmp.eq.s32.totalorder %v7934_v42, %v3413_v12  ;;  %v7986_v42 = vmov 0 }
 0x27a   : > { %7962 = vst [vmem:[#allocation14_spill] sm:$0xff] %v7961_v33  ;;  %vm5030_vm1 = vmor %vm4901_vm13, %vm1333_vm6  ;;  %v7969_v33 = vmov 0  ;;  %v8021_v23 = vmov 0  ;;  %v8074_v14 = vmov 0  ;;  %v8099_v2 = vmov 0 }
 0x27b   : > { %v7970_v33 = vsel %vm5030_vm1, 4294967295, %v7969_v33  ;;  %vm5040_vm9 = vmor %vm7973_vm4, %vm7972_vm3  ;;  %vm7985_vm3 = vcmp.eq.s32.totalorder %v7925_v52, %v3402_v20  ;;  %vm7988_vm4 = vcmp.eq.s32.totalorder %v7948_v44, %v3413_v12  ;;  %vm7991_vm1 = vcmp.eq.s32.totalorder %v7903_v59, %v3413_v12  ;;  %v7999_v44 = vld [vmem:[#allocation13_spill] sm:$0xff]  ;;  %v5149_v59 = vld [vmem:[%s2895_s25 + $0x10] sm:$0xff] }
 0x27c   : > { %7971 = vst [vmem:[#allocation24_spill] sm:$0xff] %v7970_v33  ;;  %vm5051_vm13 = vmor %vm4787_vm5, %vm7977_vm14  ;;  %vm285_vm5 = vcmp.eq.s32.totalorder %v7925_v52, %v3413_v12  ;;  %vm7984_vm14 = vcmp.eq.s32.totalorder %v7958_v57, %v3402_v20  ;;  %1467 = vperm.xlu1 %2696, %v5149_v59   ;;  %v8043_v33 = vld [vmem:[#allocation39_spill] sm:$0xff]  ;;  %v8095_v52 = vmov 0 }
 0x27d   : > { %vm5065_vm0 = vmor %vm7981_vm10, %vm7980_vm11  ;;  %vm8003_vm11 = vcmp.eq.s32.totalorder %v7967_v24, %v3402_v20 }
 0x27e   : > { %v7983_v38 = vsel %vm5065_vm0, 4294967295, %v7982_v38  ;;  %vm5077_vm6 = vmor %vm7985_vm3, %vm7984_vm14  ;;  %vm7992_vm3 = vnez %v7893_v26  ;;  %vm7995_vm0 = vcmp.eq.s32.totalorder %v1241_v16, %v3413_v12  ;;  %v8001_v26 = vmov 0  ;;  %v8156_v16 = vld [vmem:[#allocation87_spill] sm:$0xff] }
 0x27f   : > { %v7987_v42 = vsel %vm5077_vm6, 4294967295, %v7986_v42  ;;  %vm5086_vm10 = vmor %vm4817_vm15, %vm7988_vm4  ;;  %vm7996_vm6 = vnez %v7439_v5  ;;  %vm304_vm4 = vcmp.eq.s32.totalorder %v7999_v44, %v3402_v20  ;;  %v8004_v5 = vmov 0 }
 0x280   : > { %vm5097_vm14 = vmor %vm7992_vm3, %vm7991_vm1  ;;  %vm8000_vm1 = vcmp.eq.s32.totalorder %v7958_v57, %v3413_v12  ;;  %v5189_v57 = vld [vmem:[%s2895_s25 + $0x18] sm:$0xff] }
 0x281   : > { %vm5105_vm15 = vmor %vm7996_vm6, %vm7995_vm0  ;;  %vm8006_vm6 = vcmp.eq.s32.totalorder %v3436_v15, %v3413_v12  ;;  %v1089_v15 = vpop.permute.xlu1 %1088  ;;  %1470 = vperm.xlu2 %2694, %v5189_v57  }
 0x282   : > { %v7998_v28 = vsel %vm5105_vm15, 4294967295, %v7997_v28  ;;  %vm5115_vm3 = vmor %vm285_vm5, %vm8000_vm1  ;;  %vm8009_vm1 = vcmp.eq.s32.totalorder %v7968_v3, %v3402_v20  ;;  %vm8019_vm5 = vcmp.eq.s32.totalorder %v3461_v18, %v3402_v20 }
 0x283   : > { %v8002_v26 = vsel %vm5115_vm3, 4294967295, %v8001_v26  ;;  %vm5124_vm0 = vmor %vm4849_vm12, %vm8003_vm11  ;;  %vm8055_vm3 = vcmp.eq.s32.totalorder %v7999_v44, %v3413_v12  ;;  %v8163_v44 = vmov 0 }
 0x284   : > { %v8005_v5 = vsel %vm5124_vm0, 4294967295, %v8004_v5  ;;  %vm5133_vm15 = vmor %vm4869_vm7, %vm8006_vm6  ;;  %vm8012_vm7 = vcmp.eq.s32.totalorder %v7976_v43, %v3402_v20  ;;  %vm8015_vm6 = vcmp.eq.s32.totalorder %v7967_v24, %v3413_v12  ;;  %vm8020_vm0 = vnez %v7923_v41  ;;  %v1247_v24 = vpop.permute.xlu2 %1246 }
 0x285   : > { %vm5144_vm12 = vmor %vm4856_vm2, %vm8009_vm1  ;;  %vm8016_vm2 = vnez %v7913_v54  ;;  %v8025_v54 = vmov 0  ;;  %v8032_v41 = vmov 0 }
 0x286   : > { %v8011_v10 = vsel %vm5144_vm12, 4294967295, %v8010_v10  ;;  %vm5155_vm11 = vmor %vm304_vm4, %vm8012_vm7  ;;  %vm8023_vm4 = vcmp.eq.s32.totalorder %v7968_v3, %v3413_v12  ;;  %vm8024_vm7 = vnez %v7916_v56  ;;  %v8029_v56 = vmov 0  ;;  %v5212_v3 = vld [vmem:[%s2895_s25 + $0x90] sm:$0xff] }
 0x287   : > { %v8014_v0 = vsel %vm5155_vm11, 4294967295, %v8013_v0  ;;  %vm5164_vm1 = vmor %vm8016_vm2, %vm8015_vm6  ;;  %vm1158_vm6 = vcmp.eq.s32.totalorder %v1089_v15, %v3402_v20  ;;  %vm1159_vm2 = vcmp.eq.s32.totalorder %v1089_v15, %v3413_v12  ;;  %1739 = vperm.xlu0 %2698, %v5212_v3   ;;  %v1256_v15 = vpop.permute.xlu0 %1255 }
 0x288   : > { %v8018_v6 = vsel %vm5164_vm1, 4294967295, %v8017_v6  ;;  %vm5173_vm12 = vmor %vm8020_vm0, %vm8019_vm5  ;;  %vm8031_vm1 = vnez %v7929_v49  ;;  %vm8054_vm0 = vcmp.eq.s32.totalorder %v7976_v43, %v3413_v12  ;;  %v8061_v43 = vld [vmem:[#allocation84_spill] sm:$0xff]  ;;  %v8130_v49 = vmov 0 }
 0x289   : > { %v8022_v23 = vsel %vm5173_vm12, 4294967295, %v8021_v23  ;;  %vm5182_vm11 = vmor %vm8024_vm7, %vm8023_vm4  ;;  %vm8027_vm4 = vcmp.eq.s32.totalorder %v3461_v18, %v3413_v12  ;;  %vm8028_vm7 = vnez %v7933_v13  ;;  %v8034_v18 = vld [vmem:[#allocation59_spill] sm:$0xff]  ;;  %v8040_v13 = vmov 0 }
 0x28a   : > { %v8026_v54 = vsel %vm5182_vm11, 4294967295, %v8025_v54  ;;  %vm5201_vm12 = vmor %vm8028_vm7, %vm8027_vm4  ;;  %vm8035_vm4 = vcmp.eq.s32.totalorder %v3469_v37, %v3402_v20  ;;  %vm8036_vm7 = vnez %v7943_v9  ;;  %v8044_v9 = vld [vmem:[#allocation83_spill] sm:$0xff] }
 0x28b   : > { %v8030_v56 = vsel %vm5201_vm12, 4294967295, %v8029_v56  ;;  %vm5207_vm11 = vmor %vm8031_vm1, %vm1158_vm6  ;;  %vm8039_vm1 = vnez %v7939_v61  ;;  %vm1339_vm12 = vcmp.eq.s32.totalorder %v1247_v24, %v3413_v12  ;;  %v8046_v61 = vmov 0 }
 0x28c   : > { %v8033_v41 = vsel %vm5207_vm11, 4294967295, %v8032_v41  ;;  %vm5222_vm5 = vmor %vm8036_vm7, %vm8035_vm4  ;;  %vm1338_vm11 = vcmp.eq.s32.totalorder %v1247_v24, %v3402_v20  ;;  %v8049_v24 = vld [vmem:[#allocation60_spill] sm:$0xff]  ;;  %vm8058_vm4 = vcmp.eq.s32.totalorder %v8034_v18, %v3402_v20  ;;  %vm8069_vm7 = vcmp.eq.s32.totalorder %v8034_v18, %v3413_v12 }
 0x28d   : > { %vm5228_vm6 = vmor %vm8039_vm1, %vm1159_vm2  ;;  %vm8045_vm2 = vnez %v7952_v32  ;;  %v8050_v32 = vmov 0  ;;  %v8078_v18 = vmov 0 }
 0x28e   : > { %v8041_v13 = vsel %vm5228_vm6, 4294967295, %v8040_v13  ;;  %vm5243_vm1 = vmor %vm8045_vm2, %vm1338_vm11 }
 0x28f   : > { %8042 = vst [vmem:[#allocation28_spill] sm:$0xff] %v8041_v13  ;;  %v8047_v61 = vsel %vm5243_vm1, 4294967295, %v8046_v61  ;;  %vm5258_vm11 = vmor %vm5133_vm15, %vm1339_vm12  ;;  %vm8063_vm1 = vnez %v7441_v1  ;;  %v8070_v1 = vmov 0  ;;  %1742 = vperm.xlu0 %2698, %v3884_v31   ;;  %v8124_v31 = vld [vmem:[#allocation85_spill] sm:$0xff]  ;;  %v8151_v13 = vmov 0 }
 0x290   : > { %8048 = vst [vmem:[#allocation33_spill] sm:$0xff] %v8047_v61  ;;  %v8051_v32 = vsel %vm5258_vm11, 4294967295, %v8050_v32  ;;  %v8053_v61 = vld [vmem:[#allocation16_spill] sm:$0xff]  ;;  %vm5270_vm6 = vmor %vm8055_vm3, %vm8054_vm0  ;;  %vm8062_vm0 = vcmp.eq.s32.totalorder %v1256_v15, %v3402_v20 }
 0x291   : > { %8052 = vst [vmem:[#allocation54_spill] sm:$0xff] %v8051_v32  ;;  %vm290_vm2 = vcmp.eq.s32.totalorder %v8053_v61, %v3402_v20  ;;  %vm5279_vm15 = vmor %vm5016_vm8, %vm8058_vm4  ;;  %vm291_vm8 = vcmp.eq.s32.totalorder %v8053_v61, %v3413_v12  ;;  %vm8066_vm4 = vcmp.eq.s32.totalorder %v8043_v33, %v3402_v20  ;;  %v8072_v32 = vld [vmem:[#allocation61_spill] sm:$0xff]  ;;  %v8081_v61 = vmov 0 }
 0x292   : > { %vm5293_vm11 = vmor %vm8063_vm1, %vm8062_vm0  ;;  %vm8080_vm0 = vcmp.eq.s32.totalorder %v8043_v33, %v3413_v12  ;;  %v8091_v33 = vmov 0 }
 0x293   : > { %v8065_v29 = vsel %vm5293_vm11, 4294967295, %v8064_v29  ;;  %vm5302_vm12 = vmor %vm290_vm2, %vm8066_vm4  ;;  %vm8073_vm4 = vcmp.eq.s32.totalorder %v8044_v9, %v3402_v20 }
 0x294   : > { %vm5311_vm3 = vmor %vm5040_vm9, %vm8069_vm7  ;;  %vm8076_vm9 = vcmp.eq.s32.totalorder %v1256_v15, %v3413_v12  ;;  %vm8077_vm7 = vnez %v7443_v4  ;;  %v5406_v15 = vld [vmem:[%s2895_s25 + $0x28] sm:$0xff] }
 0x295   : > { %v8071_v1 = vsel %vm5311_vm3, 4294967295, %v8070_v1  ;;  %vm5326_vm11 = vmor %vm5051_vm13, %vm8073_vm4  ;;  %vm8083_vm13 = vcmp.eq.s32.totalorder %v8049_v24, %v3402_v20  ;;  %vm8084_vm4 = vnez %v7987_v42  ;;  %v5373_v42 = vld [vmem:[%s2895_s25 + $0x20] sm:$0xff]  ;;  %1476 = vperm.xlu2 %2694, %v5406_v15   ;;  %v8135_v4 = vld [vmem:[#allocation86_spill] sm:$0xff] }
 0x296   : > { %v8075_v14 = vsel %vm5326_vm11, 4294967295, %v8074_v14  ;;  %vm5334_vm1 = vmor %vm8077_vm7, %vm8076_vm9  ;;  %vm8087_vm9 = vcmp.eq.s32.totalorder %v3469_v37, %v3413_v12  ;;  %1473 = vperm.xlu1 %2696, %v5373_v42   ;;  %v1098_v37 = vpop.permute.xlu1 %1097 }
 0x297   : > { %v8079_v18 = vsel %vm5334_vm1, 4294967295, %v8078_v18  ;;  %vm5341_vm2 = vmor %vm291_vm8, %vm8080_vm0  ;;  %vm8090_vm8 = vcmp.eq.s32.totalorder %v8044_v9, %v3413_v12  ;;  %vm8101_vm1 = vcmp.eq.s32.totalorder %v8061_v43, %v3402_v20  ;;  %v8118_v9 = vmov 0  ;;  %1745 = vperm.xlu0 %2698, %v3942_v55  }
 0x298   : > { %v8082_v61 = vsel %vm5341_vm2, 4294967295, %v8081_v61  ;;  %vm5350_vm3 = vmor %vm8084_vm4, %vm8083_vm13  ;;  %vm8094_vm13 = vnez %v8002_v26  ;;  %v8103_v26 = vmov 0  ;;  %vm8114_vm2 = vnez %v8018_v6 }
 0x299   : > { %v8086_v19 = vsel %vm5350_vm3, 4294967295, %v8085_v19  ;;  %vm5359_vm7 = vmor %vm5097_vm14, %vm8087_vm9  ;;  %vm8093_vm14 = vcmp.eq.s32.totalorder %v8049_v24, %v3413_v12  ;;  %vm8098_vm9 = vnez %v8011_v10  ;;  %vm8102_vm3 = vnez %v8005_v5  ;;  %v8120_v24 = vld [vmem:[#allocation40_spill] sm:$0xff] }
 0x29a   : > { %vm5368_vm0 = vmor %vm5086_vm10, %vm8090_vm8  ;;  %vm8097_vm10 = vcmp.eq.s32.totalorder %v3494_v21, %v3402_v20  ;;  %v8111_v5 = vmov 0  ;;  %v8122_v6 = vmov 0  ;;  %v8193_v55 = vmov 0 }
 0x29b   : > { %v8092_v33 = vsel %vm5368_vm0, 4294967295, %v8091_v33  ;;  %vm5381_vm4 = vmor %vm8094_vm13, %vm8093_vm14  ;;  %vm1164_vm14 = vcmp.eq.s32.totalorder %v1098_v37, %v3402_v20  ;;  %vm1165_vm13 = vcmp.eq.s32.totalorder %v1098_v37, %v3413_v12  ;;  %v8199_v10 = vmov 0 }
 0x29c   : > { %v8096_v52 = vsel %vm5381_vm4, 4294967295, %v8095_v52  ;;  %vm5390_vm8 = vmor %vm8098_vm9, %vm8097_vm10  ;;  %vm8105_vm10 = vcmp.eq.s32.totalorder %v8072_v32, %v3402_v20  ;;  %vm8106_vm9 = vnez %v8014_v0  ;;  %v8202_v0 = vmov 0 }
 0x29d   : > { %v8100_v2 = vsel %vm5390_vm8, 4294967295, %v8099_v2  ;;  %vm5399_vm0 = vmor %vm8102_vm3, %vm8101_vm1  ;;  %vm8109_vm3 = vcmp.eq.s32.totalorder %v3494_v21, %v3413_v12  ;;  %vm8110_vm1 = vnez %v8026_v54  ;;  %v1253_v21 = vpop.permute.xlu2 %1252  ;;  %v1265_v54 = vpop.permute.xlu0 %1264  ;;  %v8270_v37 = vmov 0 }
 0x29e   : > { %v8104_v26 = vsel %vm5399_vm0, 4294967295, %v8103_v26  ;;  %vm5414_vm8 = vmor %vm8106_vm9, %vm8105_vm10  ;;  %vm8113_vm0 = vcmp.eq.s32.totalorder %v8061_v43, %v3413_v12  ;;  %vm8117_vm10 = vnez %v8022_v23  ;;  %v8125_v23 = vmov 0  ;;  %v8129_v43 = vld [vmem:[#allocation62_spill] sm:$0xff] }
 0x29f   : > { %vm5423_vm4 = vmor %vm8110_vm1, %vm8109_vm3  ;;  %vm8121_vm1 = vnez %v8030_v56  ;;  %v8128_v56 = vld [vmem:[#allocation15_spill] sm:$0xff]  ;;  %vm8136_vm3 = vcmp.eq.s32.totalorder %v1265_v54, %v3402_v20 }
 0x2a0   : > { %v8112_v5 = vsel %vm5423_vm4, 4294967295, %v8111_v5  ;;  %vm5432_vm11 = vmor %vm8114_vm2, %vm8113_vm0  ;;  %vm1342_vm2 = vcmp.eq.s32.totalorder %v1253_v21, %v3402_v20  ;;  %vm1343_vm0 = vcmp.eq.s32.totalorder %v1253_v21, %v3413_v12  ;;  %v8138_v21 = vmov 0 }
 0x2a1   : > { %vm5438_vm9 = vmor %vm8117_vm10, %vm1164_vm14  ;;  %vm310_vm14 = vcmp.eq.s32.totalorder %v8128_v56, %v3402_v20  ;;  %vm8137_vm10 = vnez %v7445_v7  ;;  %v8147_v7 = vmov 0 }
 0x2a2   : > { %v8119_v9 = vsel %vm5438_vm9, 4294967295, %v8118_v9  ;;  %vm5447_vm4 = vmor %vm8121_vm1, %vm1165_vm13  ;;  %vm8132_vm1 = vcmp.eq.s32.totalorder %v8120_v24, %v3402_v20 }
 0x2a3   : > { %v8123_v6 = vsel %vm5447_vm4, 4294967295, %v8122_v6  ;;  %vm5462_vm13 = vmor %vm5222_vm5, %vm1342_vm2  ;;  %vm311_vm2 = vcmp.eq.s32.totalorder %v8128_v56, %v3413_v12  ;;  %v5753_v56 = vld [vmem:[%s2895_s25 + $0x50] sm:$0xff] }
 0x2a4   : > { %v8126_v23 = vsel %vm5462_vm13, 4294967295, %v8125_v23  ;;  %vm5477_vm5 = vmor %vm5359_vm7, %vm1343_vm0  ;;  %vm8143_vm7 = vcmp.eq.s32.totalorder %v8072_v32, %v3413_v12  ;;  %v8154_v32 = vmov 0 }
 0x2a5   : > { %8127 = vst [vmem:[#allocation47_spill] sm:$0xff] %v8126_v23  ;;  %v8131_v49 = vsel %vm5477_vm5, 4294967295, %v8130_v49  ;;  %vm5486_vm13 = vmor %vm310_vm14, %vm8132_vm1  ;;  %vm8140_vm14 = vcmp.eq.s32.totalorder %v8120_v24, %v3413_v12  ;;  %v8144_v23 = vmov 0  ;;  %v8167_v24 = vmov 0 }
 0x2a6   : > { %vm5500_vm5 = vmor %vm8137_vm10, %vm8136_vm3  ;;  %vm8153_vm3 = vcmp.eq.s32.totalorder %v8129_v43, %v3402_v20 }
 0x2a7   : > { %v8139_v21 = vsel %vm5500_vm5, 4294967295, %v8138_v21  ;;  %vm5507_vm1 = vmor %vm311_vm2, %vm8140_vm14  ;;  %vm8146_vm2 = vcmp.eq.s32.totalorder %v8124_v31, %v3402_v20 }
 0x2a8   : > { %vm5516_vm0 = vmor %vm5270_vm6, %vm8143_vm7  ;;  %vm8149_vm6 = vcmp.eq.s32.totalorder %v1265_v54, %v3413_v12  ;;  %vm8150_vm7 = vnez %v7447_v8  ;;  %v5573_v54 = vld [vmem:[%s2895_s25 + $0x38] sm:$0xff] }
 0x2a9   : > { %v8145_v23 = vsel %vm5516_vm0, 4294967295, %v8144_v23  ;;  %vm5529_vm14 = vmor %vm5279_vm15, %vm8146_vm2  ;;  %vm8157_vm2 = vcmp.eq.s32.totalorder %v3502_v35, %v3402_v20  ;;  %1482 = vperm.xlu1 %2696, %v5573_v54   ;;  %vm8185_vm0 = vnez %v8100_v2  ;;  %v8196_v2 = vmov 0  ;;  %v8207_v8 = vld [vmem:[#allocation88_spill] sm:$0xff] }
 0x2aa   : > { %v8148_v7 = vsel %vm5529_vm14, 4294967295, %v8147_v7  ;;  %vm5537_vm9 = vmor %vm8150_vm7, %vm8149_vm6  ;;  %vm8158_vm6 = vnez %v8075_v14  ;;  %v1107_v14 = vpop.permute.xlu1 %1106 }
 0x2ab   : > { %v8152_v13 = vsel %vm5537_vm9, 4294967295, %v8151_v13  ;;  %vm5546_vm10 = vmor %vm5302_vm12, %vm8153_vm3  ;;  %vm8161_vm12 = vcmp.eq.s32.totalorder %v8124_v31, %v3413_v12  ;;  %vm8162_vm3 = vnez %v8071_v1  ;;  %vm8173_vm9 = vcmp.eq.s32.totalorder %v8135_v4, %v3402_v20 }
 0x2ac   : > { %v8155_v32 = vsel %vm5546_vm10, 4294967295, %v8154_v32  ;;  %vm5557_vm7 = vmor %vm8158_vm6, %vm8157_vm2  ;;  %vm8165_vm2 = vcmp.eq.s32.totalorder %v8129_v43, %v3413_v12  ;;  %vm8166_vm6 = vnez %v8082_v61  ;;  %vm8174_vm10 = vnez %v8086_v19  ;;  %v1274_v43 = vpop.permute.xlu0 %1273 }
 0x2ad   : > { %vm5568_vm5 = vmor %vm8162_vm3, %vm8161_vm12  ;;  %vm8169_vm12 = vcmp.eq.s32.totalorder %v3502_v35, %v3413_v12  ;;  %vm8170_vm3 = vnez %v8092_v33  ;;  %v8175_v61 = vmov 0  ;;  %v5606_v35 = vld [vmem:[%s2895_s25 + $0x40] sm:$0xff]  ;;  %v8179_v33 = vmov 0 }
 0x2ae   : > { %v8164_v44 = vsel %vm5568_vm5, 4294967295, %v8163_v44  ;;  %vm5581_vm15 = vmor %vm8166_vm6, %vm8165_vm2  ;;  %vm1170_vm2 = vcmp.eq.s32.totalorder %v1107_v14, %v3402_v20  ;;  %vm1171_vm6 = vcmp.eq.s32.totalorder %v1107_v14, %v3413_v12  ;;  %1485 = vperm.xlu2 %2694, %v5606_v35   ;;  %v8183_v19 = vmov 0  ;;  %v8188_v14 = vld [vmem:[#allocation41_spill] sm:$0xff] }
 0x2af   : > { %v8168_v24 = vsel %vm5581_vm15, 4294967295, %v8167_v24  ;;  %vm5590_vm4 = vmor %vm8170_vm3, %vm8169_vm12  ;;  %vm8177_vm12 = vcmp.eq.s32.totalorder %v3539_v36, %v3402_v20  ;;  %vm8178_vm3 = vnez %v8104_v26  ;;  %v8186_v31 = vmov 0  ;;  %v1262_v26 = vpop.permute.xlu2 %1261 }
 0x2b0   : > { %vm5599_vm5 = vmor %vm8174_vm10, %vm8173_vm9  ;;  %vm8181_vm9 = vcmp.eq.s32.totalorder %v8135_v4, %v3413_v12  ;;  %vm8182_vm10 = vnez %v8096_v52  ;;  %v8190_v52 = vmov 0  ;;  %v8209_v1 = vmov 0 }
 0x2b1   : > { %v8176_v61 = vsel %vm5599_vm5, 4294967295, %v8175_v61  ;;  %vm5614_vm15 = vmor %vm8178_vm3, %vm8177_vm12  ;;  %vm8189_vm3 = vcmp.eq.s32.totalorder %v3539_v36, %v3413_v12  ;;  %v8198_v36 = vld [vmem:[#allocation63_spill] sm:$0xff]  ;;  %1491 = vperm.xlu1 %2696, %v5753_v56   ;;  %v8284_v4 = vmov 0 }
 0x2b2   : > { %v8180_v33 = vsel %vm5614_vm15, 4294967295, %v8179_v33  ;;  %vm5623_vm5 = vmor %vm8182_vm10, %vm8181_vm9  ;;  %vm8195_vm10 = vnez %v8112_v5  ;;  %v8201_v5 = vld [vmem:[#allocation17_spill] sm:$0xff]  ;;  %vm1130_vm15 = vcmp.eq.s32.totalorder %v3549_v11, %v3402_v20 }
 0x2b3   : > { %v8184_v19 = vsel %vm5623_vm5, 4294967295, %v8183_v19  ;;  %vm5629_vm14 = vmor %vm8185_vm0, %vm1170_vm2  ;;  %vm8192_vm0 = vcmp.eq.s32.totalorder %v8156_v16, %v3402_v20  ;;  %vm1131_vm5 = vcmp.eq.s32.totalorder %v3549_v11, %v3413_v12  ;;  %v8218_v11 = vmov 0 }
 0x2b4   : > { %v8187_v31 = vsel %vm5629_vm14, 4294967295, %v8186_v31  ;;  %vm5641_vm9 = vmor %vm5432_vm11, %vm8189_vm3  ;;  %vm1348_vm11 = vcmp.eq.s32.totalorder %v1262_v26, %v3402_v20  ;;  %vm1349_vm3 = vcmp.eq.s32.totalorder %v1262_v26, %v3413_v12  ;;  %vm1356_vm14 = vcmp.eq.s32.totalorder %v1274_v43, %v3402_v20  ;;  %v2733_v26 = vld [vmem:[%s2895_s25 + $0x78] sm:$0xff] }
 0x2b5   : > { %v8191_v52 = vsel %vm5641_vm9, 4294967295, %v8190_v52  ;;  %vm5650_vm2 = vmor %vm5414_vm8, %vm8192_vm0  ;;  %vm457_vm9 = vcmp.eq.s32.totalorder %v8188_v14, %v3413_v12  ;;  %vm694_vm8 = vcmp.eq.s32.totalorder %v8198_v36, %v3402_v20 }
 0x2b6   : > { %v8194_v55 = vsel %vm5650_vm2, 4294967295, %v8193_v55  ;;  %vm5656_vm12 = vmor %vm8195_vm10, %vm1171_vm6  ;;  %vm296_vm10 = vcmp.eq.s32.totalorder %v8201_v5, %v3402_v20  ;;  %vm8204_vm6 = vcmp.eq.s32.totalorder %v8188_v14, %v3402_v20  ;;  %v8214_v14 = vmov 0 }
 0x2b7   : > { %v8197_v2 = vsel %vm5656_vm12, 4294967295, %v8196_v2  ;;  %vm5669_vm0 = vmor %vm5557_vm7, %vm1348_vm11  ;;  %vm695_vm12 = vcmp.eq.s32.totalorder %v8198_v36, %v3413_v12  ;;  %vm297_vm11 = vcmp.eq.s32.totalorder %v8201_v5, %v3413_v12  ;;  %vm1116_vm2 = vcmp.eq.s32.totalorder %v3617_v51, %v3402_v20  ;;  %v1271_v36 = vpop.permute.xlu2 %1270  ;;  %v5795_v5 = vld [vmem:[%s2895_s25 + $0xa8] sm:$0xff] }
 0x2b8   : > { %v8200_v10 = vsel %vm5669_vm0, 4294967295, %v8199_v10  ;;  %vm5684_vm7 = vmor %vm5590_vm4, %vm1349_vm3  ;;  %vm8208_vm4 = vnez %v7457_v27  ;;  %v8221_v27 = vmov 0  ;;  %1748 = vperm.xlu0 %2698, %v5795_v5  }
 0x2b9   : > { %v8203_v0 = vsel %vm5684_vm7, 4294967295, %v8202_v0  ;;  %vm5693_vm0 = vmor %vm296_vm10, %vm8204_vm6  ;;  %vm8241_vm10 = vnez %v8168_v24  ;;  %v8247_v24 = vmov 0  ;;  %1506 = vperm.xlu1 %2696, %v2733_v26  }
 0x2ba   : > { %vm5703_vm3 = vmor %vm8208_vm4, %vm1356_vm14  ;;  %vm8216_vm14 = vcmp.eq.s32.totalorder %v1274_v43, %v3413_v12  ;;  %vm8217_vm4 = vnez %v7463_v47  ;;  %v8228_v47 = vmov 0  ;;  %v8238_v43 = vmov 0 }
 0x2bb   : > { %v8210_v1 = vsel %vm5703_vm3, 4294967295, %v8209_v1  ;;  %vm5707_vm7 = vmor %vm297_vm11, %vm457_vm9 }
 0x2bc   : > { %8211 = vst [vmem:[#allocation71_spill] sm:$0xff] %v8210_v1  ;;  %vm5713_vm6 = vmor %vm5486_vm13, %vm694_vm8  ;;  %vm8223_vm8 = vnez %v8148_v7  ;;  %v8244_v1 = vld [vmem:[#allocation42_spill] sm:$0xff]  ;;  %v8281_v7 = vmov 0 }
 0x2bd   : > { %v8215_v14 = vsel %vm5713_vm6, 4294967295, %v8214_v14  ;;  %vm5725_vm9 = vmor %vm8217_vm4, %vm8216_vm14  ;;  %vm8226_vm14 = vcmp.eq.s32.totalorder %v8156_v16, %v3413_v12  ;;  %vm8227_vm4 = vnez %v8145_v23  ;;  %v8235_v23 = vmov 0  ;;  %v5774_v16 = vld [vmem:[%s2895_s25 + $0x58] sm:$0xff] }
 0x2be   : > { %v8219_v11 = vsel %vm5725_vm9, 4294967295, %v8218_v11  ;;  %vm5731_vm13 = vmor %vm5507_vm1, %vm695_vm12  ;;  %vm8230_vm1 = vnez %v8164_v44  ;;  %1494 = vperm.xlu2 %2694, %v5774_v16   ;;  %v1244_v44 = vpop.permute.xlu1 %1243  ;;  %vm8240_vm12 = vcmp.eq.s32.totalorder %v8207_v8, %v3413_v12 }
 0x2bf   : > { %8220 = vst [vmem:[#allocation49_spill] sm:$0xff] %v8219_v11  ;;  %v8222_v27 = vsel %vm5731_vm13, 4294967295, %v8221_v27  ;;  %vm5737_vm11 = vmor %vm8223_vm8, %vm1130_vm15  ;;  %vm8233_vm8 = vcmp.eq.s32.totalorder %v8207_v8, %v3402_v20  ;;  %vm1337_vm9 = vcmp.eq.s32.totalorder %v1244_v44, %v3413_v12  ;;  %v8250_v8 = vmov 0 }
 0x2c0   : > { %vm5748_vm3 = vmor %vm8227_vm4, %vm8226_vm14  ;;  %vm8234_vm14 = vnez %v8155_v32  ;;  %v8242_v32 = vmov 0  ;;  %v8267_v11 = vmov 0  ;;  %1751 = vperm.xlu0 %2698, %v4157_v30   ;;  %v8310_v30 = vmov 0 }
 0x2c1   : > { %v8229_v47 = vsel %vm5748_vm3, 4294967295, %v8228_v47  ;;  %vm5758_vm15 = vmor %vm8230_vm1, %vm1131_vm5  ;;  %vm8237_vm5 = vnez %v8176_v61  ;;  %v1283_v61 = vpop.permute.xlu0 %1282 }
 0x2c2   : > { %vm5769_vm4 = vmor %vm8234_vm14, %vm8233_vm8  ;;  %vm1336_vm14 = vcmp.eq.s32.totalorder %v1244_v44, %v3402_v20  ;;  %v8262_v44 = vld [vmem:[#allocation19_spill] sm:$0xff] }
 0x2c3   : > { %v8236_v23 = vsel %vm5769_vm4, 4294967295, %v8235_v23  ;;  %vm5779_vm1 = vmor %vm8237_vm5, %vm1116_vm2  ;;  %vm8245_vm5 = vcmp.eq.s32.totalorder %v3617_v51, %v3413_v12  ;;  %vm1354_vm4 = vcmp.eq.s32.totalorder %v1271_v36, %v3402_v20  ;;  %v8253_v51 = vld [vmem:[#allocation64_spill] sm:$0xff]  ;;  %vm1362_vm2 = vcmp.eq.s32.totalorder %v1283_v61, %v3402_v20 }
 0x2c4   : > { %v8239_v43 = vsel %vm5779_vm1, 4294967295, %v8238_v43  ;;  %vm5788_vm8 = vmor %vm8241_vm10, %vm8240_vm12  ;;  %vm8246_vm10 = vnez %v8184_v19  ;;  %vm8249_vm1 = vnez %v8180_v33  ;;  %v8256_v33 = vmov 0 }
 0x2c5   : > { %v8243_v32 = vsel %vm5788_vm8, 4294967295, %v8242_v32  ;;  %vm5805_vm12 = vmor %vm8246_vm10, %vm8245_vm5  ;;  %vm8254_vm5 = vcmp.eq.s32.totalorder %v3630_v53, %v3402_v20  ;;  %vm8255_vm10 = vnez %v8194_v55  ;;  %v8259_v19 = vmov 0  ;;  %v8263_v55 = vld [vmem:[#allocation89_spill] sm:$0xff] }
 0x2c6   : > { %v8248_v24 = vsel %vm5805_vm12, 4294967295, %v8247_v24  ;;  %vm5811_vm8 = vmor %vm8249_vm1, %vm1336_vm14  ;;  %vm8258_vm1 = vnez %v8191_v52  ;;  %vm302_vm3 = vcmp.eq.s32.totalorder %v8262_v44, %v3402_v20  ;;  %vm681_vm13 = vcmp.eq.s32.totalorder %v8253_v51, %v3413_v12 }
 0x2c7   : > { %v8251_v8 = vsel %vm5811_vm8, 4294967295, %v8250_v8  ;;  %vm5826_vm12 = vmor %vm8255_vm10, %vm8254_vm5  ;;  %vm918_vm5 = vcmp.eq.s32.totalorder %v8263_v55, %v3402_v20  ;;  %v8264_v52 = vmov 0  ;;  %vm8266_vm8 = vcmp.eq.s32.totalorder %v8244_v1, %v3402_v20 }
 0x2c8   : > { %8252 = vst [vmem:[#allocation75_spill] sm:$0xff] %v8251_v8  ;;  %v8257_v33 = vsel %vm5826_vm12, 4294967295, %v8256_v33  ;;  %vm5832_vm14 = vmor %vm8258_vm1, %vm1337_vm9  ;;  %vm1363_vm9 = vcmp.eq.s32.totalorder %v1283_v61, %v3413_v12  ;;  %vm303_vm1 = vcmp.eq.s32.totalorder %v8262_v44, %v3413_v12  ;;  %vm919_vm12 = vcmp.eq.s32.totalorder %v8263_v55, %v3413_v12  ;;  %v8299_v55 = vld [vmem:[#allocation43_spill] sm:$0xff] }
 0x2c9   : > { %v8260_v19 = vsel %vm5832_vm14, 4294967295, %v8259_v19  ;;  %vm5845_vm10 = vmor %vm5737_vm11, %vm1354_vm4  ;;  %vm1137_vm11 = vcmp.eq.s32.totalorder %v3630_v53, %v3413_v12  ;;  %vm8269_vm4 = vcmp.eq.s32.totalorder %v1271_v36, %v3413_v12  ;;  %v8273_v61 = vmov 0 }
 0x2ca   : > { %8261 = vst [vmem:[#allocation72_spill] sm:$0xff] %v8260_v19  ;;  %v8265_v52 = vsel %vm5845_vm10, 4294967295, %v8264_v52  ;;  %vm5855_vm14 = vmor %vm302_vm3, %vm8266_vm8  ;;  %vm8272_vm3 = vcmp.eq.s32.totalorder %v8244_v1, %v3413_v12  ;;  %v8276_v53 = vmov 0  ;;  %v8279_v1 = vmov 0  ;;  %v8402_v19 = vld [vmem:[#allocation70_spill] sm:$0xff] }
 0x2cb   : > { %v8268_v11 = vsel %vm5855_vm14, 4294967295, %v8267_v11  ;;  %vm5867_vm10 = vmor %vm5758_vm15, %vm8269_vm4  ;;  %vm8275_vm14 = vcmp.eq.s32.totalorder %v8253_v51, %v3402_v20  ;;  %vm1122_vm15 = vcmp.eq.s32.totalorder %v3742_v50, %v3402_v20  ;;  %vm8278_vm4 = vnez %v7481_v60 }
 0x2cc   : > { %v8271_v37 = vsel %vm5867_vm10, 4294967295, %v8270_v37  ;;  %vm5874_vm8 = vmor %vm303_vm1, %vm8272_vm3  ;;  %v8287_v60 = vmov 0  ;;  %v8295_v51 = vmov 7   ;;  %v8297_v44 = vmov 0 }
 0x2cd   : > { %v8274_v61 = vsel %vm5874_vm8, 4294967295, %v8273_v61  ;;  %vm5883_vm6 = vmor %vm5693_vm0, %vm8275_vm14  ;;  %vm8283_vm14 = vnez %v8215_v14  ;;  %vm8292_vm0 = vnez %v8222_v27  ;;  %v8293_v14 = vmov 0  ;;  %2697 = vset.pattern.permute.xlu2 %v8295_v51  ;;  %v1292_v27 = vpop.permute.xlu0 %1291 }
 0x2ce   : > { %v8277_v53 = vsel %vm5883_vm6, 4294967295, %v8276_v53  ;;  %vm5891_vm10 = vmor %vm8278_vm4, %vm1362_vm2  ;;  %vm8286_vm2 = vnez %v7491_v40  ;;  %v1250_v40 = vpop.permute.xlu1 %1249  ;;  %1730 = vperm.xlu2 %2697, %v2733_v26   ;;  %v8305_v26 = vmov 0  ;;  %v8332_v36 = vmov 0 }
 0x2cf   : > { %v8280_v1 = vsel %vm5891_vm10, 4294967295, %v8279_v1  ;;  %vm5897_vm1 = vmor %vm5707_vm7, %vm681_vm13  ;;  %vm8289_vm7 = vnez %v8229_v47  ;;  %v1280_v47 = vpop.permute.xlu2 %1279  ;;  %v8355_v8 = vmov 0 }
 0x2d0   : > { %v8282_v7 = vsel %vm5897_vm1, 4294967295, %v8281_v7  ;;  %vm5905_vm3 = vmor %vm8283_vm14, %vm918_vm5  ;;  %vm8314_vm1 = vnez %v8257_v33  ;;  %v8321_v33 = vld [vmem:[#allocation18_spill] sm:$0xff] }
 0x2d1   : > { %v8285_v4 = vsel %vm5905_vm3, 4294967295, %v8284_v4  ;;  %vm5911_vm4 = vmor %vm8286_vm2, %vm1363_vm9  ;;  %vm8296_vm9 = vnez %v8236_v23  ;;  %vm1341_vm2 = vcmp.eq.s32.totalorder %v1250_v40, %v3413_v12  ;;  %v8302_v23 = vmov 0 }
 0x2d2   : > { %v8288_v60 = vsel %vm5911_vm4, 4294967295, %v8287_v60  ;;  %vm5918_vm13 = vmor %vm8289_vm7, %vm1137_vm11  ;;  %vm1340_vm11 = vcmp.eq.s32.totalorder %v1250_v40, %v3402_v20  ;;  %vm1360_vm4 = vcmp.eq.s32.totalorder %v1280_v47, %v3402_v20  ;;  %v8319_v40 = vmov 0 }
 0x2d3   : > { %vm5924_vm5 = vmor %vm8292_vm0, %vm919_vm12  ;;  %vm8300_vm0 = vcmp.eq.s32.totalorder %v3742_v50, %v3413_v12  ;;  %vm469_vm12 = vcmp.eq.s32.totalorder %v8299_v55, %v3413_v12  ;;  %v8308_v50 = vld [vmem:[#allocation65_spill] sm:$0xff] }
 0x2d4   : > { %v8294_v14 = vsel %vm5924_vm5, 4294967295, %v8293_v14  ;;  %vm5931_vm14 = vmor %vm8296_vm9, %vm1122_vm15  ;;  %vm8301_vm15 = vnez %v8243_v32  ;;  %vm8304_vm9 = vnez %v8239_v43  ;;  %vm686_vm5 = vcmp.eq.s32.totalorder %v8308_v50, %v3402_v20  ;;  %v8312_v43 = vld [vmem:[#allocation21_spill] sm:$0xff]  ;;  %v8313_v32 = vld [vmem:[#allocation90_spill] sm:$0xff] }
 0x2d5   : > { %v8298_v44 = vsel %vm5931_vm14, 4294967295, %v8297_v44  ;;  %vm5945_vm7 = vmor %vm8301_vm15, %vm8300_vm0  ;;  %vm1361_vm14 = vcmp.eq.s32.totalorder %v1280_v47, %v3413_v12  ;;  %vm8309_vm0 = vnez %v8248_v24  ;;  %v8315_v24 = vmov 0 }
 0x2d6   : > { %v8303_v23 = vsel %vm5945_vm7, 4294967295, %v8302_v23  ;;  %vm5951_vm10 = vmor %vm8304_vm9, %vm1340_vm11  ;;  %vm1368_vm11 = vcmp.eq.s32.totalorder %v1292_v27, %v3402_v20  ;;  %vm308_vm9 = vcmp.eq.s32.totalorder %v8312_v43, %v3402_v20  ;;  %vm904_vm7 = vcmp.eq.s32.totalorder %v8313_v32, %v3402_v20 }
 0x2d7   : > { %v8306_v26 = vsel %vm5951_vm10, 4294967295, %v8305_v26  ;;  %vm5963_vm15 = vmor %vm8309_vm0, %vm1341_vm2  ;;  %vm687_vm10 = vcmp.eq.s32.totalorder %v8308_v50, %v3413_v12  ;;  %vm1369_vm2 = vcmp.eq.s32.totalorder %v1292_v27, %v3413_v12  ;;  %vm309_vm0 = vcmp.eq.s32.totalorder %v8312_v43, %v3413_v12  ;;  %v8330_v50 = vld [vmem:[#allocation48_spill] sm:$0xff] }
 0x2d8   : > { %8307 = vst [vmem:[#allocation8_spill] sm:$0xff] %v8306_v26  ;;  %v8311_v30 = vsel %vm5963_vm15, 4294967295, %v8310_v30  ;;  %vm5976_vm3 = vmor %vm8314_vm1, %vm1360_vm4  ;;  %vm8318_vm15 = vcmp.eq.s32.totalorder %v8299_v55, %v3402_v20  ;;  %vm905_vm8 = vcmp.eq.s32.totalorder %v8313_v32, %v3413_v12  ;;  %vm1142_vm1 = vcmp.eq.s32.totalorder %v8321_v33, %v3402_v20  ;;  %v8340_v32 = vld [vmem:[#allocation67_spill] sm:$0xff]  ;;  %v1301_v26 = vpop.permute.xlu0 %1300  ;;  %v8396_v27 = vld [vmem:[#allocation92_spill] sm:$0xff] }
 0x2d9   : > { %v8316_v24 = vsel %vm5976_vm3, 4294967295, %v8315_v24  ;;  %vm5986_vm6 = vmor %vm308_vm9, %vm8318_vm15  ;;  %v8322_v47 = vmov 0  ;;  %vm8327_vm15 = vnez %v8268_v11  ;;  %v8328_v55 = vmov 0  ;;  %v2048_v11 = vld [vmem:[%s7206_s1 + $0x60] sm:$0xff] }
 0x2da   : > { %8317 = vst [vmem:[#allocation31_spill] sm:$0xff] %v8316_v24  ;;  %v8320_v40 = vsel %vm5986_vm6, 4294967295, %v8319_v40  ;;  %vm5996_vm4 = vmor %vm5918_vm13, %vm1361_vm14  ;;  %vm1143_vm6 = vcmp.eq.s32.totalorder %v8321_v33, %v3413_v12  ;;  %vm8331_vm13 = vnez %v8330_v50  ;;  %v8335_v43 = vmov 0  ;;  %v2734_v50 = vld [vmem:[%s2895_s25 + $0x80] sm:$0xff]  ;;  %v1259_v24 = vpop.permute.xlu1 %1258 }
 0x2db   : > { %v8323_v47 = vsel %vm5996_vm4, 4294967295, %v8322_v47  ;;  %vm6000_vm3 = vmor %vm309_vm0, %vm469_vm12  ;;  %vm8334_vm12 = vnez %v8274_v61  ;;  %vm8341_vm4 = vnez %v8340_v32  ;;  %v8342_v33 = vmov 0  ;;  %1509 = vperm.xlu1 %2696, %v2734_v50   ;;  %v2051_v61 = vld [vmem:[%s7206_s1 + $0x78] sm:$0xff]  ;;  %1733 = vperm.xlu2 %2697, %v2734_v50  }
 0x2dc   : > { %8324 = vst [vmem:[#allocation50_spill] sm:$0xff] %v8323_v47  ;;  %vm6006_vm9 = vmor %vm8327_vm15, %vm686_vm5  ;;  %vm8337_vm5 = vnez %v8277_v53  ;;  %v8348_v32 = vmov 0  ;;  %2157 = vmatpush.msra.mxu0 %v2051_v61  ;;  %2602 = vmatpush.msra.mxu2 %v2051_v61  ;;  %v8362_v50 = vmov 0  ;;  %v8365_v61 = vmov 0  ;;  %v2050_v53 = vld [vmem:[%s7206_s1 + $0x70] sm:$0xff] }
 0x2dd   : > { %v8329_v55 = vsel %vm6006_vm9, 4294967295, %v8328_v55  ;;  %vm6014_vm14 = vmor %vm8331_vm13, %vm1368_vm11  ;;  %v8372_v47 = vmov 0 }
 0x2de   : > { %v8333_v36 = vsel %vm6014_vm14, 4294967295, %v8332_v36  ;;  %vm6020_vm0 = vmor %vm8334_vm12, %vm687_vm10  ;;  %vm8344_vm10 = vnez %v8285_v4  ;;  %vm1347_vm12 = vcmp.eq.s32.totalorder %v1259_v24, %v3413_v12  ;;  %v1289_v4 = vpop.permute.xlu2 %1288  ;;  %2158 = vmatpush.msra.mxu0 %v2050_v53  ;;  %2603 = vmatpush.msra.mxu2 %v2050_v53 }
 0x2df   : > { %v8336_v43 = vsel %vm6020_vm0, 4294967295, %v8335_v43  ;;  %vm6026_vm15 = vmor %vm8337_vm5, %vm904_vm7  ;;  %vm8347_vm7 = vnez %v8282_v7  ;;  %v8353_v7 = vld [vmem:[#allocation5_spill] sm:$0xff] }
 0x2e0   : > { %vm6032_vm9 = vmor %vm8341_vm4, %vm1369_vm2  ;;  %vm8350_vm2 = vnez %v8294_v14  ;;  %1754 = vperm.xlu0 %2698, %v8353_v7   ;;  %v8357_v14 = vld [vmem:[#allocation68_spill] sm:$0xff]  ;;  %v2049_v7 = vld [vmem:[%s7206_s1 + $0x68] sm:$0xff] }
 0x2e1   : > { %v8343_v33 = vsel %vm6032_vm9, 4294967295, %v8342_v33  ;;  %vm6042_vm11 = vmor %vm8344_vm10, %vm1142_vm1  ;;  %vm1346_vm1 = vcmp.eq.s32.totalorder %v1259_v24, %v3402_v20  ;;  %vm1367_vm10 = vcmp.eq.s32.totalorder %v1289_v4, %v3413_v12  ;;  %v8359_v24 = vmov 0  ;;  %2159 = vmatpush.msra.mxu0 %v2049_v7  ;;  %2604 = vmatpush.msra.mxu2 %v2049_v7  ;;  %v8401_v7 = vld [vmem:[#allocation12_spill] sm:$0xff] }
 0x2e2   : > { %vm6048_vm13 = vmor %vm8347_vm7, %vm905_vm8  ;;  %vm8354_vm8 = vnez %v8298_v44  ;;  %vm692_vm7 = vcmp.eq.s32.totalorder %v8357_v14, %v3402_v20  ;;  %vm1374_vm9 = vcmp.eq.s32.totalorder %v1301_v26, %v3402_v20  ;;  %v8361_v44 = vld [vmem:[#allocation91_spill] sm:$0xff]  ;;  %v1268_v53 = vpop.permute.xlu1 %1267 }
 0x2e3   : > { %v8349_v32 = vsel %vm6048_vm13, 4294967295, %v8348_v32  ;;  %vm6054_vm4 = vmor %vm8350_vm2, %vm1143_vm6  ;;  %vm1366_vm6 = vcmp.eq.s32.totalorder %v1289_v4, %v3402_v20  ;;  %vm8358_vm2 = vnez %v8303_v23  ;;  %vm1375_vm13 = vcmp.eq.s32.totalorder %v1301_v26, %v3413_v12  ;;  %v8364_v23 = vld [vmem:[#allocation44_spill] sm:$0xff]  ;;  %v8370_v4 = vld [vmem:[#allocation6_spill] sm:$0xff]  ;;  %2699 = vset.pattern.permute.xlu1 %v8295_v51  ;;  %2700 = vset.pattern.permute.xlu2 %v7924_v45 }
 0x2e4   : > { %vm6063_vm5 = vmor %vm8354_vm8, %vm1346_vm1  ;;  %vm693_vm1 = vcmp.eq.s32.totalorder %v8357_v14, %v3413_v12  ;;  %vm910_vm8 = vcmp.eq.s32.totalorder %v8361_v44, %v3402_v20  ;;  %1512 = vperm.xlu2 %2700, %v4972_v22   ;;  %2160 = vmatpush.msra.mxu0 %v2048_v11  ;;  %v2046_v22 = vld [vmem:[%s7206_s1 + $0x50] sm:$0xff] }
 0x2e5   : > { %v8356_v8 = vsel %vm6063_vm5, 4294967295, %v8355_v8  ;;  %vm6073_vm14 = vmor %vm8358_vm2, %vm1347_vm12  ;;  %vm1128_vm2 = vcmp.eq.s32.totalorder %v8364_v23, %v3402_v20  ;;  %vm1129_vm12 = vcmp.eq.s32.totalorder %v8364_v23, %v3413_v12  ;;  %2605 = vmatpush.msra.mxu2 %v2048_v11  ;;  %v8440_v11 = vld [vmem:[#allocation30_spill] sm:$0xff]  ;;  %v8572_v23 = vmov 0.0  }
 0x2e6   : > { %v8360_v24 = vsel %vm6073_vm14, 4294967295, %v8359_v24  ;;  %vm6084_vm5 = vmor %vm6042_vm11, %vm1366_vm6  ;;  %vm8367_vm11 = vnez %v8320_v40 }
 0x2e7   : > { %v8363_v50 = vsel %vm6084_vm5, 4294967295, %v8362_v50  ;;  %vm6095_vm14 = vmor %vm6054_vm4, %vm1367_vm10  ;;  %vm8371_vm5 = vnez %v8370_v4  ;;  %vm8377_vm10 = vnez %v8329_v55  ;;  %v8380_v4 = vld [vmem:[#allocation20_spill] sm:$0xff]  ;;  %v8420_v55 = vmov 0 }
 0x2e8   : > { %v8366_v61 = vsel %vm6095_vm14, 4294967295, %v8365_v61  ;;  %vm6104_vm6 = vmor %vm8367_vm11, %vm692_vm7  ;;  %vm8403_vm14 = vnez %v8402_v19  ;;  %v2059_v19 = vld [vmem:[%s7206_s1 + $0xb8] sm:$0xff] }
 0x2e9   : > { %vm6112_vm0 = vmor %vm8371_vm5, %vm1374_vm9  ;;  %vm8381_vm9 = vnez %v8380_v4  ;;  %v2735_v4 = vld [vmem:[%s2895_s25 + $0x8] sm:$0xff]  ;;  %2278 = vmatpush.msra.mxu1 %v2059_v19  ;;  %2618 = vmatpush.msra.mxu3 %v2059_v19  ;;  %v8432_v19 = vmov 0 }
 0x2ea   : > { %v8373_v47 = vsel %vm6112_vm0, 4294967295, %v8372_v47  ;;  %vm6121_vm4 = vmor %vm6000_vm3, %vm693_vm1  ;;  %vm8387_vm1 = vcmp.eq.s32.totalorder %v8361_v44, %v3413_v12  ;;  %1688 = vperm.xlu1 %2699, %v2735_v4   ;;  %v6166_v44 = vld [vmem:[%s2895_s25 + $0xc0] sm:$0xff]  ;;  %v1310_v4 = vpop.permute.xlu0 %1309  ;;  %v1277_v26 = vpop.permute.xlu1 %1276 }
 0x2eb   : > { %8374 = vst [vmem:[#allocation78_spill] sm:$0xff] %v8373_v47  ;;  %vm6127_vm7 = vmor %vm8377_vm10, %vm910_vm8  ;;  %v8382_v47 = vmov 0  ;;  %vm8388_vm8 = vnez %v8336_v43  ;;  %vm1353_vm10 = vcmp.eq.s32.totalorder %v1268_v53, %v3413_v12  ;;  %v1298_v43 = vpop.permute.xlu2 %1297  ;;  %1757 = vperm.xlu0 %2698, %v6166_v44  }
 0x2ec   : > { %vm6133_vm5 = vmor %vm8381_vm9, %vm1375_vm13  ;;  %1515 = vperm.xlu2 %2700, %v5212_v3   ;;  %v8425_v3 = vmov 0 }
 0x2ed   : > { %v8383_v47 = vsel %vm6133_vm5, 4294967295, %v8382_v47  ;;  %vm6140_vm3 = vmor %vm6026_vm15, %vm1128_vm2  ;;  %vm8391_vm15 = vnez %v8349_v32  ;;  %vm1352_vm2 = vcmp.eq.s32.totalorder %v1268_v53, %v3402_v20  ;;  %v2047_v32 = vld [vmem:[%s7206_s1 + $0x58] sm:$0xff]  ;;  %v8397_v53 = vld [vmem:[#allocation27_spill] sm:$0xff]  ;;  %vm1381_vm5 = vcmp.eq.s32.totalorder %v1310_v4, %v3413_v12 }
 0x2ee   : > { %8384 = vst [vmem:[#allocation74_spill] sm:$0xff] %v8383_v47  ;;  %vm6149_vm11 = vmor %vm8388_vm8, %vm8387_vm1  ;;  %v8392_v47 = vmov 0  ;;  %vm1373_vm1 = vcmp.eq.s32.totalorder %v1298_v43, %v3413_v12  ;;  %2161 = vmatpush.msra.mxu0 %v2047_v32  ;;  %2606 = vmatpush.msra.mxu2 %v2047_v32  ;;  %v8423_v32 = vld [vmem:[#allocation23_spill] sm:$0xff] }
 0x2ef   : > { %vm1193_vm13 = vmor %vm8391_vm15, %vm1129_vm12  ;;  %vm1372_vm12 = vcmp.eq.s32.totalorder %v1298_v43, %v3402_v20  ;;  %vm1380_vm15 = vcmp.eq.s32.totalorder %v1310_v4, %v3402_v20  ;;  %v8399_v43 = vmov 0  ;;  %v8407_v4 = vmov 0 }
 0x2f0   : > { %vm6171_vm9 = vmor %vm6140_vm3, %vm1352_vm2  ;;  %vm916_vm3 = vcmp.eq.s32.totalorder %v8396_v27, %v3402_v20  ;;  %vm8398_vm2 = vnez %v8397_v53  ;;  %v8404_v53 = vmov 0  ;;  %2162 = vmatpush.msra.mxu0 %v2046_v22  ;;  %2607 = vmatpush.msra.mxu2 %v2046_v22  ;;  %v8429_v22 = vmov 0 }
 0x2f1   : > { %v8393_v47 = vsel %vm6171_vm9, 4294967295, %v8392_v47  ;;  %vm6181_vm8 = vmor %vm1193_vm13, %vm1353_vm10  ;;  %vm917_vm13 = vcmp.eq.s32.totalorder %v8396_v27, %v3413_v12  ;;  %vm1134_vm10 = vcmp.eq.s32.totalorder %v8401_v7, %v3402_v20  ;;  %v2045_v27 = vld [vmem:[%s7206_s1 + $0x48] sm:$0xff] }
 0x2f2   : > { %vm6190_vm0 = vmor %vm8398_vm2, %vm1372_vm12  ;;  %vm1135_vm12 = vcmp.eq.s32.totalorder %v8401_v7, %v3413_v12  ;;  %vm8406_vm2 = vnez %v7725_v46  ;;  %v8413_v46 = vmov 0  ;;  %1691 = vperm.xlu1 %2699, %v5149_v59   ;;  %v1319_v14 = vpop.permute.xlu0 %1318  ;;  %2163 = vmatpush.msra.mxu0 %v2045_v27  ;;  %v2043_v59 = vld [vmem:[%s7206_s1 + $0x38] sm:$0xff] }
 0x2f3   : > { %v8400_v43 = vsel %vm6190_vm0, 4294967295, %v8399_v43  ;;  %vm6204_vm9 = vmor %vm8403_vm14, %vm1373_vm1  ;;  %vm8412_vm1 = vnez %v7735_v63  ;;  %v2044_v63 = vld [vmem:[%s7206_s1 + $0x40] sm:$0xff]  ;;  %v1307_v40 = vpop.permute.xlu2 %1306  ;;  %1760 = vperm.xlu0 %2698, %v4403_v58   ;;  %v2058_v58 = vld [vmem:[%s7206_s1 + $0xb0] sm:$0xff]  ;;  %2608 = vmatpush.msra.mxu2 %v2045_v27 }
 0x2f4   : > { %v8405_v53 = vsel %vm6204_vm9, 4294967295, %v8404_v53  ;;  %vm6212_vm0 = vmor %vm8406_vm2, %vm1380_vm15  ;;  %2164 = vmatpush.msra.mxu0 %v2044_v63  ;;  %2279 = vmatpush.msra.mxu1 %v2058_v58  ;;  %v2056_v27 = vld [vmem:[%s7206_s1 + $0xa0] sm:$0xff] }
 0x2f5   : > { %v8408_v4 = vsel %vm6212_vm0, 4294967295, %v8407_v4  ;;  %vm6224_vm14 = vmor %vm6104_vm6, %vm916_vm3  ;;  %vm1378_vm3 = vcmp.eq.s32.totalorder %v1307_v40, %v3402_v20  ;;  %2619 = vmatpush.msra.mxu3 %v2058_v58  ;;  %2609 = vmatpush.msra.mxu2 %v2044_v63  ;;  %v2040_v58 = vld [vmem:[%s7206_s1 + $0x20] sm:$0xff] }
 0x2f6   : > { %8409 = vst [vmem:[#allocation26_spill] sm:$0xff] %v8408_v4  ;;  %vm6230_vm15 = vmor %vm8412_vm1, %vm1381_vm5  ;;  %vm1358_vm5 = vcmp.eq.s32.totalorder %v1277_v26, %v3402_v20  ;;  %v8417_v4 = vmov 0  ;;  %2165 = vmatpush.msra.mxu0 %v2043_v59 }
 0x2f7   : > { %v8414_v46 = vsel %vm6230_vm15, 4294967295, %v8413_v46  ;;  %vm1198_vm2 = vmor %vm6127_vm7, %vm1134_vm10  ;;  %vm1359_vm7 = vcmp.eq.s32.totalorder %v1277_v26, %v3413_v12  ;;  %vm1386_vm10 = vcmp.eq.s32.totalorder %v1319_v14, %v3402_v20  ;;  %v2042_v26 = vld [vmem:[%s7206_s1 + $0x30] sm:$0xff]  ;;  %2610 = vmatpush.msra.mxu2 %v2043_v59  ;;  %v2037_v59 = vld [vmem:[%s7206_s1 + $0x8] sm:$0xff]  ;;  %vm8478_vm15 = vnez %v7998_v28 }
 0x2f8   : > { %vm6238_vm0 = vmor %vm6121_vm4, %vm917_vm13  ;;  %vm1379_vm13 = vcmp.eq.s32.totalorder %v1307_v40, %v3413_v12  ;;  %v8427_v40 = vld [vmem:[#allocation25_spill] sm:$0xff]  ;;  %2166 = vmatpush.msra.mxu0 %v2042_v26 }
 0x2f9   : > { %vm1199_vm6 = vmor %vm6149_vm11, %vm1135_vm12  ;;  %vm8424_vm12 = vnez %v8423_v32  ;;  %v2057_v32 = vld [vmem:[%s7206_s1 + $0xa8] sm:$0xff]  ;;  %2611 = vmatpush.msra.mxu2 %v2042_v26  ;;  %v2036_v26 = vld [vmem:[%s7206_s1] sm:$0xff] }
 0x2fa   : > { %vm6251_vm4 = vmor %vm1198_vm2, %vm1358_vm5  ;;  %vm8428_vm5 = vnez %v8427_v40  ;;  %v6303_v40 = vld [vmem:[%s7206_s1 + $0x28] sm:$0xff]  ;;  %2280 = vmatpush.msra.mxu1 %v2057_v32  ;;  %1694 = vperm.xlu1 %2699, %v5189_v57   ;;  %v1328_v63 = vpop.permute.xlu0 %1327  ;;  %v6447_v28 = vld [vmem:[%s2895_s25 + $0xe0] sm:$0xff] }
 0x2fb   : > { %v8418_v4 = vsel %vm6251_vm4, 4294967295, %v8417_v4  ;;  %vm6261_vm11 = vmor %vm1199_vm6, %vm1359_vm7  ;;  %vm1140_vm6 = vcmp.eq.s32.totalorder %v4458_v39, %v3402_v20  ;;  %v1316_v57 = vpop.permute.xlu2 %1315  ;;  %1763 = vperm.xlu0 %2698, %v8440_v11   ;;  %2167 = vmatpush.msra.mxu0 %v6303_v40  ;;  %v2054_v11 = vld [vmem:[%s7206_s1 + $0x90] sm:$0xff] }
 0x2fc   : > { %8419 = vst [vmem:[#allocation52_spill] sm:$0xff] %v8418_v4  ;;  %v8421_v55 = vsel %vm6261_vm11, 4294967295, %v8420_v55  ;;  %vm6271_vm1 = vmor %vm8424_vm12, %vm1378_vm3  ;;  %vm8431_vm12 = vnez %v7809_v25  ;;  %v8437_v25 = vmov 0  ;;  %v1286_v4 = vpop.permute.xlu1 %1285  ;;  %2281 = vmatpush.msra.mxu1 %v2056_v27  ;;  %vm1384_vm4 = vcmp.eq.s32.totalorder %v1316_v57, %v3402_v20  ;;  %2620 = vmatpush.msra.mxu3 %v2057_v32 }
 0x2fd   : > { %8422 = vst [vmem:[#allocation76_spill] sm:$0xff] %v8421_v55  ;;  %v8426_v3 = vsel %vm6271_vm1, 4294967295, %v8425_v3  ;;  %vm6283_vm7 = vmor %vm8428_vm5, %vm1379_vm13  ;;  %vm8435_vm13 = vcmp.eq.s32.totalorder %v1319_v14, %v3413_v12  ;;  %vm8436_vm5 = vnez %v7820_v34  ;;  %v2055_v34 = vld [vmem:[%s7206_s1 + $0x98] sm:$0xff]  ;;  %2168 = vmatpush.msra.mxu0 %v2040_v58  ;;  %vm1393_vm11 = vcmp.eq.s32.totalorder %v1328_v63, %v3413_v12  ;;  %v2038_v55 = vld [vmem:[%s7206_s1 + $0x10] sm:$0xff]  ;;  %2612 = vmatpush.msra.mxu2 %v6303_v40 }
 0x2fe   : > { %v8430_v22 = vsel %vm6283_vm7, 4294967295, %v8429_v22  ;;  %vm6296_vm2 = vmor %vm8431_vm12, %vm1386_vm10  ;;  %vm8439_vm12 = vcmp.eq.s32.totalorder %v4458_v39, %v3413_v12  ;;  %v2737_v39 = vld [vmem:[%s2895_s25 + $0x98] sm:$0xff]  ;;  %2282 = vmatpush.msra.mxu1 %v2055_v34  ;;  %2621 = vmatpush.msra.mxu3 %v2056_v27  ;;  %v8459_v32 = vmov 0  ;;  %v8479_v40 = vmov 0 }
 0x2ff   : > { %v8433_v19 = vsel %vm6296_vm2, 4294967295, %v8432_v19  ;;  %vm6312_vm3 = vmor %vm8436_vm5, %vm8435_vm13  ;;  %1518 = vperm.xlu2 %2700, %v2737_v39   ;;  %v8446_v39 = vmov 0  ;;  %2613 = vmatpush.msra.mxu2 %v2040_v58 }
 0x300   : > { %8434 = vst [vmem:[#allocation29_spill] sm:$0xff] %v8433_v19  ;;  %v8438_v25 = vsel %vm6312_vm3, 4294967295, %v8437_v25  ;;  %vm1204_vm10 = vmor %vm6224_vm14, %vm1140_vm6  ;;  %vm1364_vm14 = vcmp.eq.s32.totalorder %v1286_v4, %v3402_v20  ;;  %vm1365_vm6 = vcmp.eq.s32.totalorder %v1286_v4, %v3413_v12  ;;  %v2039_v4 = vld [vmem:[%s7206_s1 + $0x18] sm:$0xff]  ;;  %v2053_v19 = vld [vmem:[%s7206_s1 + $0x88] sm:$0xff]  ;;  %2283 = vmatpush.msra.mxu1 %v2054_v11  ;;  %2622 = vmatpush.msra.mxu3 %v2055_v34 }
 0x301   : > { %vm1205_vm13 = vmor %vm6238_vm0, %vm8439_vm12  ;;  %vm1392_vm12 = vcmp.eq.s32.totalorder %v1328_v63, %v3402_v20  ;;  %2169 = vmatpush.msra.mxu0 %v2039_v4  ;;  %v8454_v63 = vmov 0  ;;  %2614 = vmatpush.msra.mxu2 %v2039_v4  ;;  %v8488_v4 = vld [vmem:[#allocation22_spill] sm:$0xff] }
 0x302   : > { %vm6334_vm5 = vmor %vm1204_vm10, %vm1364_vm14  ;;  %vm8445_vm10 = vnez %v7795_v48  ;;  %v8451_v48 = vmov 0  ;;  %2284 = vmatpush.msra.mxu1 %v2053_v19  ;;  %1697 = vperm.xlu1 %2699, %v5373_v42   ;;  %v2739_v42 = vld [vmem:[%s2895_s25 + $0xa0] sm:$0xff]  ;;  %v1465_v34 = vpop.permute.xlu0 %1464 }
 0x303   : > { %vm6344_vm0 = vmor %vm1205_vm13, %vm1365_vm6  ;;  %vm8449_vm13 = vcmp.eq.s32.totalorder %v1316_v57, %v3413_v12  ;;  %vm8450_vm6 = vnez %v7803_v62  ;;  %v8457_v62 = vld [vmem:[#allocation73_spill] sm:$0xff]  ;;  %2170 = vmatpush.msra.mxu0 %v2038_v55  ;;  %v1325_v27 = vpop.permute.xlu2 %1324  ;;  %vm1558_vm1 = vcmp.eq.s32.totalorder %v1465_v34, %v3402_v20  ;;  %2623 = vmatpush.msra.mxu3 %v2054_v11 }
 0x304   : > { %vm6354_vm14 = vmor %vm8445_vm10, %vm1384_vm4  ;;  %vm8453_vm10 = vnez %v7896_v17  ;;  %v2052_v17 = vld [vmem:[%s7206_s1 + $0x80] sm:$0xff]  ;;  %v1295_v57 = vpop.permute.xlu1 %1294  ;;  %2615 = vmatpush.msra.mxu2 %v2038_v55  ;;  %v8493_v55 = vmov 0 }
 0x305   : > { %v8447_v39 = vsel %vm6354_vm14, 4294967295, %v8446_v39  ;;  %vm6369_vm4 = vmor %vm8450_vm6, %vm8449_vm13  ;;  %vm8458_vm13 = vnez %v8457_v62  ;;  %v6398_v62 = vld [vmem:[%s2895_s25 + $0xd8] sm:$0xff]  ;;  %2171 = vmatpush.msra.mxu0 %v2037_v59  ;;  %2285 = vmatpush.msra.mxu1 %v2052_v17 }
 0x306   : > { %8448 = vst [vmem:[#allocation53_spill] sm:$0xff] %v8447_v39  ;;  %v8452_v48 = vsel %vm6369_vm4, 4294967295, %v8451_v48  ;;  %vm6375_vm2 = vmor %vm8453_vm10, %vm1392_vm12  ;;  %vm1371_vm12 = vcmp.eq.s32.totalorder %v1295_v57, %v3413_v12  ;;  %1766 = vperm.xlu0 %2698, %v6398_v62   ;;  %vm1559_vm4 = vcmp.eq.s32.totalorder %v1465_v34, %v3413_v12  ;;  %2624 = vmatpush.msra.mxu3 %v2053_v19  ;;  %v8482_v34 = vmov 0  ;;  %v8484_v19 = vld [vmem:[#allocation69_spill] sm:$0xff] }
 0x307   : > { %v8455_v63 = vsel %vm6375_vm2, 4294967295, %v8454_v63  ;;  %vm6384_vm6 = vmor %vm8458_vm13, %vm1393_vm11  ;;  %vm1370_vm11 = vcmp.eq.s32.totalorder %v1295_v57, %v3402_v20  ;;  %vm1391_vm2 = vcmp.eq.s32.totalorder %v1325_v27, %v3413_v12  ;;  %1521 = vperm.xlu2 %2700, %v2739_v42   ;;  %v8466_v57 = vld [vmem:[#allocation66_spill] sm:$0xff]  ;;  %2172 = vmatpush.msra.mxu0 %v2036_v26 }
 0x308   : > { %8456 = vst [vmem:[#allocation55_spill] sm:$0xff] %v8455_v63  ;;  %v8460_v32 = vsel %vm6384_vm6, 4294967295, %v8459_v32  ;;  %v8464_v63 = vmov 0  ;;  %vm1390_vm6 = vcmp.eq.s32.totalorder %v1325_v27, %v3402_v20  ;;  %vm8467_vm14 = vnez %v8466_v57  ;;  %v8474_v42 = vld [vmem:[#allocation46_spill] sm:$0xff]  ;;  %vm6433_vm7 = vmor %vm8478_vm15, %vm1559_vm4  ;;  %2625 = vmatpush.msra.mxu3 %v2052_v17  ;;  %2616 = vmatpush.msra.mxu2 %v2037_v59 }
 0x309   : > { %8461 = vst [vmem:[#allocation77_spill] sm:$0xff] %v8460_v32  ;;  %v8462_v32 = vld [vmem:[#allocation45_spill] sm:$0xff]  ;;  %vm6412_vm3 = vmor %vm8467_vm14, %vm1371_vm12  ;;  %v8472_v27 = vmov 0  ;;  %vm8475_vm14 = vnez %v8474_v42  ;;  %v8476_v57 = vmov 0  ;;  %v8480_v40 = vsel %vm6433_vm7, 4294967295, %v8479_v40  ;;  %v2741_v42 = vld [vmem:[%s2895_s25 + $0x30] sm:$0xff] }
 0x30a   : > { %vm8463_vm10 = vnez %v8462_v32  ;;  %v8470_v32 = vld [vmem:[#allocation51_spill] sm:$0xff]  ;;  %vm6427_vm12 = vmor %vm8475_vm14, %vm1391_vm2  ;;  %1700 = vperm.xlu1 %2699, %v5406_v15   ;;  %vm8485_vm15 = vnez %v8484_v19  ;;  %v1480_v58 = vpop.permute.xlu0 %1479  ;;  %vm8489_vm4 = vnez %v8488_v4  ;;  %v8490_v17 = vmov 0  ;;  %2617 = vmatpush.msra.mxu2 %v2036_v26  ;;  %v6489_v26 = vld [vmem:[%s2895_s25 + $0x60] sm:$0xff] }
 0x30b   : > { %vm6403_vm13 = vmor %vm8463_vm10, %vm1370_vm11  ;;  %vm8471_vm11 = vnez %v8470_v32  ;;  %v8477_v57 = vsel %vm6427_vm12, 4294967295, %v8476_v57  ;;  %v1462_v15 = vpop.permute.xlu2 %1461  ;;  %v8501_v19 = vld [vmem:[#allocation28_spill] sm:$0xff]  ;;  %v8507_v4 = vmov 0 }
 0x30c   : > { %v8465_v63 = vsel %vm6403_vm13, 4294967295, %v8464_v63  ;;  %vm6420_vm10 = vmor %vm8471_vm11, %vm1390_vm6  ;;  %vm8481_vm6 = vnez %v7983_v38  ;;  %v1304_v11 = vpop.permute.xlu1 %1303  ;;  %v8486_v38 = vmov 0  ;;  %vm1556_vm9 = vcmp.eq.s32.totalorder %v1462_v15, %v3402_v20 }
 0x30d   : > { %v8473_v27 = vsel %vm6420_vm10, 4294967295, %v8472_v27  ;;  %vm6439_vm11 = vmor %vm8481_vm6, %vm1558_vm1  ;;  %vm1376_vm2 = vcmp.eq.s32.totalorder %v1304_v11, %v3402_v20  ;;  %vm1377_vm14 = vcmp.eq.s32.totalorder %v1304_v11, %v3413_v12  ;;  %vm1569_vm10 = vcmp.eq.s32.totalorder %v1480_v58, %v3413_v12 }
 0x30e   : > { %v8483_v34 = vsel %vm6439_vm11, 4294967295, %v8482_v34  ;;  %1769 = vperm.xlu0 %2698, %v6447_v28   ;;  %vm6452_vm1 = vmor %vm8485_vm15, %vm1376_vm2  ;;  %vm1568_vm2 = vcmp.eq.s32.totalorder %v1480_v58, %v3402_v20  ;;  %vm8492_vm15 = vnez %v8079_v18  ;;  %v8499_v18 = vmov 0 }
 0x30f   : > { %v8487_v38 = vsel %vm6452_vm1, 4294967295, %v8486_v38  ;;  %1524 = vperm.xlu2 %2700, %v5795_v5   ;;  %vm6459_vm6 = vmor %vm8489_vm4, %vm1377_vm14  ;;  %vm8495_vm1 = vnez %v8065_v29  ;;  %v8496_v5 = vmov 0  ;;  %v2742_v29 = vld [vmem:[%s2895_s25 + $0xb0] sm:$0xff]  ;;  %v8503_v58 = vmov 0 }
 0x310   : > { %v8491_v17 = vsel %vm6459_vm6, 4294967295, %v8490_v17  ;;  %vm6467_vm12 = vmor %vm8492_vm15, %vm1569_vm10  ;;  %vm8498_vm10 = vnez %v8033_v41  ;;  %v8505_v41 = vld [vmem:[#allocation54_spill] sm:$0xff] }
 0x311   : > { %v8494_v55 = vsel %vm6467_vm12, 4294967295, %v8493_v55  ;;  %vm6473_vm13 = vmor %vm8495_vm1, %vm1568_vm2  ;;  %vm8502_vm1 = vnez %v8501_v19 }
 0x312   : > { %v8497_v5 = vsel %vm6473_vm13, 4294967295, %v8496_v5  ;;  %1703 = vperm.xlu1 %2699, %v2741_v42   ;;  %v1489_v11 = vpop.permute.xlu0 %1488  ;;  %v8512_v42 = vld [vmem:[#allocation33_spill] sm:$0xff] }
 0x313   : > { %v1471_v59 = vpop.permute.xlu2 %1470  ;;  %vm1574_vm6 = vcmp.eq.s32.totalorder %v1489_v11, %v3402_v20  ;;  %vm8513_vm7 = vnez %v8512_v42 }
 0x314   : > { %v1313_v32 = vpop.permute.xlu1 %1312  ;;  %vm1562_vm12 = vcmp.eq.s32.totalorder %v1471_v59, %v3402_v20 }
 0x315   : > { %vm1382_vm14 = vcmp.eq.s32.totalorder %v1313_v32, %v3402_v20  ;;  %vm1383_vm4 = vcmp.eq.s32.totalorder %v1313_v32, %v3413_v12  ;;  %v8510_v32 = vmov 0  ;;  %vm6518_vm11 = vmor %vm8513_vm7, %vm1562_vm12 }
 0x316   : > { %2701 = vset.pattern.permute.xlu0 %v7924_v45  ;;  %vm6483_vm15 = vmor %vm8498_vm10, %vm1382_vm14  ;;  %vm1563_vm14 = vcmp.eq.s32.totalorder %v1471_v59, %v3413_v12  ;;  %vm1575_vm10 = vcmp.eq.s32.totalorder %v1489_v11, %v3413_v12  ;;  %v8517_v59 = vmov 0  ;;  %v8519_v11 = vld [vmem:[#allocation24_spill] sm:$0xff] }
 0x317   : > { %v8500_v18 = vsel %vm6483_vm15, 4294967295, %v8499_v18  ;;  %1527 = vperm.xlu2 %2700, %v2742_v29   ;;  %1497 = vperm.xlu0 %2701, %v6489_v26   ;;  %vm6494_vm2 = vmor %vm8502_vm1, %vm1383_vm4  ;;  %vm8506_vm15 = vnez %v8505_v41  ;;  %vm1557_vm4 = vcmp.eq.s32.totalorder %v1462_v15, %v3413_v12  ;;  %vm8509_vm1 = vnez %v8152_v13  ;;  %v8523_v15 = vld [vmem:[#allocation14_spill] sm:$0xff]  ;;  %v2744_v41 = vld [vmem:[%s2895_s25 + $0xb8] sm:$0xff] }
 0x318   : > { %v8504_v58 = vsel %vm6494_vm2, 4294967295, %v8503_v58  ;;  %vm6503_vm13 = vmor %vm8506_vm15, %vm1563_vm14  ;;  %v8514_v29 = vmov 0  ;;  %vm8516_vm15 = vnez %v8139_v21  ;;  %v8526_v21 = vmov 0 }
 0x319   : > { %v8508_v4 = vsel %vm6503_vm13, 4294967295, %v8507_v4  ;;  %vm6511_vm2 = vmor %vm8509_vm1, %vm1575_vm10  ;;  %v8515_v29 = vsel %vm6518_vm11, 4294967295, %v8514_v29  ;;  %vm8520_vm13 = vnez %v8519_v11  ;;  %vm8524_vm1 = vnez %v8523_v15  ;;  %v6547_v11 = vld [vmem:[%s2895_s25 + $0xe8] sm:$0xff] }
 0x31a   : > { %v8511_v32 = vsel %vm6511_vm2, 4294967295, %v8510_v32  ;;  %vm6524_vm14 = vmor %vm8516_vm15, %vm1574_vm6  ;;  %1706 = vperm.xlu1 %2699, %v5573_v54   ;;  %vm8525_vm6 = vnez %v8119_v9  ;;  %v8529_v54 = vmov 0  ;;  %v1686_v9 = vpop.permute.xlu0 %1685 }
 0x31b   : > { %v8518_v59 = vsel %vm6524_vm14, 4294967295, %v8517_v59  ;;  %vm6530_vm10 = vmor %vm8520_vm13, %vm1557_vm4  ;;  %v1477_v42 = vpop.permute.xlu2 %1476  ;;  %vm8528_vm13 = vnez %v8123_v6  ;;  %vm1781_vm14 = vcmp.eq.s32.totalorder %v1686_v9, %v3413_v12  ;;  %v7343_v6 = vmov 0.0  }
 0x31c   : > { %v1322_v19 = vpop.permute.xlu1 %1321  ;;  %vm1620_vm2 = vmor %vm8524_vm1, %vm1556_vm9  ;;  %vm1567_vm9 = vcmp.eq.s32.totalorder %v1477_v42, %v3413_v12  ;;  %vm8531_vm1 = vnez %v8131_v49 }
 0x31d   : > { %vm1388_vm7 = vcmp.eq.s32.totalorder %v1322_v19, %v3402_v20  ;;  %vm1389_vm12 = vcmp.eq.s32.totalorder %v1322_v19, %v3413_v12  ;;  %v8532_v19 = vmov 0 }
 0x31e   : > { %vm6541_vm15 = vmor %vm8525_vm6, %vm1388_vm7  ;;  %vm1566_vm7 = vcmp.eq.s32.totalorder %v1477_v42, %v3402_v20  ;;  %v8536_v42 = vmov 0 }
 0x31f   : > { %v8527_v21 = vsel %vm6541_vm15, 4294967295, %v8526_v21  ;;  %1530 = vperm.xlu2 %2700, %v2744_v41   ;;  %1548 = vperm.xlu0 %2701, %v6547_v11   ;;  %vm6552_vm4 = vmor %vm8528_vm13, %vm1389_vm12  ;;  %vm1780_vm15 = vcmp.eq.s32.totalorder %v1686_v9, %v3402_v20  ;;  %vm7342_vm12 = vcmask 523264   ;;  %v8534_v41 = vld [vmem:[#allocation47_spill] sm:$0xff] }
 0x320   : > { %v8530_v54 = vsel %vm6552_vm4, 4294967295, %v8529_v54  ;;  %vm6560_vm6 = vmor %vm8531_vm1, %vm1567_vm9  ;;  %vm8535_vm9 = vnez %v8534_v41  ;;  %v2747_v41 = vld [vmem:[%s2895_s25 + $0x48] sm:$0xff] }
 0x321   : > { %v8533_v19 = vsel %vm6560_vm6, 4294967295, %v8532_v19  ;;  %vm1844_vm11 = vmor %vm1620_vm2, %vm1780_vm15 }
 0x322   : > { %v2500_v15 = vsel %vm1844_vm11, 1.0, %v7343_v6  ;;  %vm1845_vm13 = vmor %vm6530_vm10, %vm1781_vm14  ;;  %1709 = vperm.xlu1 %2699, %v5606_v35   ;;  %vm8538_vm14 = vnez %v8187_v31  ;;  %v6591_v35 = vld [vmem:[%s2895_s25 + $0xf0] sm:$0xff]  ;;  %v8546_v31 = vmov 0 }
 0x323   : > { %2173 = vmatmul.f32.vlgmr.msra.gmra.mxu0 %v2500_v15  ;;  %v2501_v49 = vsel %vm1845_vm13, 1.0, %v7343_v6  ;;  %vm6572_vm1 = vmor %vm8535_vm9, %vm1566_vm7  ;;  %v1486_v13 = vpop.permute.xlu2 %1485  ;;  %v8539_v15 = vmov 0  ;;  %vm8541_vm13 = vnez %v8197_v2 }
 0x324   : > { %v8537_v42 = vsel %vm6572_vm1, 4294967295, %v8536_v42  ;;  %2564 = vmatmul.msk.f32.vlgmr.msra.gmra.mxu1 %vm7342_vm12, %v2501_v49  ;;  %v1331_v9 = vpop.permute.xlu1 %1330  ;;  %vm1572_vm15 = vcmp.eq.s32.totalorder %v1486_v13, %v3402_v20  ;;  %vm1573_vm7 = vcmp.eq.s32.totalorder %v1486_v13, %v3413_v12  ;;  %vm8545_vm12 = vnez %v8203_v0  ;;  %v6624_v0 = vpop.permute.xlu0 %1736 }
 0x325   : > { %vm1394_vm11 = vcmp.eq.s32.totalorder %v1331_v9, %v3402_v20  ;;  %vm1395_vm2 = vcmp.eq.s32.totalorder %v1331_v9, %v3413_v12  ;;  %v8549_v49 = vmov 0  ;;  %v2748_v9 = vld [vmem:[%s2895_s25 + $0xc8] sm:$0xff] }
 0x326   : > { %vm6584_vm10 = vmor %vm8538_vm14, %vm1394_vm11  ;;  %vm8548_vm14 = vnez %v8200_v10  ;;  %v8552_v10 = vmov 0 }
 0x327   : > { %1533 = vperm.xlu2 %2700, %v6166_v44   ;;  %2706 = vset.pattern.permute.xlu0 %v8295_v51  ;;  %v8540_v15 = vsel %vm6584_vm10, 4294967295, %v8539_v15  ;;  %vm6596_vm9 = vmor %vm8541_vm13, %vm1395_vm2  ;;  %v8542_v44 = vmov 0 }
 0x328   : > { %1775 = vperm.xlu0 %2706, %v6591_v35   ;;  %v8543_v44 = vsel %vm6596_vm9, 4294967295, %v8542_v44  ;;  %vm6602_vm11 = vmor %vm8545_vm12, %vm1573_vm7  ;;  %vm8551_vm7 = vnez %v8271_v37  ;;  %v2749_v37 = vld [vmem:[%s2895_s25 + $0xd0] sm:$0xff] }
 0x329   : > { %8544 = vst [vmem:[#allocation79_spill] sm:$0xff] %v8543_v44  ;;  %v8547_v31 = vsel %vm6602_vm11, 4294967295, %v8546_v31  ;;  %vm6608_vm10 = vmor %vm8548_vm14, %vm1572_vm15  ;;  %vm8554_vm15 = vnez %v8265_v52 }
 0x32a   : > { %v8550_v49 = vsel %vm6608_vm10, 4294967295, %v8549_v49  ;;  %1712 = vperm.xlu1 %2699, %v2747_v41   ;;  %v8555_v41 = vmov 0 }
 0x32b   : > { %v1495_v13 = vpop.permute.xlu2 %1494 }
 0x32c   : > { %v6613_v2 = vpop.permute.xlu1 %1467  ;;  %vm1578_vm2 = vcmp.eq.s32.totalorder %v1495_v13, %v3402_v20  ;;  %vm1579_vm12 = vcmp.eq.s32.totalorder %v1495_v13, %v3413_v12  ;;  %v8558_v13 = vmov 0  ;;  %v6644_v6 = vpop.permute.xlu0 %1739 }
 0x32d   : > { %vm6620_vm13 = vmor %vm8551_vm7, %vm1579_vm12  ;;  %vm8557_vm12 = vnez %v8311_v30 }
 0x32e   : > { %v8553_v10 = vsel %vm6620_vm13, 4294967295, %v8552_v10  ;;  %vm6628_vm14 = vmor %vm8554_vm15, %vm1578_vm2  ;;  %vm8560_vm13 = vnez %v8360_v24 }
 0x32f   : > { %1536 = vperm.xlu2 %2700, %v2748_v9   ;;  %v8556_v41 = vsel %vm6628_vm14, 4294967295, %v8555_v41 }
 0x332   : > { %1715 = vperm.xlu1 %2699, %v5753_v56   ;;  %v8561_v56 = vmov 0 }
 0x333   : > { %v1731_v52 = vpop.permute.xlu2 %1730 }
 0x334   : > { %v6633_v9 = vpop.permute.xlu1 %1473 }
 0x335   : > { %vm1565_vm9 = vcmp.eq.s32.totalorder %v6633_v9, %v3413_v12 }
 0x336   : > { %vm6640_vm7 = vmor %vm8557_vm12, %vm1565_vm9  ;;  %vm8563_vm9 = vnez %v8356_v8  ;;  %v8566_v8 = vmov 0 }
 0x337   : > { %1539 = vperm.xlu2 %2700, %v2749_v37   ;;  %v8559_v13 = vsel %vm6640_vm7, 4294967295, %v8558_v13  ;;  %v8564_v37 = vmov 0  ;;  %vm8579_vm7 = vcmask 523264  }
 0x33a   : > { %1718 = vperm.xlu1 %2699, %v5774_v16   ;;  %v6665_v16 = vpop.permute.xlu0 %1742 }
 0x33b   : > { %v6656_v30 = vpop.permute.xlu2 %1733 }
 0x33c   : > { %v1483_v44 = vpop.permute.xlu1 %1482 }
 0x33d   : > { %vm1570_vm2 = vcmp.eq.s32.totalorder %v1483_v44, %v3402_v20  ;;  %vm1571_vm15 = vcmp.eq.s32.totalorder %v1483_v44, %v3413_v12 }
 0x33e   : > { %vm6652_vm14 = vmor %vm8560_vm13, %vm1571_vm15 }
 0x33f   : > { %1542 = vperm.xlu2 %2700, %v6398_v62   ;;  %v8562_v56 = vsel %vm6652_vm14, 4294967295, %v8561_v56  ;;  %vm6660_vm12 = vmor %vm8563_vm9, %vm1570_vm2  ;;  %vm1815_vm2 = vcmp.eq.s32.totalorder %v6624_v0, %v3413_v12  ;;  %vm8568_vm9 = vnez %v8393_v47  ;;  %vm8571_vm14 = vnez %v8366_v61 }
 0x340   : > { %v8565_v37 = vsel %vm6660_vm12, 4294967295, %v8564_v37 }
 0x342   : > { %1721 = vperm.xlu1 %2699, %v6489_v26   ;;  %v8569_v26 = vmov 0  ;;  %v6695_v61 = vpop.permute.xlu0 %1745 }
 0x343   : > { %v1513_v24 = vpop.permute.xlu2 %1512 }
 0x344   : > { %v1492_v62 = vpop.permute.xlu1 %1491  ;;  %vm1591_vm10 = vcmp.eq.s32.totalorder %v1513_v24, %v3413_v12 }
 0x345   : > { %vm1576_vm4 = vcmp.eq.s32.totalorder %v1492_v62, %v3402_v20  ;;  %vm1577_vm13 = vcmp.eq.s32.totalorder %v1492_v62, %v3413_v12  ;;  %vm1655_vm12 = vmor %vm8571_vm14, %vm1591_vm10  ;;  %v2750_v62 = vld [vmem:[%s2895_s25 + $0x68] sm:$0xff]  ;;  %vm8574_vm10 = vnez %v8288_v60 }
 0x346   : > { %vm6672_vm15 = vmor %vm6181_vm8, %vm1577_vm13  ;;  %vm8573_vm8 = vcmask 523264  }
 0x347   : > { %1545 = vperm.xlu2 %2700, %v6447_v28   ;;  %v8567_v8 = vsel %vm6672_vm15, 4294967295, %v8566_v8  ;;  %vm6680_vm11 = vmor %vm8568_vm9, %vm1576_vm4  ;;  %vm1810_vm4 = vcmp.eq.s32.totalorder %v1731_v52, %v3402_v20 }
 0x348   : > { %v8570_v26 = vsel %vm6680_vm11, 4294967295, %v8569_v26  ;;  %vm1879_vm6 = vmor %vm1655_vm12, %vm1815_vm2  ;;  %vm8577_vm12 = vnez %v8280_v1  ;;  %vm8578_vm11 = vnez %v8343_v33  ;;  %v8580_v33 = vmov 0 }
 0x349   : > { %v2535_v28 = vsel %vm1879_vm6, 1.0, %v8572_v23  ;;  %vm1817_vm6 = vcmp.eq.s32.totalorder %v6644_v6, %v3413_v12 }
 0x34a   : > { %2702 = vset.pattern.permute.xlu1 %v7924_v45  ;;  %2581 = vmatmul.msk.f32.vlgmr.msra.gmra.mxu3 %vm8573_vm8, %v2535_v28  ;;  %v6741_v47 = vpop.permute.xlu0 %1748 }
 0x34b   : > { %1500 = vperm.xlu1 %2702, %v2750_v62   ;;  %v6705_v28 = vpop.permute.xlu2 %1515 }
 0x34c   : > { %v1507_v44 = vpop.permute.xlu1 %1506  ;;  %vm1593_vm8 = vcmp.eq.s32.totalorder %v6705_v28, %v3413_v12 }
 0x34d   : > { %vm1586_vm13 = vcmp.eq.s32.totalorder %v1507_v44, %v3402_v20  ;;  %vm1587_vm9 = vcmp.eq.s32.totalorder %v1507_v44, %v3413_v12  ;;  %vm1657_vm1 = vmor %vm8578_vm11, %vm1593_vm8 }
 0x34e   : > { %vm6699_vm14 = vmor %vm8574_vm10, %vm1587_vm9  ;;  %vm1811_vm9 = vcmp.eq.s32.totalorder %v1731_v52, %v3413_v12 }
 0x34f   : > { %2703 = vset.pattern.permute.xlu2 %v8295_v51  ;;  %vm1650_vm2 = vmor %vm8577_vm12, %vm1586_vm13  ;;  %vm1819_vm12 = vcmp.eq.s32.totalorder %v6665_v16, %v3413_v12 }
 0x350   : > { %1724 = vperm.xlu2 %2703, %v2750_v62   ;;  %vm1874_vm15 = vmor %vm1650_vm2, %vm1810_vm4  ;;  %v2751_v62 = vld [vmem:[%s2895_s25 + $0x70] sm:$0xff] }
 0x351   : > { %v2530_v60 = vsel %vm1874_vm15, 1.0, %v8572_v23  ;;  %vm1881_vm10 = vmor %vm1657_vm1, %vm1817_vm6 }
 0x352   : > { %2218 = vmatmul.f32.vlgmr.msra.gmra.mxu2 %v2530_v60  ;;  %v2537_v44 = vsel %vm1881_vm10, 1.0, %v8572_v23  ;;  %vm6723_vm11 = vmor %vm6699_vm14, %vm1811_vm9  ;;  %vm1590_vm14 = vcmp.eq.s32.totalorder %v1513_v24, %v3402_v20  ;;  %vm8584_vm9 = vnez %v8363_v50  ;;  %v8586_v24 = vmov 0 }
 0x353   : > { %2582 = vmatmul.msk.f32.gmra.mxu3 %vm8579_vm7, %v2537_v44  ;;  %2704 = vset.pattern.permute.xlu1 %v8295_v51  ;;  %v8581_v33 = vsel %vm6723_vm11, 4294967295, %v8580_v33  ;;  %vm1812_vm7 = vcmp.eq.s32.totalorder %v6656_v30, %v3402_v20  ;;  %vm1654_vm10 = vmor %vm8584_vm9, %vm1590_vm14  ;;  %vm8588_vm14 = vnez %v8483_v34  ;;  %vm1821_vm9 = vcmp.eq.s32.totalorder %v6695_v61, %v3413_v12  ;;  %v8600_v44 = vld [vmem:[#allocation74_spill] sm:$0xff] }
 0x354   : > { %v1510_v1 = vpop.permute.xlu1 %1509  ;;  %1772 = vperm.xlu1 %2704, %v6547_v11  }
 0x355   : > { %vm1588_vm13 = vcmp.eq.s32.totalorder %v1510_v1, %v3402_v20  ;;  %vm1589_vm4 = vcmp.eq.s32.totalorder %v1510_v1, %v3413_v12 }
 0x356   : > { %vm6729_vm1 = vmor %vm6344_vm0, %vm1589_vm4  ;;  %vm8585_vm4 = vcmask 523264  }
 0x357   : > { %vm1652_vm15 = vmor %vm6334_vm5, %vm1588_vm13  ;;  %vm1814_vm5 = vcmp.eq.s32.totalorder %v6624_v0, %v3402_v20  ;;  %vm1813_vm13 = vcmp.eq.s32.totalorder %v6656_v30, %v3413_v12  ;;  %v8593_v30 = vld [vmem:[#allocation72_spill] sm:$0xff] }
 0x358   : > { %2705 = vset.pattern.permute.xlu2 %v7924_v45  ;;  %vm1876_vm6 = vmor %vm1652_vm15, %vm1812_vm7 }
 0x359   : > { %1503 = vperm.xlu2 %2705, %v2751_v62   ;;  %v6737_v11 = vpop.permute.xlu2 %1518  ;;  %v2532_v7 = vsel %vm1876_vm6, 1.0, %v8572_v23 }
 0x35a   : > { %vm1595_vm0 = vcmp.eq.s32.totalorder %v6737_v11, %v3413_v12  ;;  %2221 = vmatmul.f32.gmra.mxu2 %v2532_v7 }
 0x35b   : > { %vm1659_vm2 = vmor %vm6412_vm3, %vm1595_vm0 }
 0x35c   : > { %vm1883_vm8 = vmor %vm1659_vm2, %vm1819_vm12  ;;  %1727 = vperm.xlu1 %2704, %v2751_v62   ;;  %v1689_v39 = vpop.permute.xlu1 %1688  ;;  %vm1592_vm12 = vcmp.eq.s32.totalorder %v6705_v28, %v3402_v20  ;;  %vm8589_vm2 = vnez %v8480_v40  ;;  %v6789_v40 = vpop.permute.xlu0 %1751 }
 0x35d   : > { %v2539_v14 = vsel %vm1883_vm8, 1.0, %v8572_v23  ;;  %vm6761_vm3 = vmor %vm6729_vm1, %vm1813_vm13  ;;  %vm1782_vm7 = vcmp.eq.s32.totalorder %v1689_v39, %v3402_v20  ;;  %vm1783_vm15 = vcmp.eq.s32.totalorder %v1689_v39, %v3413_v12 }
 0x35e   : > { %2583 = vmatmul.msk.f32.gmra.mxu3 %vm8585_vm4, %v2539_v14  ;;  %v8587_v24 = vsel %vm6761_vm3, 4294967295, %v8586_v24  ;;  %vm1878_vm0 = vmor %vm1654_vm10, %vm1814_vm5  ;;  %vm1561_vm5 = vcmp.eq.s32.totalorder %v6613_v2, %v3413_v12  ;;  %vm8590_vm10 = vnez %v8405_v53  ;;  %vm1560_vm4 = vcmp.eq.s32.totalorder %v6613_v2, %v3402_v20  ;;  %v8610_v14 = vld [vmem:[#allocation8_spill] sm:$0xff] }
 0x35f   : > { %vm1846_vm6 = vmor %vm8588_vm14, %vm1782_vm7  ;;  %v2534_v34 = vsel %vm1878_vm0, 1.0, %v8572_v23  ;;  %vm8591_vm7 = vcmask 523264   ;;  %vm1816_vm14 = vcmp.eq.s32.totalorder %v6644_v6, %v3402_v20  ;;  %vm8592_vm0 = vnez %v8333_v36  ;;  %v8598_v6 = vld [vmem:[#allocation75_spill] sm:$0xff]  ;;  %v2752_v36 = vld [vmem:[%s2895_s25 + $0xf8] sm:$0xff]  ;;  %s135_s25 = sand.u32 1, %s2807_s10  }
 0x360   : > { %v2502_v0 = vsel %vm1846_vm6, 1.0, %v8572_v23  ;;  %vm1847_vm8 = vmor %vm8589_vm2, %vm1783_vm15  ;;  %s2497_s16 = sshll.u32 %s135_s25, 8  ;;  %s2416_s13 = scalar_lea.sflag [#allocation3], %s135_s25 }
 0x361   : > { %1551 = vperm.xlu2 %2705, %v6591_v35   ;;  %v6768_v50 = vpop.permute.xlu2 %1521  ;;  %2176 = vmatmul.f32.gmra.mxu0 %v2502_v0  ;;  %v2503_v35 = vsel %vm1847_vm8, 1.0, %v8572_v23  ;;  %vm1656_vm6 = vmor %vm8592_vm0, %vm1592_vm12  ;;  %s7010_s17 = scalar_lea.vmem [#allocation2], %s2497_s16 }
 0x362   : > { %vm1597_vm1 = vcmp.eq.s32.totalorder %v6768_v50, %v3413_v12  ;;  %2224 = vmatmul.f32.gmra.mxu2 %v2534_v34  ;;  %2565 = vmatmul.msk.f32.gmra.mxu1 %vm8591_vm7, %v2503_v35  ;;  %vm8597_vm8 = vmmov %vm8591_vm7  ;;  %v8615_v34 = vld [vmem:[#allocation78_spill] sm:$0xff]  ;;  %s2428_s26 = sshll.u32 %s7010_s17, 4  ;;  %s2429_s26 = int_to_ptr.vmem [resolvable:$true] %s2428_s26 }
 0x363   : > { %vm1661_vm13 = vmor %vm8590_vm10, %vm1597_vm1  ;;  %vm8594_vm1 = vnez %v8593_v30 }
 0x364   : > { %vm1885_vm15 = vmor %vm1661_vm13, %vm1821_vm9  ;;  %2707 = vset.pattern.permute.xlu1 %v7924_v45  ;;  %v1692_v60 = vpop.permute.xlu1 %1691  ;;  %vm8599_vm9 = vnez %v8598_v6  ;;  %v6833_v62 = vpop.permute.xlu0 %1754 }
 0x365   : > { %v2541_v53 = vsel %vm1885_vm15, 1.0, %v8572_v23  ;;  %vm6802_vm2 = vmor %vm8594_vm1, %vm1561_vm5  ;;  %vm1784_vm13 = vcmp.eq.s32.totalorder %v1692_v60, %v3402_v20  ;;  %vm1785_vm7 = vcmp.eq.s32.totalorder %v1692_v60, %v3413_v12  ;;  %1554 = vperm.xlu1 %2707, %v2752_v36   ;;  %vm1594_vm15 = vcmp.eq.s32.totalorder %v6737_v11, %v3402_v20 }
 0x366   : > { %2584 = vmatmul.msk.f32.gmra.mxu3 %vm8597_vm8, %v2541_v53  ;;  %vm1624_vm10 = vmor %vm8599_vm9, %vm1560_vm4 }
 0x367   : > { %vm1880_vm12 = vmor %vm1656_vm6, %vm1816_vm14  ;;  %vm1823_vm14 = vcmp.eq.s32.totalorder %v6741_v47, %v3413_v12  ;;  %vm8601_vm6 = vnez %v8600_v44 }
 0x368   : > { %vm1848_vm5 = vmor %vm1624_vm10, %vm1784_vm13 }
 0x369   : > { %v6813_v28 = vpop.permute.xlu2 %1524  ;;  %2708 = vset.pattern.permute.xlu2 %v8295_v51  ;;  %v2504_v45 = vsel %vm1848_vm5, 1.0, %v8572_v23  ;;  %vm1849_vm4 = vmor %vm6802_vm2, %vm1785_vm7  ;;  %v2536_v51 = vsel %vm1880_vm12, 1.0, %v8572_v23  ;;  %vm8602_vm2 = vnez %v8465_v63  ;;  %vm1818_vm7 = vcmp.eq.s32.totalorder %v6665_v16, %v3402_v20 }
 0x36a   : > { %vm1599_vm0 = vcmp.eq.s32.totalorder %v6813_v28, %v3413_v12  ;;  %1778 = vperm.xlu2 %2708, %v2752_v36   ;;  %2179 = vmatmul.f32.gmra.mxu0 %v2504_v45  ;;  %v2505_v1 = vsel %vm1849_vm4, 1.0, %v8572_v23  ;;  %vm1658_vm10 = vmor %vm8602_vm2, %vm1594_vm15  ;;  %vm8604_vm4 = vnez %v8515_v29  ;;  %vm1596_vm15 = vcmp.eq.s32.totalorder %v6768_v50, %v3402_v20 }
 0x36b   : > { %vm1663_vm1 = vmor %vm8601_vm6, %vm1599_vm0  ;;  %2227 = vmatmul.f32.gmra.mxu2 %v2536_v51  ;;  %2566 = vmatmul.msk.f32.gmra.mxu1 %vm8597_vm8, %v2505_v1  ;;  %vm8606_vm2 = vnez %v8491_v17 }
 0x36c   : > { %vm1887_vm9 = vmor %vm1663_vm1, %vm1823_vm14  ;;  %v1695_v11 = vpop.permute.xlu1 %1694  ;;  %vm8605_vm1 = vnez %v8508_v4  ;;  %v6868_v39 = vpop.permute.xlu0 %1757 }
 0x36d   : > { %v2543_v52 = vsel %vm1887_vm9, 1.0, %v8572_v23  ;;  %vm8603_vm13 = vmmov %vm8597_vm8  ;;  %vm1786_vm12 = vcmp.eq.s32.totalorder %v1695_v11, %v3402_v20  ;;  %vm1787_vm5 = vcmp.eq.s32.totalorder %v1695_v11, %v3413_v12  ;;  %vm1825_vm9 = vcmp.eq.s32.totalorder %v6789_v40, %v3413_v12 }
 0x36e   : > { %2585 = vmatmul.msk.f32.gmra.mxu3 %vm8603_vm13, %v2543_v52  ;;  %vm1882_vm0 = vmor %vm1658_vm10, %vm1818_vm7  ;;  %vm1564_vm13 = vcmp.eq.s32.totalorder %v6633_v9, %v3402_v20  ;;  %vm8607_vm7 = vcmask 523264  }
 0x36f   : > { %vm1850_vm14 = vmor %vm8604_vm4, %vm1786_vm12  ;;  %v2538_v29 = vsel %vm1882_vm0, 1.0, %v8572_v23  ;;  %vm8611_vm0 = vnez %v8610_v14  ;;  %v8650_v14 = vld [vmem:[#allocation29_spill] sm:$0xff] }
 0x370   : > { %v2506_v63 = vsel %vm1850_vm14, 1.0, %v8572_v23  ;;  %vm1851_vm8 = vmor %vm8605_vm1, %vm1787_vm5  ;;  %vm8608_vm5 = vnez %v8400_v43 }
 0x371   : > { %v6840_v7 = vpop.permute.xlu2 %1527  ;;  %v2507_v16 = vsel %vm1851_vm8, 1.0, %v8572_v23  ;;  %vm1660_vm4 = vmor %vm8608_vm5, %vm1596_vm15  ;;  %vm1598_vm15 = vcmp.eq.s32.totalorder %v6813_v28, %v3402_v20 }
 0x372   : > { %vm1601_vm6 = vcmp.eq.s32.totalorder %v6840_v7, %v3413_v12  ;;  %2182 = vmatmul.f32.gmra.mxu0 %v2506_v63  ;;  %vm8609_vm14 = vmmov %vm8607_vm7 }
 0x373   : > { %vm1665_vm10 = vmor %vm8606_vm2, %vm1601_vm6  ;;  %2230 = vmatmul.f32.gmra.mxu2 %v2538_v29  ;;  %2567 = vmatmul.msk.f32.gmra.mxu1 %vm8607_vm7, %v2507_v16  ;;  %vm1820_vm6 = vcmp.eq.s32.totalorder %v6695_v61, %v3402_v20 }
 0x374   : > { %vm1889_vm12 = vmor %vm1665_vm10, %vm1825_vm9  ;;  %v1698_v17 = vpop.permute.xlu1 %1697  ;;  %v6895_v35 = vpop.permute.xlu0 %1760 }
 0x375   : > { %v2545_v4 = vsel %vm1889_vm12, 1.0, %v8572_v23  ;;  %vm1628_vm1 = vmor %vm8611_vm0, %vm1564_vm13  ;;  %vm1788_vm8 = vcmp.eq.s32.totalorder %v1698_v17, %v3402_v20  ;;  %vm1789_vm9 = vcmp.eq.s32.totalorder %v1698_v17, %v3413_v12  ;;  %vm8612_vm12 = vnez %v8559_v13 }
 0x376   : > { %2586 = vmatmul.msk.f32.gmra.mxu3 %vm8609_vm14, %v2545_v4  ;;  %vm1884_vm2 = vmor %vm1660_vm4, %vm1820_vm6  ;;  %vm1827_vm13 = vcmp.eq.s32.totalorder %v6833_v62, %v3413_v12  ;;  %vm8613_vm14 = vnez %v8430_v22  ;;  %vm8614_vm4 = vcmask 523264  }
 0x377   : > { %vm1852_vm10 = vmor %vm1628_vm1, %vm1788_vm8  ;;  %v2540_v61 = vsel %vm1884_vm2, 1.0, %v8572_v23  ;;  %vm8616_vm1 = vnez %v8615_v34 }
 0x378   : > { %v2508_v43 = vsel %vm1852_vm10, 1.0, %v8572_v23  ;;  %vm1853_vm5 = vmor %vm8612_vm12, %vm1789_vm9  ;;  %vm1822_vm10 = vcmp.eq.s32.totalorder %v6741_v47, %v3402_v20 }
 0x379   : > { %v1531_v9 = vpop.permute.xlu2 %1530  ;;  %v2509_v50 = vsel %vm1853_vm5, 1.0, %v8572_v23  ;;  %vm1662_vm8 = vmor %vm8616_vm1, %vm1598_vm15  ;;  %vm8618_vm5 = vnez %v8537_v42  ;;  %vm1600_vm15 = vcmp.eq.s32.totalorder %v6840_v7, %v3402_v20  ;;  %vm8620_vm1 = vnez %v8414_v46 }
 0x37a   : > { %vm1603_vm7 = vcmp.eq.s32.totalorder %v1531_v9, %v3413_v12  ;;  %2185 = vmatmul.f32.gmra.mxu0 %v2508_v43  ;;  %vm8617_vm9 = vmmov %vm8614_vm4 }
 0x37b   : > { %vm1667_vm0 = vmor %vm8613_vm14, %vm1603_vm7  ;;  %2233 = vmatmul.f32.gmra.mxu2 %v2540_v61  ;;  %2568 = vmatmul.msk.f32.gmra.mxu1 %vm8614_vm4, %v2509_v50  ;;  %v8657_v50 = vld [vmem:[#allocation71_spill] sm:$0xff] }
 0x37c   : > { %vm1891_vm6 = vmor %vm1667_vm0, %vm1827_vm13  ;;  %v1701_v22 = vpop.permute.xlu1 %1700  ;;  %vm8619_vm0 = vnez %v8533_v19  ;;  %v6931_v60 = vpop.permute.xlu0 %1763 }
 0x37d   : > { %v2547_v0 = vsel %vm1891_vm6, 1.0, %v8572_v23  ;;  %vm1790_vm7 = vcmp.eq.s32.totalorder %v1701_v22, %v3402_v20  ;;  %vm1791_vm2 = vcmp.eq.s32.totalorder %v1701_v22, %v3413_v12  ;;  %vm1886_vm12 = vmor %vm1662_vm8, %vm1822_vm10  ;;  %vm1829_vm6 = vcmp.eq.s32.totalorder %v6868_v39, %v3413_v12 }
 0x37e   : > { %2587 = vmatmul.msk.f32.gmra.mxu3 %vm8617_vm9, %v2547_v0  ;;  %vm1854_vm13 = vmor %vm8618_vm5, %vm1790_vm7  ;;  %v2542_v42 = vsel %vm1886_vm12, 1.0, %v8572_v23  ;;  %vm8621_vm7 = vnez %v8487_v38 }
 0x37f   : > { %v2510_v53 = vsel %vm1854_vm13, 1.0, %v8572_v23  ;;  %vm1855_vm4 = vmor %vm8619_vm0, %vm1791_vm2  ;;  %vm1824_vm13 = vcmp.eq.s32.totalorder %v6789_v40, %v3402_v20 }
 0x380   : > { %v2511_v47 = vsel %vm1855_vm4, 1.0, %v8572_v23  ;;  %vm1664_vm2 = vmor %vm8621_vm7, %vm1600_vm15  ;;  %vm1602_vm4 = vcmp.eq.s32.totalorder %v1531_v9, %v3402_v20  ;;  %vm8624_vm15 = vnez %v8494_v55 }
 0x381   : > { %v1534_v13 = vpop.permute.xlu2 %1533  ;;  %vm8622_vm5 = vmmov %vm8617_vm9 }
 0x382   : > { %vm1605_vm14 = vcmp.eq.s32.totalorder %v1534_v13, %v3413_v12  ;;  %2188 = vmatmul.f32.gmra.mxu0 %v2510_v53  ;;  %vm1888_vm0 = vmor %vm1664_vm2, %vm1824_vm13  ;;  %vm1831_vm2 = vcmp.eq.s32.totalorder %v6895_v35, %v3413_v12 }
 0x383   : > { %vm1669_vm8 = vmor %vm8620_vm1, %vm1605_vm14  ;;  %2236 = vmatmul.f32.gmra.mxu2 %v2542_v42  ;;  %2569 = vmatmul.msk.f32.gmra.mxu1 %vm8617_vm9, %v2511_v47  ;;  %v2544_v40 = vsel %vm1888_vm0, 1.0, %v8572_v23  ;;  %vm1826_vm0 = vcmp.eq.s32.totalorder %v6833_v62, %v3402_v20  ;;  %v8662_v42 = vld [vmem:[#allocation52_spill] sm:$0xff] }
 0x384   : > { %vm1893_vm10 = vmor %vm1669_vm8, %vm1829_vm6  ;;  %v1704_v46 = vpop.permute.xlu1 %1703  ;;  %vm8623_vm6 = vnez %v8497_v5 }
 0x385   : > { %v2549_v30 = vsel %vm1893_vm10, 1.0, %v8572_v23  ;;  %vm1792_vm14 = vcmp.eq.s32.totalorder %v1704_v46, %v3402_v20  ;;  %vm1793_vm12 = vcmp.eq.s32.totalorder %v1704_v46, %v3413_v12  ;;  %vm8625_vm10 = vnez %v8504_v58 }
 0x386   : > { %2588 = vmatmul.msk.f32.gmra.mxu3 %vm8622_vm5, %v2549_v30  ;;  %vm1856_vm1 = vmor %vm8623_vm6, %vm1792_vm14  ;;  %vm8626_vm5 = vnez %v8426_v3  ;;  %vm8627_vm14 = vcmask 523264  }
 0x387   : > { %vm1857_vm9 = vmor %vm8624_vm15, %vm1793_vm12  ;;  %v2512_v38 = vsel %vm1856_vm1, 1.0, %v8572_v23 }
 0x388   : > { %v2513_v2 = vsel %vm1857_vm9, 1.0, %v8572_v23  ;;  %vm1666_vm13 = vmor %vm8626_vm5, %vm1602_vm4  ;;  %vm1604_vm9 = vcmp.eq.s32.totalorder %v1534_v13, %v3402_v20  ;;  %vm8629_vm4 = vnez %v8565_v37  ;;  %v8632_v37 = vld [vmem:[#allocation26_spill] sm:$0xff] }
 0x389   : > { %v1537_v19 = vpop.permute.xlu2 %1536  ;;  %vm8628_vm6 = vmmov %vm8627_vm14 }
 0x38a   : > { %vm1607_vm8 = vcmp.eq.s32.totalorder %v1537_v19, %v3413_v12  ;;  %2191 = vmatmul.f32.gmra.mxu0 %v2512_v38  ;;  %vm1890_vm15 = vmor %vm1666_vm13, %vm1826_vm0  ;;  %vm1833_vm13 = vcmp.eq.s32.totalorder %v6931_v60, %v3413_v12  ;;  %vm8633_vm0 = vnez %v8632_v37 }
 0x38b   : > { %vm1671_vm7 = vmor %vm8625_vm10, %vm1607_vm8  ;;  %2239 = vmatmul.f32.gmra.mxu2 %v2544_v40  ;;  %2570 = vmatmul.msk.f32.gmra.mxu1 %vm8627_vm14, %v2513_v2  ;;  %vm8631_vm14 = vnez %v8452_v48  ;;  %v2546_v6 = vsel %vm1890_vm15, 1.0, %v8572_v23  ;;  %vm1828_vm15 = vcmp.eq.s32.totalorder %v6868_v39, %v3402_v20  ;;  %v8669_v2 = vmov 0 }
 0x38c   : > { %vm1895_vm12 = vmor %vm1671_vm7, %vm1831_vm2  ;;  %v1707_v5 = vpop.permute.xlu1 %1706  ;;  %vm8630_vm2 = vnez %v8562_v56  ;;  %v6961_v56 = vpop.permute.xlu0 %1766 }
 0x38d   : > { %v2551_v55 = vsel %vm1895_vm12, 1.0, %v8572_v23  ;;  %vm1794_vm1 = vcmp.eq.s32.totalorder %v1707_v5, %v3402_v20  ;;  %vm1795_vm8 = vcmp.eq.s32.totalorder %v1707_v5, %v3413_v12  ;;  %v8676_v5 = vld [vmem:[#allocation31_spill] sm:$0xff] }
 0x38e   : > { %2589 = vmatmul.msk.f32.gmra.mxu3 %vm8628_vm6, %v2551_v55  ;;  %vm1858_vm10 = vmor %vm8629_vm4, %vm1794_vm1  ;;  %vm8634_vm1 = vcmask 523264   ;;  %v8674_v55 = vld [vmem:[#allocation77_spill] sm:$0xff] }
 0x38f   : > { %vm1859_vm5 = vmor %vm8630_vm2, %vm1795_vm8  ;;  %v2514_v58 = vsel %vm1858_vm10, 1.0, %v8572_v23 }
 0x390   : > { %v2515_v36 = vsel %vm1859_vm5, 1.0, %v8572_v23  ;;  %vm1668_vm6 = vmor %vm8633_vm0, %vm1604_vm9  ;;  %vm8636_vm9 = vnez %v8550_v49 }
 0x391   : > { %v6943_v3 = vpop.permute.xlu2 %1539  ;;  %vm8635_vm4 = vmmov %vm8634_vm1 }
 0x392   : > { %vm1609_vm7 = vcmp.eq.s32.totalorder %v6943_v3, %v3413_v12  ;;  %2194 = vmatmul.f32.gmra.mxu0 %v2514_v58  ;;  %vm1892_vm2 = vmor %vm1668_vm6, %vm1828_vm15 }
 0x393   : > { %vm1673_vm12 = vmor %vm8631_vm14, %vm1609_vm7  ;;  %2242 = vmatmul.f32.gmra.mxu2 %v2546_v6  ;;  %2571 = vmatmul.msk.f32.gmra.mxu1 %vm8634_vm1, %v2515_v36  ;;  %vm1606_vm14 = vcmp.eq.s32.totalorder %v1537_v19, %v3402_v20  ;;  %vm1835_vm1 = vcmp.eq.s32.totalorder %v6961_v56, %v3413_v12  ;;  %v2548_v51 = vsel %vm1892_vm2, 1.0, %v8572_v23 }
 0x394   : > { %vm1897_vm8 = vmor %vm1673_vm12, %vm1833_vm13  ;;  %v1710_v28 = vpop.permute.xlu1 %1709  ;;  %vm8637_vm13 = vnez %v8547_v31  ;;  %v6992_v1 = vpop.permute.xlu0 %1769 }
 0x395   : > { %v2553_v48 = vsel %vm1897_vm8, 1.0, %v8572_v23  ;;  %vm1796_vm10 = vcmp.eq.s32.totalorder %v1710_v28, %v3402_v20  ;;  %vm1797_vm7 = vcmp.eq.s32.totalorder %v1710_v28, %v3413_v12  ;;  %vm8638_vm8 = vnez %v8438_v25 }
 0x396   : > { %2590 = vmatmul.msk.f32.gmra.mxu3 %vm8635_vm4, %v2553_v48  ;;  %vm1860_vm5 = vmor %vm8636_vm9, %vm1796_vm10  ;;  %vm8639_vm10 = vnez %v8500_v18  ;;  %vm1830_vm9 = vcmp.eq.s32.totalorder %v6895_v35, %v3402_v20  ;;  %v8660_v35 = vld [vmem:[#allocation76_spill] sm:$0xff] }
 0x397   : > { %v2516_v44 = vsel %vm1860_vm5, 1.0, %v8572_v23  ;;  %vm1861_vm0 = vmor %vm8637_vm13, %vm1797_vm7 }
 0x398   : > { %v2517_v49 = vsel %vm1861_vm0, 1.0, %v8572_v23  ;;  %vm1670_vm7 = vmor %vm8639_vm10, %vm1606_vm14  ;;  %vm8641_vm0 = vnez %v8518_v59  ;;  %vm8643_vm10 = vnez %v8530_v54  ;;  %v8644_v54 = vld [vmem:[#allocation53_spill] sm:$0xff] }
 0x399   : > { %v1543_v45 = vpop.permute.xlu2 %1542  ;;  %vm8640_vm5 = vmmov %vm8635_vm4 }
 0x39a   : > { %vm1611_vm12 = vcmp.eq.s32.totalorder %v1543_v45, %v3413_v12  ;;  %2197 = vmatmul.f32.gmra.mxu0 %v2516_v44  ;;  %vm1894_vm13 = vmor %vm1670_vm7, %vm1830_vm9 }
 0x39b   : > { %vm1675_vm6 = vmor %vm8638_vm8, %vm1611_vm12  ;;  %2245 = vmatmul.f32.gmra.mxu2 %v2548_v51  ;;  %2572 = vmatmul.msk.f32.gmra.mxu1 %vm8635_vm4, %v2517_v49  ;;  %vm1837_vm4 = vcmp.eq.s32.totalorder %v6992_v1, %v3413_v12  ;;  %v2550_v59 = vsel %vm1894_vm13, 1.0, %v8572_v23  ;;  %vm1832_vm13 = vcmp.eq.s32.totalorder %v6931_v60, %v3402_v20  ;;  %v8672_v60 = vld [vmem:[#allocation55_spill] sm:$0xff] }
 0x39c   : > { %vm1899_vm15 = vmor %vm1675_vm6, %vm1835_vm1  ;;  %v1713_v25 = vpop.permute.xlu1 %1712  ;;  %vm1608_vm1 = vcmp.eq.s32.totalorder %v6943_v3, %v3402_v20  ;;  %vm8642_vm6 = vnez %v8511_v32  ;;  %v1498_v39 = vpop.permute.xlu0 %1497  ;;  %v8682_v51 = vld [vmem:[#allocation79_spill] sm:$0xff] }
 0x39d   : > { %v2555_v31 = vsel %vm1899_vm15, 1.0, %v8572_v23  ;;  %vm1798_vm2 = vcmp.eq.s32.totalorder %v1713_v25, %v3402_v20  ;;  %vm1799_vm12 = vcmp.eq.s32.totalorder %v1713_v25, %v3413_v12 }
 0x39e   : > { %2591 = vmatmul.msk.f32.gmra.mxu3 %vm8640_vm5, %v2555_v31  ;;  %vm1862_vm14 = vmor %vm8641_vm0, %vm1798_vm2  ;;  %vm8645_vm2 = vnez %v8644_v54 }
 0x39f   : > { %v2518_v11 = vsel %vm1862_vm14, 1.0, %v8572_v23  ;;  %vm1863_vm15 = vmor %vm8642_vm6, %vm1799_vm12 }
 0x3a0   : > { %v2174_v62 = vpop.f32.mrf.mxu0  ;;  %v2519_v63 = vsel %vm1863_vm15, 1.0, %v8572_v23  ;;  %vm1672_vm12 = vmor %vm8645_vm2, %vm1608_vm1  ;;  %vm8647_vm15 = vnez %v8570_v26  ;;  %vm8648_vm1 = vnez %v8567_v8 }
 0x3a1   : > { %v1546_v52 = vpop.permute.xlu2 %1545  ;;  %v2287_v18 = vpop.f32.mrf.mxu1  ;;  %vm8646_vm0 = vmmov %vm8640_vm5 }
 0x3a2   : > { %vm1613_vm8 = vcmp.eq.s32.totalorder %v1546_v52, %v3413_v12  ;;  %v2288_v7 = vadd.f32 %v2287_v18, %v2174_v62  ;;  %2200 = vmatmul.f32.gmra.mxu0 %v2518_v11  ;;  %vm1896_vm6 = vmor %vm1672_vm12, %vm1832_vm13  ;;  %vm1834_vm12 = vcmp.eq.s32.totalorder %v6961_v56, %v3402_v20 }
 0x3a3   : > { %vm1677_vm7 = vmor %vm8643_vm10, %vm1613_vm8  ;;  %2248 = vmatmul.f32.gmra.mxu2 %v2550_v59  ;;  %2573 = vmatmul.msk.f32.gmra.mxu1 %vm8640_vm5, %v2519_v63  ;;  %vm1610_vm10 = vcmp.eq.s32.totalorder %v1543_v45, %v3402_v20  ;;  %v2552_v4 = vsel %vm1896_vm6, 1.0, %v8572_v23  ;;  %vm8651_vm5 = vnez %v8650_v14 }
 0x3a4   : > { %vm1901_vm9 = vmor %vm1677_vm7, %vm1837_vm4  ;;  %2383 = vst [vmem:[%s7010_s17] sm:$0xff] %v2288_v7  ;;  %v1716_v29 = vpop.permute.xlu1 %1715  ;;  %v1549_v53 = vpop.permute.xlu0 %1548 }
 0x3a5   : > { %v2557_v32 = vsel %vm1901_vm9, 1.0, %v8572_v23  ;;  %vm1800_vm14 = vcmp.eq.s32.totalorder %v1716_v29, %v3402_v20  ;;  %vm1801_vm8 = vcmp.eq.s32.totalorder %v1716_v29, %v3413_v12  ;;  %vm8649_vm9 = vmmov %vm8646_vm0 }
 0x3a6   : > { %2592 = vmatmul.msk.f32.gmra.mxu3 %vm8646_vm0, %v2557_v32  ;;  %vm1864_vm4 = vmor %vm8647_vm15, %vm1800_vm14  ;;  %vm1612_vm15 = vcmp.eq.s32.totalorder %v1546_v52, %v3402_v20 }
 0x3a7   : > { %v2520_v16 = vsel %vm1864_vm4, 1.0, %v8572_v23  ;;  %vm1865_vm7 = vmor %vm8648_vm1, %vm1801_vm8  ;;  %vm8652_vm8 = vnez %v8556_v41  ;;  %vm8653_vm4 = vnez %v8553_v10  ;;  %vm1581_vm1 = vcmp.eq.s32.totalorder %v1498_v39, %v3413_v12  ;;  %v8655_v41 = vld [vmem:[#allocation49_spill] sm:$0xff] }
 0x3a8   : > { %v2521_v17 = vsel %vm1865_vm7, 1.0, %v8572_v23  ;;  %vm1674_vm2 = vmor %vm8651_vm5, %vm1610_vm10  ;;  %vm1580_vm7 = vcmp.eq.s32.totalorder %v1498_v39, %v3402_v20  ;;  %vm8654_vm5 = vnez %v8527_v21 }
 0x3a9   : > { %vm1898_vm14 = vmor %vm1674_vm2, %vm1834_vm12  ;;  %vm8656_vm12 = vnez %v8655_v41 }
 0x3aa   : > { %2203 = vmatmul.f32.gmra.mxu0 %v2520_v16  ;;  %v2554_v9 = vsel %vm1898_vm14, 1.0, %v8572_v23  ;;  %v1725_v61 = vpop.permute.xlu2 %1724  ;;  %vm1676_vm2 = vmor %vm8654_vm5, %vm1612_vm15  ;;  %vm8658_vm14 = vnez %v8657_v50  ;;  %vm8659_vm15 = vcmask 523264  }
 0x3ab   : > { %2251 = vmatmul.f32.gmra.mxu2 %v2552_v4  ;;  %2574 = vmatmul.msk.f32.gmra.mxu1 %vm8649_vm9, %v2521_v17 }
 0x3ac   : > { %v1719_v26 = vpop.permute.xlu1 %1718  ;;  %v1776_v38 = vpop.permute.xlu0 %1775 }
 0x3ad   : > { %vm1802_vm13 = vcmp.eq.s32.totalorder %v1719_v26, %v3402_v20  ;;  %vm1803_vm0 = vcmp.eq.s32.totalorder %v1719_v26, %v3413_v12 }
 0x3ae   : > { %vm1866_vm6 = vmor %vm8652_vm8, %vm1802_vm13 }
 0x3af   : > { %v2522_v8 = vsel %vm1866_vm6, 1.0, %v8572_v23  ;;  %vm1867_vm10 = vmor %vm8653_vm4, %vm1803_vm0  ;;  %vm1836_vm0 = vcmp.eq.s32.totalorder %v6992_v1, %v3402_v20 }
 0x3b0   : > { %v2523_v43 = vsel %vm1867_vm10, 1.0, %v8572_v23  ;;  %vm1645_vm13 = vmor %vm8656_vm12, %vm1581_vm1  ;;  %vm1806_vm1 = vcmp.eq.s32.totalorder %v1725_v61, %v3402_v20 }
 0x3b1   : > { %vm1644_vm8 = vmor %vm8658_vm14, %vm1580_vm7 }
 0x3b2   : > { %2206 = vmatmul.f32.gmra.mxu0 %v2522_v8  ;;  %vm1900_vm10 = vmor %vm1676_vm2, %vm1836_vm0  ;;  %vm1807_vm2 = vcmp.eq.s32.totalorder %v1725_v61, %v3413_v12 }
 0x3b3   : > { %2254 = vmatmul.f32.gmra.mxu2 %v2554_v9  ;;  %2575 = vmatmul.msk.f32.gmra.mxu1 %vm8649_vm9, %v2523_v43  ;;  %v2556_v21 = vsel %vm1900_vm10, 1.0, %v8572_v23  ;;  %v1504_v22 = vpop.permute.xlu2 %1503  ;;  %vm8664_vm10 = vmmov %vm8659_vm15 }
 0x3b4   : > { %v1722_v10 = vpop.permute.xlu1 %1721 }
 0x3b5   : > { %vm1804_vm6 = vcmp.eq.s32.totalorder %v1722_v10, %v3402_v20  ;;  %vm1805_vm4 = vcmp.eq.s32.totalorder %v1722_v10, %v3413_v12 }
 0x3b6   : > { %vm1868_vm3 = vmor %vm1644_vm8, %vm1804_vm6  ;;  %vm1615_vm6 = vcmp.eq.s32.totalorder %v1549_v53, %v3413_v12 }
 0x3b7   : > { %v2524_v0 = vsel %vm1868_vm3, 1.0, %v8572_v23  ;;  %vm1869_vm9 = vmor %vm1645_vm13, %vm1805_vm4  ;;  %vm8661_vm3 = vnez %v8660_v35  ;;  %vm8663_vm13 = vnez %v8662_v42  ;;  %vm1614_vm4 = vcmp.eq.s32.totalorder %v1549_v53, %v3402_v20 }
 0x3b8   : > { %v2525_v34 = vsel %vm1869_vm9, 1.0, %v8572_v23  ;;  %vm8665_vm9 = vnez %v8477_v57  ;;  %v8667_v57 = vld [vmem:[#allocation50_spill] sm:$0xff] }
 0x3ba   : > { %2209 = vmatmul.f32.gmra.mxu0 %v2524_v0 }
 0x3bb   : > { %2257 = vmatmul.f32.gmra.mxu2 %v2556_v21  ;;  %2576 = vmatmul.msk.f32.gmra.mxu1 %vm8659_vm15, %v2525_v34  ;;  %v1552_v46 = vpop.permute.xlu2 %1551  ;;  %vm1679_vm15 = vmor %vm8665_vm9, %vm1615_vm6  ;;  %vm8668_vm6 = vnez %v8667_v57  ;;  %vm8671_vm9 = vcmask 523264  }
 0x3bd   : > { %v1501_v13 = vpop.permute.xlu1 %1500 }
 0x3be   : > { %vm1582_vm7 = vcmp.eq.s32.totalorder %v1501_v13, %v3402_v20  ;;  %vm1583_vm5 = vcmp.eq.s32.totalorder %v1501_v13, %v3413_v12 }
 0x3bf   : > { %vm1647_vm12 = vmor %vm8661_vm3, %vm1583_vm5 }
 0x3c0   : > { %vm1646_vm0 = vmor %vm8663_vm13, %vm1582_vm7  ;;  %vm1585_vm7 = vcmp.eq.s32.totalorder %v1504_v22, %v3413_v12 }
 0x3c1   : > { %vm1870_vm14 = vmor %vm1646_vm0, %vm1806_vm1  ;;  %vm1617_vm0 = vcmp.eq.s32.totalorder %v1552_v46, %v3413_v12 }
 0x3c2   : > { %v2526_v47 = vsel %vm1870_vm14, 1.0, %v8572_v23  ;;  %vm1871_vm8 = vmor %vm1647_vm12, %vm1807_vm2  ;;  %vm8666_vm2 = vnez %v8473_v27  ;;  %vm1616_vm12 = vcmp.eq.s32.totalorder %v1552_v46, %v3402_v20 }
 0x3c3   : > { %2212 = vmatmul.f32.gmra.mxu0 %v2526_v47  ;;  %v2527_v30 = vsel %vm1871_vm8, 1.0, %v8572_v23  ;;  %vm1678_vm3 = vmor %vm8666_vm2, %vm1614_vm4  ;;  %vm1584_vm8 = vcmp.eq.s32.totalorder %v1504_v22, %v3402_v20  ;;  %vm1840_vm4 = vcmp.eq.s32.totalorder %v1776_v38, %v3402_v20 }
 0x3c4   : > { %2577 = vmatmul.msk.f32.gmra.mxu1 %vm8664_vm10, %v2527_v30  ;;  %vm7091_vm10 = vmor %vm8668_vm6, %vm1585_vm7  ;;  %vm8677_vm7 = vnez %v8676_v5  ;;  %v1779_v28 = vpop.permute.xlu2 %1778 }
 0x3c5   : > { %v8670_v2 = vsel %vm7091_vm10, 4294967295, %v8669_v2 }
 0x3c6   : > { %v1773_v19 = vpop.permute.xlu1 %1772 }
 0x3c7   : > { %vm1838_vm1 = vcmp.eq.s32.totalorder %v1773_v19, %v3402_v20  ;;  %vm1839_vm5 = vcmp.eq.s32.totalorder %v1773_v19, %v3413_v12 }
 0x3c8   : > { %vm1902_vm13 = vmor %vm1678_vm3, %vm1838_vm1  ;;  %vm8673_vm1 = vnez %v8672_v60  ;;  %vm1841_vm3 = vcmp.eq.s32.totalorder %v1776_v38, %v3413_v12 }
 0x3c9   : > { %v2558_v40 = vsel %vm1902_vm13, 1.0, %v8572_v23  ;;  %vm1903_vm14 = vmor %vm1679_vm15, %vm1839_vm5  ;;  %vm8675_vm15 = vnez %v8674_v55 }
 0x3ca   : > { %2260 = vmatmul.f32.gmra.mxu2 %v2558_v40  ;;  %v2559_v27 = vsel %vm1903_vm14, 1.0, %v8572_v23  ;;  %vm1680_vm2 = vmor %vm8673_vm1, %vm1616_vm12  ;;  %vm8678_vm12 = vnez %v8670_v2 }
 0x3cb   : > { %2593 = vmatmul.msk.f32.gmra.mxu3 %vm8671_vm9, %v2559_v27  ;;  %vm1681_vm5 = vmor %vm8675_vm15, %vm1617_vm0  ;;  %vm8681_vm15 = vnez %v8540_v15 }
 0x3cc   : > { %vm1648_vm13 = vmor %vm8677_vm7, %vm1584_vm8  ;;  %vm8679_vm8 = vcmask 523264  }
 0x3cd   : > { %v2338_v3 = vpop.f32.mrf.mxu3  ;;  %vm1904_vm6 = vmor %vm1680_vm2, %vm1840_vm4 }
 0x3ce   : > { %v1728_v58 = vpop.permute.xlu1 %1727  ;;  %vm1905_vm11 = vmor %vm1681_vm5, %vm1841_vm3  ;;  %v2560_v36 = vsel %vm1904_vm6, 1.0, %v8572_v23  ;;  %vm8683_vm3 = vnez %v8682_v51 }
 0x3cf   : > { %vm1808_vm14 = vcmp.eq.s32.totalorder %v1728_v58, %v3402_v20  ;;  %vm1809_vm10 = vcmp.eq.s32.totalorder %v1728_v58, %v3413_v12  ;;  %v2561_v56 = vsel %vm1905_vm11, 1.0, %v8572_v23  ;;  %vm8680_vm4 = vmmov %vm8679_vm8  ;;  %vm1842_vm11 = vcmp.eq.s32.totalorder %v1779_v28, %v3402_v20 }
 0x3d0   : > { %vm1872_vm9 = vmor %vm1648_vm13, %vm1808_vm14  ;;  %vm8684_vm13 = vnez %v8581_v33 }
 0x3d1   : > { %v2528_v6 = vsel %vm1872_vm9, 1.0, %v8572_v23  ;;  %vm1873_vm0 = vmor %vm8678_vm12, %vm1809_vm10  ;;  %vm1843_vm10 = vcmp.eq.s32.totalorder %v1779_v28, %v3413_v12  ;;  %v2531_v49 = vsel %vm8684_vm13, 1.0, %v8572_v23 }
 0x3d2   : > { %2215 = vmatmul.f32.gmra.mxu0 %v2528_v6  ;;  %2263 = vmatmul.f32.gmra.mxu2 %v2560_v36  ;;  %v2529_v37 = vsel %vm1873_vm0, 1.0, %v8572_v23  ;;  %vm8685_vm14 = vmmov %vm8680_vm4  ;;  %vm8687_vm0 = vnez %v8587_v24 }
 0x3d3   : > { %2578 = vmatmul.msk.f32.gmra.mxu1 %vm8679_vm8, %v2529_v37  ;;  %2594 = vmatmul.msk.f32.gmra.mxu3 %vm8680_vm4, %v2561_v56  ;;  %vm8686_vm12 = vmmov %vm8680_vm4  ;;  %v2533_v52 = vsel %vm8687_vm0, 1.0, %v8572_v23 }
 0x3d4   : > { %vm8688_vm8 = vmmov %vm8680_vm4 }
 0x3d5   : > { %v7115_v48 = vpop.f32.mrf.mxu2 }
 0x3d6   : > { %v2341_v44 = vpop.f32.mrf.mxu3 }
 0x3d7   : > { %v1555_v45 = vpop.permute.xlu1 %1554 }
 0x3d8   : > { %vm1618_vm1 = vcmp.eq.s32.totalorder %v1555_v45, %v3402_v20  ;;  %vm1619_vm2 = vcmp.eq.s32.totalorder %v1555_v45, %v3413_v12 }
 0x3d9   : > { %vm1682_vm5 = vmor %vm8681_vm15, %vm1618_vm1 }
 0x3da   : > { %vm1683_vm7 = vmor %vm8683_vm3, %vm1619_vm2 }
 0x3db   : > { %vm1907_vm6 = vmor %vm1683_vm7, %vm1843_vm10  ;;  %2579 = vmatmul.msk.f32.gmra.mxu1 %vm8685_vm14, %v2531_v49 }
 0x3dc   : > { %vm1906_vm9 = vmor %vm1682_vm5, %vm1842_vm11  ;;  %v2563_v12 = vsel %vm1907_vm6, 1.0, %v8572_v23 }
 0x3dd   : > { %v7129_v31 = vpop.f32.mrf.mxu2  ;;  %v2562_v15 = vsel %vm1906_vm9, 1.0, %v8572_v23  ;;  %2595 = vmatmul.msk.f32.gmra.mxu3 %vm8686_vm12, %v2563_v12 }
 0x3de   : > { %v2177_v20 = vpop.f32.mrf.mxu0  ;;  %2266 = vmatmul.f32.gmra.mxu2 %v2562_v15 }
 0x3df   : > { %v2290_v25 = vpop.f32.mrf.mxu1 }
 0x3e0   : > { %v2291_v1 = vadd.f32 %v2290_v25, %v2177_v20 }
 0x3e1   : > { %v2344_v33 = vpop.f32.mrf.mxu3 }
 0x3e2   : > { %2384 = vst [vmem:[%s7010_s17 + $0x8] sm:$0xff] %v2291_v1 }
 0x3e3   : > { %2580 = vmatmul.msk.f32.gmra.mxu1 %vm8688_vm8, %v2533_v52 }
 0x3e5   : > { %v2225_v62 = vpop.f32.mrf.mxu2 }
 0x3e6   : > { %v2339_v18 = vadd.f32 %v2338_v3, %v2225_v62 }
 0x3e7   : > { %v2180_v11 = vpop.f32.mrf.mxu0 }
 0x3e8   : > { %v2293_v7 = vpop.f32.mrf.mxu1  ;;  %2400 = vst [vmem:[%s7010_s17 + $0x88] sm:$0xff] %v2339_v18 }
 0x3e9   : > { %v2294_v59 = vadd.f32 %v2293_v7, %v2180_v11  ;;  %v2347_v63 = vpop.f32.mrf.mxu3 }
 0x3eb   : > { %2385 = vst [vmem:[%s7010_s17 + $0x10] sm:$0xff] %v2294_v59 }
 0x3ee   : > { %v2228_v32 = vpop.f32.mrf.mxu2 }
 0x3ef   : > { %v2342_v54 = vadd.f32 %v2341_v44, %v2228_v32  ;;  %v2183_v29 = vpop.f32.mrf.mxu0 }
 0x3f0   : > { %v2296_v16 = vpop.f32.mrf.mxu1 }
 0x3f1   : > { %2401 = vst [vmem:[%s7010_s17 + $0x90] sm:$0xff] %v2342_v54  ;;  %v2297_v23 = vadd.f32 %v2296_v16, %v2183_v29  ;;  %v2350_v14 = vpop.f32.mrf.mxu3 }
 0x3f3   : > { %2386 = vst [vmem:[%s7010_s17 + $0x18] sm:$0xff] %v2297_v23 }
 0x3f6   : > { %v2231_v24 = vpop.f32.mrf.mxu2 }
 0x3f7   : > { %v2345_v4 = vadd.f32 %v2344_v33, %v2231_v24  ;;  %v2186_v17 = vpop.f32.mrf.mxu0 }
 0x3f8   : > { %v2299_v26 = vpop.f32.mrf.mxu1 }
 0x3f9   : > { %2402 = vst [vmem:[%s7010_s17 + $0x98] sm:$0xff] %v2345_v4  ;;  %v2300_v39 = vadd.f32 %v2299_v26, %v2186_v17  ;;  %v2353_v10 = vpop.f32.mrf.mxu3 }
 0x3fb   : > { %2387 = vst [vmem:[%s7010_s17 + $0x20] sm:$0xff] %v2300_v39 }
 0x3fe   : > { %v2234_v8 = vpop.f32.mrf.mxu2 }
 0x3ff   : > { %v2348_v9 = vadd.f32 %v2347_v63, %v2234_v8  ;;  %v2189_v43 = vpop.f32.mrf.mxu0 }
 0x400   : > { %v2302_v61 = vpop.f32.mrf.mxu1 }
 0x401   : > { %2403 = vst [vmem:[%s7010_s17 + $0xa0] sm:$0xff] %v2348_v9  ;;  %v2303_v41 = vadd.f32 %v2302_v61, %v2189_v43  ;;  %v2356_v13 = vpop.f32.mrf.mxu3 }
 0x403   : > { %2388 = vst [vmem:[%s7010_s17 + $0x28] sm:$0xff] %v2303_v41 }
 0x406   : > { %v2237_v50 = vpop.f32.mrf.mxu2 }
 0x407   : > { %v2351_v0 = vadd.f32 %v2350_v14, %v2237_v50  ;;  %v2192_v21 = vpop.f32.mrf.mxu0 }
 0x408   : > { %v2305_v34 = vpop.f32.mrf.mxu1 }
 0x409   : > { %2404 = vst [vmem:[%s7010_s17 + $0xa8] sm:$0xff] %v2351_v0  ;;  %v2306_v22 = vadd.f32 %v2305_v34, %v2192_v21  ;;  %v2359_v46 = vpop.f32.mrf.mxu3 }
 0x40b   : > { %2389 = vst [vmem:[%s7010_s17 + $0x30] sm:$0xff] %v2306_v22 }
 0x40e   : > { %v2240_v35 = vpop.f32.mrf.mxu2 }
 0x40f   : > { %v2354_v53 = vadd.f32 %v2353_v10, %v2240_v35  ;;  %v2195_v42 = vpop.f32.mrf.mxu0 }
 0x410   : > { %v2308_v47 = vpop.f32.mrf.mxu1 }
 0x411   : > { %2405 = vst [vmem:[%s7010_s17 + $0xb0] sm:$0xff] %v2354_v53  ;;  %v2309_v30 = vadd.f32 %v2308_v47, %v2195_v42  ;;  %v2362_v55 = vpop.f32.mrf.mxu3 }
 0x413   : > { %2390 = vst [vmem:[%s7010_s17 + $0x38] sm:$0xff] %v2309_v30 }
 0x416   : > { %v2243_v19 = vpop.f32.mrf.mxu2 }
 0x417   : > { %v2357_v38 = vadd.f32 %v2356_v13, %v2243_v19  ;;  %v2198_v40 = vpop.f32.mrf.mxu0 }
 0x418   : > { %v2311_v57 = vpop.f32.mrf.mxu1 }
 0x419   : > { %2406 = vst [vmem:[%s7010_s17 + $0xb8] sm:$0xff] %v2357_v38  ;;  %v2312_v2 = vadd.f32 %v2311_v57, %v2198_v40  ;;  %v2365_v28 = vpop.f32.mrf.mxu3 }
 0x41b   : > { %2391 = vst [vmem:[%s7010_s17 + $0x40] sm:$0xff] %v2312_v2 }
 0x41e   : > { %v2246_v27 = vpop.f32.mrf.mxu2 }
 0x41f   : > { %v2360_v60 = vadd.f32 %v2359_v46, %v2246_v27  ;;  %v2201_v5 = vpop.f32.mrf.mxu0 }
 0x420   : > { %v2314_v3 = vpop.f32.mrf.mxu1 }
 0x421   : > { %2407 = vst [vmem:[%s7010_s17 + $0xc0] sm:$0xff] %v2360_v60  ;;  %v2315_v58 = vadd.f32 %v2314_v3, %v2201_v5  ;;  %v2368_v20 = vpop.f32.mrf.mxu3 }
 0x423   : > { %2392 = vst [vmem:[%s7010_s17 + $0x48] sm:$0xff] %v2315_v58 }
 0x426   : > { %v2249_v6 = vpop.f32.mrf.mxu2 }
 0x427   : > { %v2363_v36 = vadd.f32 %v2362_v55, %v2249_v6  ;;  %v2204_v37 = vpop.f32.mrf.mxu0 }
 0x428   : > { %v2317_v56 = vpop.f32.mrf.mxu1 }
 0x429   : > { %2408 = vst [vmem:[%s7010_s17 + $0xc8] sm:$0xff] %v2363_v36  ;;  %v2318_v45 = vadd.f32 %v2317_v56, %v2204_v37  ;;  %v2371_v18 = vpop.f32.mrf.mxu3 }
 0x42b   : > { %2393 = vst [vmem:[%s7010_s17 + $0x50] sm:$0xff] %v2318_v45 }
 0x42e   : > { %v2252_v44 = vpop.f32.mrf.mxu2 }
 0x42f   : > { %v2366_v51 = vadd.f32 %v2365_v28, %v2252_v44  ;;  %v2207_v49 = vpop.f32.mrf.mxu0 }
 0x430   : > { %v2320_v12 = vpop.f32.mrf.mxu1 }
 0x431   : > { %2409 = vst [vmem:[%s7010_s17 + $0xd0] sm:$0xff] %v2366_v51  ;;  %v2321_v15 = vadd.f32 %v2320_v12, %v2207_v49 }
 0x433   : > { %2394 = vst [vmem:[%s7010_s17 + $0x58] sm:$0xff] %v2321_v15 }
 0x436   : > { %v2255_v25 = vpop.f32.mrf.mxu2 }
 0x437   : > { %v2369_v1 = vadd.f32 %v2368_v20, %v2255_v25  ;;  %v2210_v33 = vpop.f32.mrf.mxu0 }
 0x438   : > { %v2323_v52 = vpop.f32.mrf.mxu1 }
 0x439   : > { %2410 = vst [vmem:[%s7010_s17 + $0xd8] sm:$0xff] %v2369_v1  ;;  %v2324_v62 = vadd.f32 %v2323_v52, %v2210_v33 }
 0x43b   : > { %2395 = vst [vmem:[%s7010_s17 + $0x60] sm:$0xff] %v2324_v62 }
 0x43e   : > { %v2258_v11 = vpop.f32.mrf.mxu2 }
 0x43f   : > { %v2372_v7 = vadd.f32 %v2371_v18, %v2258_v11 }
 0x440   : > { %v2213_v59 = vpop.f32.mrf.mxu0 }
 0x441   : > { %2411 = vst [vmem:[%s7010_s17 + $0xe0] sm:$0xff] %v2372_v7  ;;  %v2326_v63 = vpop.f32.mrf.mxu1 }
 0x442   : > { %v2327_v32 = vadd.f32 %v2326_v63, %v2213_v59 }
 0x444   : > { %2396 = vst [vmem:[%s7010_s17 + $0x68] sm:$0xff] %v2327_v32 }
 0x44d   : > { %v2261_v54 = vpop.f32.mrf.mxu2 }
 0x44e   : > { %v2374_v29 = vpop.f32.mrf.mxu3 }
 0x44f   : > { %v2375_v16 = vadd.f32 %v2374_v29, %v2261_v54  ;;  %v2216_v23 = vpop.f32.mrf.mxu0 }
 0x450   : > { %v2329_v24 = vpop.f32.mrf.mxu1 }
 0x451   : > { %2412 = vst [vmem:[%s7010_s17 + $0xe8] sm:$0xff] %v2375_v16  ;;  %v2330_v4 = vadd.f32 %v2329_v24, %v2216_v23 }
 0x453   : > { %2397 = vst [vmem:[%s7010_s17 + $0x70] sm:$0xff] %v2330_v4 }
 0x455   : > { %v2264_v17 = vpop.f32.mrf.mxu2 }
 0x456   : > { %v2377_v14 = vpop.f32.mrf.mxu3 }
 0x457   : > { %v2378_v26 = vadd.f32 %v2377_v14, %v2264_v17 }
 0x458   : > { %v2332_v39 = vpop.f32.mrf.mxu1 }
 0x459   : > { %2413 = vst [vmem:[%s7010_s17 + $0xf0] sm:$0xff] %v2378_v26  ;;  %v2333_v8 = vadd.f32 %v2332_v39, %v7115_v48 }
 0x45b   : > { %2398 = vst [vmem:[%s7010_s17 + $0x78] sm:$0xff] %v2333_v8 }
 0x460   : > { %v2335_v9 = vpop.f32.mrf.mxu1  ;;  %v2380_v43 = vpop.f32.mrf.mxu3 }
 0x461   : > { %v2267_v61 = vpop.f32.mrf.mxu2  ;;  %v2336_v41 = vadd.f32 %v2335_v9, %v7129_v31 }
 0x462   : > { %v2381_v10 = vadd.f32 %v2380_v43, %v2267_v61 }
 0x463   : > { %2399 = vst [vmem:[%s7010_s17 + $0x80] sm:$0xff] %v2336_v41 }
 0x464   : > { %2414 = vst [vmem:[%s7010_s17 + $0xf8] sm:$0xff] %v2381_v10 }
 0x465   : > { %2780 = shalt.err (!%p2777_p3)
}
 0x466   : > { %s2826_s7 = smov 128   ;;  %s2827_s8 = smov 8  }
 0x467   : > { %2626 = dma.vmem_to_hbm [thread:$0]  (%p2881_p5), %s2429_s26, 4096, %s2431_s27, %s2416_s13, %s2826_s7, %s2826_s7, %s2827_s8  }
 0x468 PF: > { %p2632_p4 = scmp.ge.s32.totalorder %s2815_s12, 2  ;;  %s2445_s14 = sand.u32 1, %s2803_s9  }
 0x469   : > { %s2446_s25 = scalar_lea.sflag [#allocation3], %s2445_s14 }
 0x46a   : > { %p2629_p7 = pnand %p2632_p4, %p2885_p6 }
 0x46c   : > { %p2630_p8 = pneg %p2629_p7 }
 0x46e   : > { %2798 = dma.done.wait (%p2630_p8), %s2446_s25, 4096  }
 0x46f   : > { %2800 = vsyncadd (%p2630_p8), %s2446_s25, 4294963200  ;;  %p12_p9 = scmp.ge.s32.totalorder %s2868_s15, 4   ;;  %s8689_s9 = smov %s2807_s10 }
 0x470   : > { %s8690_s10 = smov %s2811_s11  ;;  %s8691_s11 = smov %s2879_s18 }
 0x471   : > { %s8692_s12 = smov %s2868_s15  ;;  %14 = sbr.rel (!%p12_p9) target bundleno = 3 (0x3), region = 63 }
 0x476   :  { %2452 = vsyncpa [#allocation3], 1 }
 0x477   :  { %2454 = vsyncpa [#allocation3 + $0x1], 1 }

</bundles_post_ra>
